<compile_context>
chip_gen: v5e
topology: v5e:2x2
jax: 0.10.0
libtpu: 0.0.40
codegen_flags: <defaults>
</compile_context>

<pallas_src>
import functools

import jax
import jax.numpy as jnp
from jax import lax
from jax.experimental import pallas as pl
from jax.experimental.pallas import tpu as pltpu

EPS = 1e-5


def _softplus(x):
    # matches torch.nn.Softplus (beta=1, threshold=20)
    return jnp.where(x > 20.0, x, jnp.log1p(jnp.exp(jnp.minimum(x, 20.0))))


def _default_vmem_limit():
    """~3/4 of physical VMEM, capped at 100 MiB (96 MiB v5e/v6e, 48 MiB v7x)."""
    try:
        cap = int(pltpu.get_tpu_info().vmem_capacity_bytes)
    except Exception:
        cap = 64 * 1024 * 1024  # conservative fallback
    return int(min(100 * 1024 * 1024, cap * 3 // 4))


# ---------------------------------------------------------------------------
# Kernels
# ---------------------------------------------------------------------------
def linear_kernel(x_ref, w_ref, b_ref, o_ref):
    # bf16 operands (cast in the wrapper), f32 accumulation on the MXU.
    o_ref[...] = (
        jnp.dot(x_ref[...], w_ref[...], preferred_element_type=jnp.float32)
        + b_ref[...]
    )


def conv_gate_kernel(atom_ref,       # (TN, A) bf16             self features
                     anbr_ref,       # (M, TN, A) bf16           gathered neighbors
                     bond_ref,       # (M, TN, F_nbr) bf16       bond features
                     ws_ref, wn_ref, wb_ref,   # bf16 split fc_full weights
                     b_ref,          # (1, 2A) f32               fc_full bias
                     gated_ref,      # out: (M, TN, 2A) bf16     cached pre-acts
                     ssum_ref,       # out: (1, 1, 2A) f32       BN1 partial sum
                     ssq_ref,        # out: (1, 1, 2A) f32       BN1 partial sumsq
                     *, M, TN, A, F_nbr):
    two_a = 2 * A
    # Self projection (TN, 2A); fc_full bias folded in here once.
    self_proj = (
        jnp.dot(atom_ref[...], ws_ref[...], preferred_element_type=jnp.float32)
        + b_ref[...]
    )
    # Batched neighbor/bond projections: ONE MXU call each over all M*TN rows
    # (TN is a multiple of 16, so these leading-dim merges are tile-aligned).
    g_nbr = anbr_ref[...].reshape(M * TN, A)
    bond = bond_ref[...].reshape(M * TN, F_nbr)
    pair = (
        jnp.dot(g_nbr, wn_ref[...], preferred_element_type=jnp.float32)
        + jnp.dot(bond, wb_ref[...], preferred_element_type=jnp.float32)
    )
    gated = pair.reshape(M, TN, two_a) + self_proj[None, :, :]
    gated_ref[...] = gated.astype(gated_ref.dtype)

    # BN1 partial statistics for this row block (reduced across blocks in XLA).
    # Stats computed on the f32 values (pre bf16 rounding of the cache).
    s_m = jnp.sum(gated, axis=0)                 # (TN, 2A): cheap leading-axis adds
    q_m = jnp.sum(gated * gated, axis=0)
    ssum_ref[...] = jnp.sum(s_m, axis=0, keepdims=True).reshape(1, 1, two_a)
    ssq_ref[...] = jnp.sum(q_m, axis=0, keepdims=True).reshape(1, 1, two_a)


def conv_apply_kernel(gated_ref,     # (M, TN, 2A) bf16
                      scale_ref,     # (1, 2A) f32  folded BN1 scale
                      shift_ref,     # (1, 2A) f32  folded BN1 shift
                      summed_ref,    # out: (TN, A) f32
                      ssum_ref,      # out: (1, 1, A) f32  BN2 partial sum
                      ssq_ref,       # out: (1, 1, A) f32  BN2 partial sumsq
                      *, A):
    two_a = 2 * A
    scale = scale_ref[...].reshape(1, 1, two_a)
    shift = shift_ref[...].reshape(1, 1, two_a)
    # BN1 + activations run lane-dense at width 2A = 128.
    nrm = gated_ref[...].astype(jnp.float32) * scale + shift
    filt = jax.nn.sigmoid(nrm[..., :A])
    core = _softplus(nrm[..., A:])
    prod = filt * core                            # (M, TN, A)
    s = jnp.sum(prod, axis=0)                     # neighbor sum: leading-axis adds
    summed_ref[...] = s
    ssum_ref[...] = jnp.sum(s, axis=0, keepdims=True).reshape(1, 1, A)
    ssq_ref[...] = jnp.sum(s * s, axis=0, keepdims=True).reshape(1, 1, A)


def bn2_residual_kernel(summed_ref, atom_ref, scale_ref, shift_ref, o_ref):
    # folded BN2 (one FMA) + residual + softplus
    o_ref[...] = _softplus(
        atom_ref[...] + summed_ref[...] * scale_ref[...] + shift_ref[...])


def head_kernel(pool_ref, atom_ref, sput_ref,
                wc_ref, bc_ref,
                w1a_ref, w1b_ref, b1_ref,
                w2_ref, b2_ref,
                w3_ref, b3_ref,
                wo_ref, bo_ref, o_ref):
    # mean pooling per crystal as matmul with the (B, N) normalized indicator
    crys = jnp.dot(pool_ref[...], atom_ref[...], preferred_element_type=jnp.float32)
    crys = _softplus(crys)
    crys = jnp.dot(crys, wc_ref[...], preferred_element_type=jnp.float32) + bc_ref[...]
    crys = _softplus(crys)
    # cat([crys, sputter], 1) @ W1 == crys @ W1[:H] + sputter @ W1[H:]
    h = (
        jnp.dot(crys, w1a_ref[...], preferred_element_type=jnp.float32)
        + jnp.dot(sput_ref[...], w1b_ref[...], preferred_element_type=jnp.float32)
        + b1_ref[...]
    )
    h = jnp.maximum(h, 0.0)
    h = jnp.maximum(
        jnp.dot(h, w2_ref[...], preferred_element_type=jnp.float32) + b2_ref[...], 0.0)
    h = jnp.maximum(
        jnp.dot(h, w3_ref[...], preferred_element_type=jnp.float32) + b3_ref[...], 0.0)
    o_ref[...] = (
        jnp.dot(h, wo_ref[...], preferred_element_type=jnp.float32) + bo_ref[...]
    )


# ---------------------------------------------------------------------------
# Parameter init (deterministic, PyTorch-Linear-style uniform fan-in bound)
# ---------------------------------------------------------------------------
def _linear_params(key, fan_in, fan_out):
    kw, kb = jax.random.split(key)
    bound = 1.0 / float(fan_in) ** 0.5
    w = jax.random.uniform(kw, (fan_in, fan_out), jnp.float32, -bound, bound)
    b = jax.random.uniform(kb, (1, fan_out), jnp.float32, -bound, bound)
    return w, b


def init_params(key, orig_atom_fea_len, nbr_fea_len, sputter_fea_len,
                atom_fea_len=64, n_conv=3, h_fea_len=128):
    keys = jax.random.split(key, 8 + n_conv)
    p = {}
    p["emb_w"], p["emb_b"] = _linear_params(keys[0], orig_atom_fea_len, atom_fea_len)
    p["convs"] = []
    for c in range(n_conv):
        w, b = _linear_params(keys[1 + c], 2 * atom_fea_len + nbr_fea_len,
                              2 * atom_fea_len)
        p["convs"].append({
            "w": w, "b": b,
            # BatchNorm affine params (PyTorch init: weight=1, bias=0)
            "g1": jnp.ones((1, 2 * atom_fea_len), jnp.float32),
            "be1": jnp.zeros((1, 2 * atom_fea_len), jnp.float32),
            "g2": jnp.ones((1, atom_fea_len), jnp.float32),
            "be2": jnp.zeros((1, atom_fea_len), jnp.float32),
        })
    p["cfc_w"], p["cfc_b"] = _linear_params(keys[1 + n_conv], atom_fea_len, h_fea_len)
    cat_len = h_fea_len + sputter_fea_len  # = 145 with defaults (128 + 17)
    assert cat_len == 145, "GraphNet.addlayer_1 expects 145 input features"
    w1, p["a1_b"] = _linear_params(keys[2 + n_conv], cat_len, 200)
    p["a1_wa"] = w1[:h_fea_len, :]
    p["a1_wb"] = w1[h_fea_len:, :]
    p["a2_w"], p["a2_b"] = _linear_params(keys[3 + n_conv], 200, 400)
    p["a3_w"], p["a3_b"] = _linear_params(keys[4 + n_conv], 400, 800)
    p["out_w"], p["out_b"] = _linear_params(keys[5 + n_conv], 800, 1)
    return p


# ---------------------------------------------------------------------------
# Forward
# ---------------------------------------------------------------------------
def _pick_block_rows(n, max_rows):
    """Largest row-block (multiple of 16) dividing n, capped at max_rows."""
    for cand in (1024, 512, 256, 128, 64, 32, 16):
        if cand <= max_rows and n % cand == 0:
            return cand
    return n  # fallback: single full-size block (always a legal block shape)


def _fold_bn(ssum, ssq, count, gamma, beta):
    """Fold batch statistics + affine params into a single scale/shift."""
    mean = jnp.sum(ssum, axis=0) / count                       # (1, C)
    # one-pass variance; clamped (see TODO about catastrophic cancellation)
    var = jnp.maximum(jnp.sum(ssq, axis=0) / count - mean * mean, 0.0)
    scale = gamma * lax.rsqrt(var + EPS)
    shift = beta - mean * scale
    return scale, shift


def _conv_layer(atom, nbr_t, idx_t, lp, *, N, M, A, F_nbr, TN, vmem_limit):
    nb = N // TN
    two_a = 2 * A
    # fc_full input ordering is [self(A) | neighbor(A) | bond(F_nbr)]
    w = lp["w"]
    w_self = w[:A].astype(jnp.bfloat16)
    w_nbr = w[A:two_a].astype(jnp.bfloat16)
    w_bond = w[two_a:].astype(jnp.bfloat16)

    atom_bf = atom.astype(jnp.bfloat16)
    # Vectorized neighbor gather done by XLA, straight into neighbor-major
    # (M, N, A) bf16 layout so per-block slabs are contiguous leading-axis views.
    atom_nbr_t = jnp.take(atom_bf, idx_t, axis=0)               # (M, N, A)

    cparams = pltpu.CompilerParams(
        dimension_semantics=("parallel",), vmem_limit_bytes=vmem_limit)
    inv2 = lambda i: (0, 0)  # grid-invariant 2-D operands

    # ---- pass 1: gate (matmuls once, cache gated bf16 + BN1 partial stats) ----
    gated, s1, q1 = pl.pallas_call(
        functools.partial(conv_gate_kernel, M=M, TN=TN, A=A, F_nbr=F_nbr),
        grid=(nb,),
        in_specs=[
            pl.BlockSpec((TN, A), lambda i: (i, 0)),            # self atoms
            pl.BlockSpec((M, TN, A), lambda i: (0, i, 0)),      # gathered neighbors
            pl.BlockSpec((M, TN, F_nbr), lambda i: (0, i, 0)),  # bond features
            pl.BlockSpec((A, two_a), inv2),                     # W_self
            pl.BlockSpec((A, two_a), inv2),                     # W_nbr
            pl.BlockSpec((F_nbr, two_a), inv2),                 # W_bond
            pl.BlockSpec((1, two_a), inv2),                     # bias
        ],
        out_specs=[
            pl.BlockSpec((M, TN, two_a), lambda i: (0, i, 0)),
            pl.BlockSpec((1, 1, two_a), lambda i: (i, 0, 0)),
            pl.BlockSpec((1, 1, two_a), lambda i: (i, 0, 0)),
        ],
        out_shape=[
            jax.ShapeDtypeStruct((M, N, two_a), jnp.bfloat16),
            jax.ShapeDtypeStruct((nb, 1, two_a), jnp.float32),
            jax.ShapeDtypeStruct((nb, 1, two_a), jnp.float32),
        ],
        compiler_params=cparams,
    )(atom_bf, atom_nbr_t, nbr_t, w_self, w_nbr, w_bond, lp["b"])

    scale1, shift1 = _fold_bn(s1, q1, float(N * M), lp["g1"], lp["be1"])

    # ---- pass 2: folded BN1 + sigmoid/softplus + neighbor sum ----
    summed, s2, q2 = pl.pallas_call(
        functools.partial(conv_apply_kernel, A=A),
        grid=(nb,),
        in_specs=[
            pl.BlockSpec((M, TN, two_a), lambda i: (0, i, 0)),
            pl.BlockSpec((1, two_a), inv2),
            pl.BlockSpec((1, two_a), inv2),
        ],
        out_specs=[
            pl.BlockSpec((TN, A), lambda i: (i, 0)),
            pl.BlockSpec((1, 1, A), lambda i: (i, 0, 0)),
            pl.BlockSpec((1, 1, A), lambda i: (i, 0, 0)),
        ],
        out_shape=[
            jax.ShapeDtypeStruct((N, A), jnp.float32),
            jax.ShapeDtypeStruct((nb, 1, A), jnp.float32),
            jax.ShapeDtypeStruct((nb, 1, A), jnp.float32),
        ],
        compiler_params=cparams,
    )(gated, scale1, shift1)

    scale2, shift2 = _fold_bn(s2, q2, float(N), lp["g2"], lp["be2"])

    # ---- pass 3: folded BN2 + residual + softplus ----
    atom_out = pl.pallas_call(
        bn2_residual_kernel,
        grid=(nb,),
        in_specs=[
            pl.BlockSpec((TN, A), lambda i: (i, 0)),
            pl.BlockSpec((TN, A), lambda i: (i, 0)),
            pl.BlockSpec((1, A), inv2),
            pl.BlockSpec((1, A), inv2),
        ],
        out_specs=pl.BlockSpec((TN, A), lambda i: (i, 0)),
        out_shape=jax.ShapeDtypeStruct((N, A), jnp.float32),
        compiler_params=cparams,
    )(summed, atom, scale2, shift2)
    return atom_out


def graphnet_forward(params, atom_fea, nbr_fea, nbr_fea_idx, sputter_fea, pool_mat,
                     block_rows=512, vmem_limit_bytes=None):
    # block_rows: conv row-block size; 512 for v5e/v6e, halve it on v7x.
    N, M = nbr_fea_idx.shape
    F_nbr = nbr_fea.shape[-1]
    F_orig = atom_fea.shape[-1]
    A = params["emb_w"].shape[1]
    TN = _pick_block_rows(N, block_rows)
    nb = N // TN
    if vmem_limit_bytes is None:
        vmem_limit_bytes = _default_vmem_limit()

    # Layer-invariant glue prepared once: neighbor-major bond features in bf16
    # (lane dim stays F_nbr) and transposed indices so the per-layer XLA gather
    # lands directly in (M, N, A) layout.
    nbr_t = jnp.transpose(nbr_fea, (1, 0, 2)).astype(jnp.bfloat16)   # (M, N, F_nbr)
    idx_t = jnp.transpose(nbr_fea_idx, (1, 0)).astype(jnp.int32)     # (M, N)

    cparams = pltpu.CompilerParams(
        dimension_semantics=("parallel",), vmem_limit_bytes=vmem_limit_bytes)

    # embedding Linear (tiled over row blocks, bf16 MXU / f32 accumulate)
    atom = pl.pallas_call(
        linear_kernel,
        grid=(nb,),
        in_specs=[pl.BlockSpec((TN, F_orig), lambda i: (i, 0)),
                  pl.BlockSpec((F_orig, A), lambda i: (0, 0)),
                  pl.BlockSpec((1, A), lambda i: (0, 0))],
        out_specs=pl.BlockSpec((TN, A), lambda i: (i, 0)),
        out_shape=jax.ShapeDtypeStruct((N, A), jnp.float32),
        compiler_params=cparams,
    )(atom_fea.astype(jnp.bfloat16), params["emb_w"].astype(jnp.bfloat16),
      params["emb_b"])

    # convolution layers
    for lp in params["convs"]:
        atom = _conv_layer(atom, nbr_t, idx_t, lp, N=N, M=M, A=A, F_nbr=F_nbr,
                           TN=TN, vmem_limit=vmem_limit_bytes)

    # pooling + MLP head (tiny, latency-bound; single f32 program)
    B = pool_mat.shape[0]
    out = pl.pallas_call(
        head_kernel,
        out_shape=jax.ShapeDtypeStruct((B, 1), jnp.float32),
    )(pool_mat, atom, sputter_fea,
      params["cfc_w"], params["cfc_b"],
      params["a1_wa"], params["a1_wb"], params["a1_b"],
      params["a2_w"], params["a2_b"],
      params["a3_w"], params["a3_b"],
      params["out_w"], params["out_b"])
    return out


if __name__ == "__main__":
    # small, forward-consistent shapes
    ORIG_FEA = 16     # orig_atom_fea_len
    NBR_FEA = 32      # nbr_fea_len
    SPUT_FEA = 17     # sputter_fea_len (128 + 17 = 145 for addlayer_1)
    ATOM_FEA = 64     # atom_fea_len
    H_FEA = 128       # h_fea_len
    N_CONV = 3
    N_ATOMS = 32      # total atoms
    M_NBRS = 8        # neighbors per atom
    N_CRYSTALS = 2    # crystals (16 atoms each)

    key = jax.random.PRNGKey(0)
    k_par, k_atom, k_nbr, k_idx, k_sput = jax.random.split(key, 5)

    params = init_params(k_par, ORIG_FEA, NBR_FEA, SPUT_FEA,
                         atom_fea_len=ATOM_FEA, n_conv=N_CONV, h_fea_len=H_FEA)

    atom_fea = jax.random.normal(k_atom, (N_ATOMS, ORIG_FEA), jnp.float32)
    nbr_fea = jax.random.normal(k_nbr, (N_ATOMS, M_NBRS, NBR_FEA), jnp.float32)
    nbr_fea_idx = jax.random.randint(k_idx, (N_ATOMS, M_NBRS), 0, N_ATOMS,
                                     dtype=jnp.int32)
    sputter_fea = jax.random.normal(k_sput, (N_CRYSTALS, SPUT_FEA), jnp.float32)

    # crystal_atom_idx (list of index arrays) -> dense mean-pooling matrix
    crystal_atom_idx = [jnp.arange(0, 16), jnp.arange(16, 32)]
    pool_mat = jnp.zeros((N_CRYSTALS, N_ATOMS), jnp.float32)
    for b, idx in enumerate(crystal_atom_idx):
        pool_mat = pool_mat.at[b, idx].set(1.0 / idx.shape[0])

    # block_rows=16 so the tiled conv grid has 2 row blocks (exercises the
    # cross-block BN partial-stat reduction and the parallel row-block path).
    fwd = jax.jit(functools.partial(graphnet_forward, block_rows=16))
    out = fwd(params, atom_fea, nbr_fea, nbr_fea_idx, sputter_fea, pool_mat)
    out = jax.block_until_ready(out)
    assert out.shape == (N_CRYSTALS, 1)
    assert bool(jnp.all(jnp.isfinite(out)))
    print("KERNEL_OK")
</pallas_src>

<mosaic_0001>
module attributes {stable_mosaic.version = 11 : i64} {
  func.func @linear_kernel(%arg0: i32, %arg1: memref<16x16xbf16, #tpu.memory_space<vmem>>, %arg2: memref<16x64xbf16, #tpu.memory_space<vmem>>, %arg3: memref<1x64xf32, #tpu.memory_space<vmem>>, %arg4: memref<16x64xf32, #tpu.memory_space<vmem>>) attributes {dimension_semantics = [#tpu.dimension_semantics<parallel>], iteration_bounds = array<i64: 2>, scalar_prefetch = 0 : i64, scratch_operands = 0 : i64, tpu.core_type = #tpu.core_type<tc>, window_params = [{transform_indices = @transform_0, window_bounds = array<i64: 16, 16>}, {pipeline_mode = #tpu.pipeline_mode<synchronous>, transform_indices = @transform_1, window_bounds = array<i64: 16, 64>}, {pipeline_mode = #tpu.pipeline_mode<synchronous>, transform_indices = @transform_2, window_bounds = array<i64: 1, 64>}, {transform_indices = @transform_3, window_bounds = array<i64: 16, 64>}]} {
    %c0 = arith.constant 0 : index
    %c0_0 = arith.constant 0 : index
    %0 = vector.load %arg1[%c0, %c0_0] : memref<16x16xbf16, #tpu.memory_space<vmem>>, vector<16x16xbf16>
    %c0_1 = arith.constant 0 : index
    %c0_2 = arith.constant 0 : index
    %1 = vector.load %arg2[%c0_1, %c0_2] : memref<16x64xbf16, #tpu.memory_space<vmem>>, vector<16x64xbf16>
    %cst = arith.constant dense<0.000000e+00> : vector<16x64xf32>
    %2 = tpu.matmul %0, %1, %cst {dimension_numbers = #tpu.dot_dimension_numbers<[1], [0], [0], [1], [0, 0, 1, 1], [], []>} : vector<16x16xbf16>, vector<16x64xbf16>, vector<16x64xf32> -> vector<16x64xf32>
    %c0_3 = arith.constant 0 : index
    %c0_4 = arith.constant 0 : index
    %3 = vector.load %arg3[%c0_3, %c0_4] : memref<1x64xf32, #tpu.memory_space<vmem>>, vector<1x64xf32>
    %4 = vector.broadcast %3 : vector<1x64xf32> to vector<16x64xf32>
    %5 = arith.addf %2, %4 : vector<16x64xf32>
    %c0_5 = arith.constant 0 : index
    %c0_6 = arith.constant 0 : index
    %6 = vector.load %arg4[%c0_5, %c0_6] : memref<16x64xf32, #tpu.memory_space<vmem>>, vector<16x64xf32>
    tpu.vector_store %arg4[%c0_5, %c0_6], %5 {strides = array<i32>} : memref<16x64xf32, #tpu.memory_space<vmem>>, vector<16x64xf32>,
    return
  }
  func.func @transform_0(%arg0: i32) -> (i32, i32) {
    %c0_i32 = arith.constant 0 : i32
    %c0_i32_0 = arith.constant 0 : i32
    return %arg0, %c0_i32 : i32, i32
  }
  func.func @transform_1(%arg0: i32) -> (i32, i32) {
    %c0_i32 = arith.constant 0 : i32
    %c0_i32_0 = arith.constant 0 : i32
    %c0_i32_1 = arith.constant 0 : i32
    return %c0_i32, %c0_i32_0 : i32, i32
  }
  func.func @transform_2(%arg0: i32) -> (i32, i32) {
    %c0_i32 = arith.constant 0 : i32
    %c0_i32_0 = arith.constant 0 : i32
    %c0_i32_1 = arith.constant 0 : i32
    return %c0_i32, %c0_i32_0 : i32, i32
  }
  func.func @transform_3(%arg0: i32) -> (i32, i32) {
    %c0_i32 = arith.constant 0 : i32
    %c0_i32_0 = arith.constant 0 : i32
    return %arg0, %c0_i32 : i32, i32
  }
}

module attributes {stable_mosaic.version = 11 : i64} {
  func.func @conv_gate_kernel(%arg0: i32, %arg1: memref<16x64xbf16, #tpu.memory_space<vmem>>, %arg2: memref<8x16x64xbf16, #tpu.memory_space<vmem>>, %arg3: memref<8x16x32xbf16, #tpu.memory_space<vmem>>, %arg4: memref<64x128xbf16, #tpu.memory_space<vmem>>, %arg5: memref<64x128xbf16, #tpu.memory_space<vmem>>, %arg6: memref<32x128xbf16, #tpu.memory_space<vmem>>, %arg7: memref<1x128xf32, #tpu.memory_space<vmem>>, %arg8: memref<8x16x128xbf16, #tpu.memory_space<vmem>>, %arg9: memref<1x1x128xf32, #tpu.memory_space<vmem>>, %arg10: memref<1x1x128xf32, #tpu.memory_space<vmem>>) attributes {dimension_semantics = [#tpu.dimension_semantics<parallel>], iteration_bounds = array<i64: 2>, scalar_prefetch = 0 : i64, scratch_operands = 0 : i64, tpu.core_type = #tpu.core_type<tc>, window_params = [{transform_indices = @transform_0, window_bounds = array<i64: 16, 64>}, {transform_indices = @transform_1, window_bounds = array<i64: 8, 16, 64>}, {transform_indices = @transform_2, window_bounds = array<i64: 8, 16, 32>}, {pipeline_mode = #tpu.pipeline_mode<synchronous>, transform_indices = @transform_3, window_bounds = array<i64: 64, 128>}, {pipeline_mode = #tpu.pipeline_mode<synchronous>, transform_indices = @transform_4, window_bounds = array<i64: 64, 128>}, {pipeline_mode = #tpu.pipeline_mode<synchronous>, transform_indices = @transform_5, window_bounds = array<i64: 32, 128>}, {pipeline_mode = #tpu.pipeline_mode<synchronous>, transform_indices = @transform_6, window_bounds = array<i64: 1, 128>}, {transform_indices = @transform_7, window_bounds = array<i64: 8, 16, 128>}, {transform_indices = @transform_8, window_bounds = array<i64: 1, 1, 128>}, {transform_indices = @transform_9, window_bounds = array<i64: 1, 1, 128>}]} {
    %c0 = arith.constant 0 : index
    %c0_0 = arith.constant 0 : index
    %0 = vector.load %arg1[%c0, %c0_0] : memref<16x64xbf16, #tpu.memory_space<vmem>>, vector<16x64xbf16>
    %c0_1 = arith.constant 0 : index
    %c0_2 = arith.constant 0 : index
    %1 = vector.load %arg4[%c0_1, %c0_2] : memref<64x128xbf16, #tpu.memory_space<vmem>>, vector<64x128xbf16>
    %cst = arith.constant dense<0.000000e+00> : vector<16x128xf32>
    %2 = tpu.matmul %0, %1, %cst {dimension_numbers = #tpu.dot_dimension_numbers<[1], [0], [0], [1], [0, 0, 1, 1], [], []>} : vector<16x64xbf16>, vector<64x128xbf16>, vector<16x128xf32> -> vector<16x128xf32>
    %c0_3 = arith.constant 0 : index
    %c0_4 = arith.constant 0 : index
    %3 = vector.load %arg7[%c0_3, %c0_4] : memref<1x128xf32, #tpu.memory_space<vmem>>, vector<1x128xf32>
    %4 = vector.broadcast %3 : vector<1x128xf32> to vector<16x128xf32>
    %5 = arith.addf %2, %4 : vector<16x128xf32>
    %c0_5 = arith.constant 0 : index
    %c0_6 = arith.constant 0 : index
    %c0_7 = arith.constant 0 : index
    %6 = vector.load %arg2[%c0_5, %c0_6, %c0_7] : memref<8x16x64xbf16, #tpu.memory_space<vmem>>, vector<8x16x64xbf16>
    %7 = vector.shape_cast %6 : vector<8x16x64xbf16> to vector<128x64xbf16>
    %c0_8 = arith.constant 0 : index
    %c0_9 = arith.constant 0 : index
    %c0_10 = arith.constant 0 : index
    %8 = vector.load %arg3[%c0_8, %c0_9, %c0_10] : memref<8x16x32xbf16, #tpu.memory_space<vmem>>, vector<8x16x32xbf16>
    %9 = vector.shape_cast %8 : vector<8x16x32xbf16> to vector<128x32xbf16>
    %c0_11 = arith.constant 0 : index
    %c0_12 = arith.constant 0 : index
    %10 = vector.load %arg5[%c0_11, %c0_12] : memref<64x128xbf16, #tpu.memory_space<vmem>>, vector<64x128xbf16>
    %cst_13 = arith.constant dense<0.000000e+00> : vector<128x128xf32>
    %11 = tpu.matmul %7, %10, %cst_13 {dimension_numbers = #tpu.dot_dimension_numbers<[1], [0], [0], [1], [0, 0, 1, 1], [], []>} : vector<128x64xbf16>, vector<64x128xbf16>, vector<128x128xf32> -> vector<128x128xf32>
    %c0_14 = arith.constant 0 : index
    %c0_15 = arith.constant 0 : index
    %12 = vector.load %arg6[%c0_14, %c0_15] : memref<32x128xbf16, #tpu.memory_space<vmem>>, vector<32x128xbf16>
    %cst_16 = arith.constant dense<0.000000e+00> : vector<128x128xf32>
    %13 = tpu.matmul %9, %12, %cst_16 {dimension_numbers = #tpu.dot_dimension_numbers<[1], [0], [0], [1], [0, 0, 1, 1], [], []>} : vector<128x32xbf16>, vector<32x128xbf16>, vector<128x128xf32> -> vector<128x128xf32>
    %14 = arith.addf %11, %13 : vector<128x128xf32>
    %15 = vector.shape_cast %14 : vector<128x128xf32> to vector<8x16x128xf32>
    %16 = vector.shape_cast %5 : vector<16x128xf32> to vector<1x16x128xf32>
    %17 = vector.broadcast %16 : vector<1x16x128xf32> to vector<8x16x128xf32>
    %18 = arith.addf %15, %17 : vector<8x16x128xf32>
    %19 = arith.truncf %18 : vector<8x16x128xf32> to vector<8x16x128xbf16>
    %c0_17 = arith.constant 0 : index
    %c0_18 = arith.constant 0 : index
    %c0_19 = arith.constant 0 : index
    %20 = vector.load %arg8[%c0_17, %c0_18, %c0_19] : memref<8x16x128xbf16, #tpu.memory_space<vmem>>, vector<8x16x128xbf16>
    tpu.vector_store %arg8[%c0_17, %c0_18, %c0_19], %19 {strides = array<i32>} : memref<8x16x128xbf16, #tpu.memory_space<vmem>>, vector<8x16x128xbf16>,
    %cst_20 = arith.constant dense<0.000000e+00> : vector<16x128xf32>
    %21 = vector.multi_reduction <add>, %18, %cst_20 [0] : vector<8x16x128xf32> to vector<16x128xf32>
    %22 = arith.mulf %18, %18 : vector<8x16x128xf32>
    %cst_21 = arith.constant dense<0.000000e+00> : vector<16x128xf32>
    %23 = vector.multi_reduction <add>, %22, %cst_21 [0] : vector<8x16x128xf32> to vector<16x128xf32>
    %cst_22 = arith.constant dense<0.000000e+00> : vector<128xf32>
    %24 = vector.multi_reduction <add>, %21, %cst_22 [0] : vector<16x128xf32> to vector<128xf32>
    %25 = vector.shape_cast %24 : vector<128xf32> to vector<1x128xf32>
    %26 = vector.shape_cast %25 : vector<1x128xf32> to vector<1x1x128xf32>
    %c0_23 = arith.constant 0 : index
    %c0_24 = arith.constant 0 : index
    %c0_25 = arith.constant 0 : index
    %27 = vector.load %arg9[%c0_23, %c0_24, %c0_25] : memref<1x1x128xf32, #tpu.memory_space<vmem>>, vector<1x1x128xf32>
    tpu.vector_store %arg9[%c0_23, %c0_24, %c0_25], %26 {strides = array<i32>} : memref<1x1x128xf32, #tpu.memory_space<vmem>>, vector<1x1x128xf32>,
    %cst_26 = arith.constant dense<0.000000e+00> : vector<128xf32>
    %28 = vector.multi_reduction <add>, %23, %cst_26 [0] : vector<16x128xf32> to vector<128xf32>
    %29 = vector.shape_cast %28 : vector<128xf32> to vector<1x128xf32>
    %30 = vector.shape_cast %29 : vector<1x128xf32> to vector<1x1x128xf32>
    %c0_27 = arith.constant 0 : index
    %c0_28 = arith.constant 0 : index
    %c0_29 = arith.constant 0 : index
    %31 = vector.load %arg10[%c0_27, %c0_28, %c0_29] : memref<1x1x128xf32, #tpu.memory_space<vmem>>, vector<1x1x128xf32>
    tpu.vector_store %arg10[%c0_27, %c0_28, %c0_29], %30 {strides = array<i32>} : memref<1x1x128xf32, #tpu.memory_space<vmem>>, vector<1x1x128xf32>,
    return
  }
  func.func @transform_0(%arg0: i32) -> (i32, i32) {
    %c0_i32 = arith.constant 0 : i32
    %c0_i32_0 = arith.constant 0 : i32
    return %arg0, %c0_i32 : i32, i32
  }
  func.func @transform_1(%arg0: i32) -> (i32, i32, i32) {
    %c0_i32 = arith.constant 0 : i32
    %c0_i32_0 = arith.constant 0 : i32
    %c0_i32_1 = arith.constant 0 : i32
    return %c0_i32, %arg0, %c0_i32_0 : i32, i32, i32
  }
  func.func @transform_2(%arg0: i32) -> (i32, i32, i32) {
    %c0_i32 = arith.constant 0 : i32
    %c0_i32_0 = arith.constant 0 : i32
    %c0_i32_1 = arith.constant 0 : i32
    return %c0_i32, %arg0, %c0_i32_0 : i32, i32, i32
  }
  func.func @transform_3(%arg0: i32) -> (i32, i32) {
    %c0_i32 = arith.constant 0 : i32
    %c0_i32_0 = arith.constant 0 : i32
    %c0_i32_1 = arith.constant 0 : i32
    return %c0_i32, %c0_i32_0 : i32, i32
  }
  func.func @transform_4(%arg0: i32) -> (i32, i32) {
    %c0_i32 = arith.constant 0 : i32
    %c0_i32_0 = arith.constant 0 : i32
    %c0_i32_1 = arith.constant 0 : i32
    return %c0_i32, %c0_i32_0 : i32, i32
  }
  func.func @transform_5(%arg0: i32) -> (i32, i32) {
    %c0_i32 = arith.constant 0 : i32
    %c0_i32_0 = arith.constant 0 : i32
    %c0_i32_1 = arith.constant 0 : i32
    return %c0_i32, %c0_i32_0 : i32, i32
  }
  func.func @transform_6(%arg0: i32) -> (i32, i32) {
    %c0_i32 = arith.constant 0 : i32
    %c0_i32_0 = arith.constant 0 : i32
    %c0_i32_1 = arith.constant 0 : i32
    return %c0_i32, %c0_i32_0 : i32, i32
  }
  func.func @transform_7(%arg0: i32) -> (i32, i32, i32) {
    %c0_i32 = arith.constant 0 : i32
    %c0_i32_0 = arith.constant 0 : i32
    %c0_i32_1 = arith.constant 0 : i32
    return %c0_i32, %arg0, %c0_i32_0 : i32, i32, i32
  }
  func.func @transform_8(%arg0: i32) -> (i32, i32, i32) {
    %c0_i32 = arith.constant 0 : i32
    %c0_i32_0 = arith.constant 0 : i32
    %c0_i32_1 = arith.constant 0 : i32
    return %arg0, %c0_i32, %c0_i32_0 : i32, i32, i32
  }
  func.func @transform_9(%arg0: i32) -> (i32, i32, i32) {
    %c0_i32 = arith.constant 0 : i32
    %c0_i32_0 = arith.constant 0 : i32
    %c0_i32_1 = arith.constant 0 : i32
    return %arg0, %c0_i32, %c0_i32_0 : i32, i32, i32
  }
}

module attributes {stable_mosaic.version = 11 : i64} {
  func.func @bn2_residual_kernel(%arg0: i32, %arg1: memref<16x64xf32, #tpu.memory_space<vmem>>, %arg2: memref<16x64xf32, #tpu.memory_space<vmem>>, %arg3: memref<1x64xf32, #tpu.memory_space<vmem>>, %arg4: memref<1x64xf32, #tpu.memory_space<vmem>>, %arg5: memref<16x64xf32, #tpu.memory_space<vmem>>) attributes {dimension_semantics = [#tpu.dimension_semantics<parallel>], iteration_bounds = array<i64: 2>, scalar_prefetch = 0 : i64, scratch_operands = 0 : i64, tpu.core_type = #tpu.core_type<tc>, window_params = [{transform_indices = @transform_0, window_bounds = array<i64: 16, 64>}, {transform_indices = @transform_1, window_bounds = array<i64: 16, 64>}, {pipeline_mode = #tpu.pipeline_mode<synchronous>, transform_indices = @transform_2, window_bounds = array<i64: 1, 64>}, {pipeline_mode = #tpu.pipeline_mode<synchronous>, transform_indices = @transform_3, window_bounds = array<i64: 1, 64>}, {transform_indices = @transform_4, window_bounds = array<i64: 16, 64>}]} {
    %c0 = arith.constant 0 : index
    %c0_0 = arith.constant 0 : index
    %0 = vector.load %arg2[%c0, %c0_0] : memref<16x64xf32, #tpu.memory_space<vmem>>, vector<16x64xf32>
    %c0_1 = arith.constant 0 : index
    %c0_2 = arith.constant 0 : index
    %1 = vector.load %arg1[%c0_1, %c0_2] : memref<16x64xf32, #tpu.memory_space<vmem>>, vector<16x64xf32>
    %c0_3 = arith.constant 0 : index
    %c0_4 = arith.constant 0 : index
    %2 = vector.load %arg3[%c0_3, %c0_4] : memref<1x64xf32, #tpu.memory_space<vmem>>, vector<1x64xf32>
    %3 = vector.broadcast %2 : vector<1x64xf32> to vector<16x64xf32>
    %4 = arith.mulf %1, %3 : vector<16x64xf32>
    %5 = arith.addf %0, %4 : vector<16x64xf32>
    %c0_5 = arith.constant 0 : index
    %c0_6 = arith.constant 0 : index
    %6 = vector.load %arg4[%c0_5, %c0_6] : memref<1x64xf32, #tpu.memory_space<vmem>>, vector<1x64xf32>
    %7 = vector.broadcast %6 : vector<1x64xf32> to vector<16x64xf32>
    %8 = arith.addf %5, %7 : vector<16x64xf32>
    %cst = arith.constant 2.000000e+01 : f32
    %9 = vector.broadcast %cst : f32 to vector<16x64xf32>
    %10 = arith.cmpf ogt, %8, %9 : vector<16x64xf32>
    %cst_7 = arith.constant 2.000000e+01 : f32
    %11 = vector.broadcast %cst_7 : f32 to vector<16x64xf32>
    %12 = arith.minimumf %8, %11 : vector<16x64xf32>
    %13 = math.exp %12 : vector<16x64xf32>
    %14 = math.log1p %13 : vector<16x64xf32>
    %15 = arith.select %10, %8, %14 : vector<16x64xi1>, vector<16x64xf32>
    %c0_8 = arith.constant 0 : index
    %c0_9 = arith.constant 0 : index
    %16 = vector.load %arg5[%c0_8, %c0_9] : memref<16x64xf32, #tpu.memory_space<vmem>>, vector<16x64xf32>
    tpu.vector_store %arg5[%c0_8, %c0_9], %15 {strides = array<i32>} : memref<16x64xf32, #tpu.memory_space<vmem>>, vector<16x64xf32>,
    return
  }
  func.func @transform_0(%arg0: i32) -> (i32, i32) {
    %c0_i32 = arith.constant 0 : i32
    %c0_i32_0 = arith.constant 0 : i32
    return %arg0, %c0_i32 : i32, i32
  }
  func.func @transform_1(%arg0: i32) -> (i32, i32) {
    %c0_i32 = arith.constant 0 : i32
    %c0_i32_0 = arith.constant 0 : i32
    return %arg0, %c0_i32 : i32, i32
  }
  func.func @transform_2(%arg0: i32) -> (i32, i32) {
    %c0_i32 = arith.constant 0 : i32
    %c0_i32_0 = arith.constant 0 : i32
    %c0_i32_1 = arith.constant 0 : i32
    return %c0_i32, %c0_i32_0 : i32, i32
  }
  func.func @transform_3(%arg0: i32) -> (i32, i32) {
    %c0_i32 = arith.constant 0 : i32
    %c0_i32_0 = arith.constant 0 : i32
    %c0_i32_1 = arith.constant 0 : i32
    return %c0_i32, %c0_i32_0 : i32, i32
  }
  func.func @transform_4(%arg0: i32) -> (i32, i32) {
    %c0_i32 = arith.constant 0 : i32
    %c0_i32_0 = arith.constant 0 : i32
    return %arg0, %c0_i32 : i32, i32
  }
}

module attributes {stable_mosaic.version = 11 : i64} {
  func.func @conv_apply_kernel(%arg0: i32, %arg1: memref<8x16x128xbf16, #tpu.memory_space<vmem>>, %arg2: memref<1x128xf32, #tpu.memory_space<vmem>>, %arg3: memref<1x128xf32, #tpu.memory_space<vmem>>, %arg4: memref<16x64xf32, #tpu.memory_space<vmem>>, %arg5: memref<1x1x64xf32, #tpu.memory_space<vmem>>, %arg6: memref<1x1x64xf32, #tpu.memory_space<vmem>>) attributes {dimension_semantics = [#tpu.dimension_semantics<parallel>], iteration_bounds = array<i64: 2>, scalar_prefetch = 0 : i64, scratch_operands = 0 : i64, tpu.core_type = #tpu.core_type<tc>, window_params = [{transform_indices = @transform_0, window_bounds = array<i64: 8, 16, 128>}, {pipeline_mode = #tpu.pipeline_mode<synchronous>, transform_indices = @transform_1, window_bounds = array<i64: 1, 128>}, {pipeline_mode = #tpu.pipeline_mode<synchronous>, transform_indices = @transform_2, window_bounds = array<i64: 1, 128>}, {transform_indices = @transform_3, window_bounds = array<i64: 16, 64>}, {transform_indices = @transform_4, window_bounds = array<i64: 1, 1, 64>}, {transform_indices = @transform_5, window_bounds = array<i64: 1, 1, 64>}]} {
    %c0 = arith.constant 0 : index
    %c0_0 = arith.constant 0 : index
    %0 = vector.load %arg2[%c0, %c0_0] : memref<1x128xf32, #tpu.memory_space<vmem>>, vector<1x128xf32>
    %1 = vector.shape_cast %0 : vector<1x128xf32> to vector<1x1x128xf32>
    %c0_1 = arith.constant 0 : index
    %c0_2 = arith.constant 0 : index
    %2 = vector.load %arg3[%c0_1, %c0_2] : memref<1x128xf32, #tpu.memory_space<vmem>>, vector<1x128xf32>
    %3 = vector.shape_cast %2 : vector<1x128xf32> to vector<1x1x128xf32>
    %c0_3 = arith.constant 0 : index
    %c0_4 = arith.constant 0 : index
    %c0_5 = arith.constant 0 : index
    %4 = vector.load %arg1[%c0_3, %c0_4, %c0_5] : memref<8x16x128xbf16, #tpu.memory_space<vmem>>, vector<8x16x128xbf16>
    %5 = arith.extf %4 : vector<8x16x128xbf16> to vector<8x16x128xf32>
    %6 = vector.broadcast %1 : vector<1x1x128xf32> to vector<8x16x128xf32>
    %7 = arith.mulf %5, %6 : vector<8x16x128xf32>
    %8 = vector.broadcast %3 : vector<1x1x128xf32> to vector<8x16x128xf32>
    %9 = arith.addf %7, %8 : vector<8x16x128xf32>
    %10 = vector.extract_strided_slice %9 {offsets = [0, 0, 0], sizes = [8, 16, 64], strides = [1, 1, 1]} : vector<8x16x128xf32> to vector<8x16x64xf32>
    %11 = arith.negf %10 : vector<8x16x64xf32>
    %12 = math.exp %11 : vector<8x16x64xf32>
    %cst = arith.constant 1.000000e+00 : f32
    %13 = vector.broadcast %cst : f32 to vector<8x16x64xf32>
    %14 = arith.addf %13, %12 : vector<8x16x64xf32>
    %15 = arith.divf %13, %14 : vector<8x16x64xf32>
    %16 = vector.extract_strided_slice %9 {offsets = [0, 0, 64], sizes = [8, 16, 64], strides = [1, 1, 1]} : vector<8x16x128xf32> to vector<8x16x64xf32>
    %cst_6 = arith.constant 2.000000e+01 : f32
    %17 = vector.broadcast %cst_6 : f32 to vector<8x16x64xf32>
    %18 = arith.cmpf ogt, %16, %17 : vector<8x16x64xf32>
    %cst_7 = arith.constant 2.000000e+01 : f32
    %19 = vector.broadcast %cst_7 : f32 to vector<8x16x64xf32>
    %20 = arith.minimumf %16, %19 : vector<8x16x64xf32>
    %21 = math.exp %20 : vector<8x16x64xf32>
    %22 = math.log1p %21 : vector<8x16x64xf32>
    %23 = arith.select %18, %16, %22 : vector<8x16x64xi1>, vector<8x16x64xf32>
    %24 = arith.mulf %15, %23 : vector<8x16x64xf32>
    %cst_8 = arith.constant dense<0.000000e+00> : vector<16x64xf32>
    %25 = vector.multi_reduction <add>, %24, %cst_8 [0] : vector<8x16x64xf32> to vector<16x64xf32>
    %c0_9 = arith.constant 0 : index
    %c0_10 = arith.constant 0 : index
    %26 = vector.load %arg4[%c0_9, %c0_10] : memref<16x64xf32, #tpu.memory_space<vmem>>, vector<16x64xf32>
    tpu.vector_store %arg4[%c0_9, %c0_10], %25 {strides = array<i32>} : memref<16x64xf32, #tpu.memory_space<vmem>>, vector<16x64xf32>,
    %cst_11 = arith.constant dense<0.000000e+00> : vector<64xf32>
    %27 = vector.multi_reduction <add>, %25, %cst_11 [0] : vector<16x64xf32> to vector<64xf32>
    %28 = vector.shape_cast %27 : vector<64xf32> to vector<1x64xf32>
    %29 = vector.shape_cast %28 : vector<1x64xf32> to vector<1x1x64xf32>
    %c0_12 = arith.constant 0 : index
    %c0_13 = arith.constant 0 : index
    %c0_14 = arith.constant 0 : index
    %30 = vector.load %arg5[%c0_12, %c0_13, %c0_14] : memref<1x1x64xf32, #tpu.memory_space<vmem>>, vector<1x1x64xf32>
    tpu.vector_store %arg5[%c0_12, %c0_13, %c0_14], %29 {strides = array<i32>} : memref<1x1x64xf32, #tpu.memory_space<vmem>>, vector<1x1x64xf32>,
    %31 = arith.mulf %25, %25 : vector<16x64xf32>
    %cst_15 = arith.constant dense<0.000000e+00> : vector<64xf32>
    %32 = vector.multi_reduction <add>, %31, %cst_15 [0] : vector<16x64xf32> to vector<64xf32>
    %33 = vector.shape_cast %32 : vector<64xf32> to vector<1x64xf32>
    %34 = vector.shape_cast %33 : vector<1x64xf32> to vector<1x1x64xf32>
    %c0_16 = arith.constant 0 : index
    %c0_17 = arith.constant 0 : index
    %c0_18 = arith.constant 0 : index
    %35 = vector.load %arg6[%c0_16, %c0_17, %c0_18] : memref<1x1x64xf32, #tpu.memory_space<vmem>>, vector<1x1x64xf32>
    tpu.vector_store %arg6[%c0_16, %c0_17, %c0_18], %34 {strides = array<i32>} : memref<1x1x64xf32, #tpu.memory_space<vmem>>, vector<1x1x64xf32>,
    return
  }
  func.func @transform_0(%arg0: i32) -> (i32, i32, i32) {
    %c0_i32 = arith.constant 0 : i32
    %c0_i32_0 = arith.constant 0 : i32
    %c0_i32_1 = arith.constant 0 : i32
    return %c0_i32, %arg0, %c0_i32_0 : i32, i32, i32
  }
  func.func @transform_1(%arg0: i32) -> (i32, i32) {
    %c0_i32 = arith.constant 0 : i32
    %c0_i32_0 = arith.constant 0 : i32
    %c0_i32_1 = arith.constant 0 : i32
    return %c0_i32, %c0_i32_0 : i32, i32
  }
  func.func @transform_2(%arg0: i32) -> (i32, i32) {
    %c0_i32 = arith.constant 0 : i32
    %c0_i32_0 = arith.constant 0 : i32
    %c0_i32_1 = arith.constant 0 : i32
    return %c0_i32, %c0_i32_0 : i32, i32
  }
  func.func @transform_3(%arg0: i32) -> (i32, i32) {
    %c0_i32 = arith.constant 0 : i32
    %c0_i32_0 = arith.constant 0 : i32
    return %arg0, %c0_i32 : i32, i32
  }
  func.func @transform_4(%arg0: i32) -> (i32, i32, i32) {
    %c0_i32 = arith.constant 0 : i32
    %c0_i32_0 = arith.constant 0 : i32
    %c0_i32_1 = arith.constant 0 : i32
    return %arg0, %c0_i32, %c0_i32_0 : i32, i32, i32
  }
  func.func @transform_5(%arg0: i32) -> (i32, i32, i32) {
    %c0_i32 = arith.constant 0 : i32
    %c0_i32_0 = arith.constant 0 : i32
    %c0_i32_1 = arith.constant 0 : i32
    return %arg0, %c0_i32, %c0_i32_0 : i32, i32, i32
  }
}

module attributes {stable_mosaic.version = 11 : i64} {
  func.func @head_kernel(%arg0: memref<2x32xf32, #tpu.memory_space<vmem>>, %arg1: memref<32x64xf32, #tpu.memory_space<vmem>>, %arg2: memref<2x17xf32, #tpu.memory_space<vmem>>, %arg3: memref<64x128xf32, #tpu.memory_space<vmem>>, %arg4: memref<1x128xf32, #tpu.memory_space<vmem>>, %arg5: memref<128x200xf32, #tpu.memory_space<vmem>>, %arg6: memref<17x200xf32, #tpu.memory_space<vmem>>, %arg7: memref<1x200xf32, #tpu.memory_space<vmem>>, %arg8: memref<200x400xf32, #tpu.memory_space<vmem>>, %arg9: memref<1x400xf32, #tpu.memory_space<vmem>>, %arg10: memref<400x800xf32, #tpu.memory_space<vmem>>, %arg11: memref<1x800xf32, #tpu.memory_space<vmem>>, %arg12: memref<800x1xf32, #tpu.memory_space<vmem>>, %arg13: memref<1x1xf32, #tpu.memory_space<vmem>>, %arg14: memref<2x1xf32, #tpu.memory_space<vmem>>) attributes {dimension_semantics = [], scalar_prefetch = 0 : i64, scratch_operands = 0 : i64, tpu.core_type = #tpu.core_type<tc>} {
    %c0 = arith.constant 0 : index
    %c0_0 = arith.constant 0 : index
    %0 = vector.load %arg0[%c0, %c0_0] : memref<2x32xf32, #tpu.memory_space<vmem>>, vector<2x32xf32>
    %c0_1 = arith.constant 0 : index
    %c0_2 = arith.constant 0 : index
    %1 = vector.load %arg1[%c0_1, %c0_2] : memref<32x64xf32, #tpu.memory_space<vmem>>, vector<32x64xf32>
    %cst = arith.constant dense<0.000000e+00> : vector<2x64xf32>
    %2 = tpu.matmul %0, %1, %cst {dimension_numbers = #tpu.dot_dimension_numbers<[1], [0], [0], [1], [0, 0, 1, 1], [], []>} : vector<2x32xf32>, vector<32x64xf32>, vector<2x64xf32> -> vector<2x64xf32>
    %cst_3 = arith.constant 2.000000e+01 : f32
    %3 = vector.broadcast %cst_3 : f32 to vector<2x64xf32>
    %4 = arith.cmpf ogt, %2, %3 : vector<2x64xf32>
    %cst_4 = arith.constant 2.000000e+01 : f32
    %5 = vector.broadcast %cst_4 : f32 to vector<2x64xf32>
    %6 = arith.minimumf %2, %5 : vector<2x64xf32>
    %7 = math.exp %6 : vector<2x64xf32>
    %8 = math.log1p %7 : vector<2x64xf32>
    %9 = arith.select %4, %2, %8 : vector<2x64xi1>, vector<2x64xf32>
    %c0_5 = arith.constant 0 : index
    %c0_6 = arith.constant 0 : index
    %10 = vector.load %arg3[%c0_5, %c0_6] : memref<64x128xf32, #tpu.memory_space<vmem>>, vector<64x128xf32>
    %cst_7 = arith.constant dense<0.000000e+00> : vector<2x128xf32>
    %11 = tpu.matmul %9, %10, %cst_7 {dimension_numbers = #tpu.dot_dimension_numbers<[1], [0], [0], [1], [0, 0, 1, 1], [], []>} : vector<2x64xf32>, vector<64x128xf32>, vector<2x128xf32> -> vector<2x128xf32>
    %c0_8 = arith.constant 0 : index
    %c0_9 = arith.constant 0 : index
    %12 = vector.load %arg4[%c0_8, %c0_9] : memref<1x128xf32, #tpu.memory_space<vmem>>, vector<1x128xf32>
    %13 = vector.broadcast %12 : vector<1x128xf32> to vector<2x128xf32>
    %14 = arith.addf %11, %13 : vector<2x128xf32>
    %cst_10 = arith.constant 2.000000e+01 : f32
    %15 = vector.broadcast %cst_10 : f32 to vector<2x128xf32>
    %16 = arith.cmpf ogt, %14, %15 : vector<2x128xf32>
    %cst_11 = arith.constant 2.000000e+01 : f32
    %17 = vector.broadcast %cst_11 : f32 to vector<2x128xf32>
    %18 = arith.minimumf %14, %17 : vector<2x128xf32>
    %19 = math.exp %18 : vector<2x128xf32>
    %20 = math.log1p %19 : vector<2x128xf32>
    %21 = arith.select %16, %14, %20 : vector<2x128xi1>, vector<2x128xf32>
    %c0_12 = arith.constant 0 : index
    %c0_13 = arith.constant 0 : index
    %22 = vector.load %arg5[%c0_12, %c0_13] : memref<128x200xf32, #tpu.memory_space<vmem>>, vector<128x200xf32>
    %cst_14 = arith.constant dense<0.000000e+00> : vector<2x200xf32>
    %23 = tpu.matmul %21, %22, %cst_14 {dimension_numbers = #tpu.dot_dimension_numbers<[1], [0], [0], [1], [0, 0, 1, 1], [], []>} : vector<2x128xf32>, vector<128x200xf32>, vector<2x200xf32> -> vector<2x200xf32>
    %c0_15 = arith.constant 0 : index
    %c0_16 = arith.constant 0 : index
    %24 = vector.load %arg2[%c0_15, %c0_16] : memref<2x17xf32, #tpu.memory_space<vmem>>, vector<2x17xf32>
    %c0_17 = arith.constant 0 : index
    %c0_18 = arith.constant 0 : index
    %25 = vector.load %arg6[%c0_17, %c0_18] : memref<17x200xf32, #tpu.memory_space<vmem>>, vector<17x200xf32>
    %cst_19 = arith.constant dense<0.000000e+00> : vector<2x200xf32>
    %26 = tpu.matmul %24, %25, %cst_19 {dimension_numbers = #tpu.dot_dimension_numbers<[1], [0], [0], [1], [0, 0, 1, 1], [], []>} : vector<2x17xf32>, vector<17x200xf32>, vector<2x200xf32> -> vector<2x200xf32>
    %27 = arith.addf %23, %26 : vector<2x200xf32>
    %c0_20 = arith.constant 0 : index
    %c0_21 = arith.constant 0 : index
    %28 = vector.load %arg7[%c0_20, %c0_21] : memref<1x200xf32, #tpu.memory_space<vmem>>, vector<1x200xf32>
    %29 = vector.broadcast %28 : vector<1x200xf32> to vector<2x200xf32>
    %30 = arith.addf %27, %29 : vector<2x200xf32>
    %cst_22 = arith.constant 0.000000e+00 : f32
    %31 = vector.broadcast %cst_22 : f32 to vector<2x200xf32>
    %32 = arith.maximumf %30, %31 : vector<2x200xf32>
    %c0_23 = arith.constant 0 : index
    %c0_24 = arith.constant 0 : index
    %33 = vector.load %arg8[%c0_23, %c0_24] : memref<200x400xf32, #tpu.memory_space<vmem>>, vector<200x400xf32>
    %cst_25 = arith.constant dense<0.000000e+00> : vector<2x400xf32>
    %34 = tpu.matmul %32, %33, %cst_25 {dimension_numbers = #tpu.dot_dimension_numbers<[1], [0], [0], [1], [0, 0, 1, 1], [], []>} : vector<2x200xf32>, vector<200x400xf32>, vector<2x400xf32> -> vector<2x400xf32>
    %c0_26 = arith.constant 0 : index
    %c0_27 = arith.constant 0 : index
    %35 = vector.load %arg9[%c0_26, %c0_27] : memref<1x400xf32, #tpu.memory_space<vmem>>, vector<1x400xf32>
    %36 = vector.broadcast %35 : vector<1x400xf32> to vector<2x400xf32>
    %37 = arith.addf %34, %36 : vector<2x400xf32>
    %cst_28 = arith.constant 0.000000e+00 : f32
    %38 = vector.broadcast %cst_28 : f32 to vector<2x400xf32>
    %39 = arith.maximumf %37, %38 : vector<2x400xf32>
    %c0_29 = arith.constant 0 : index
    %c0_30 = arith.constant 0 : index
    %40 = vector.load %arg10[%c0_29, %c0_30] : memref<400x800xf32, #tpu.memory_space<vmem>>, vector<400x800xf32>
    %cst_31 = arith.constant dense<0.000000e+00> : vector<2x800xf32>
    %41 = tpu.matmul %39, %40, %cst_31 {dimension_numbers = #tpu.dot_dimension_numbers<[1], [0], [0], [1], [0, 0, 1, 1], [], []>} : vector<2x400xf32>, vector<400x800xf32>, vector<2x800xf32> -> vector<2x800xf32>
    %c0_32 = arith.constant 0 : index
    %c0_33 = arith.constant 0 : index
    %42 = vector.load %arg11[%c0_32, %c0_33] : memref<1x800xf32, #tpu.memory_space<vmem>>, vector<1x800xf32>
    %43 = vector.broadcast %42 : vector<1x800xf32> to vector<2x800xf32>
    %44 = arith.addf %41, %43 : vector<2x800xf32>
    %cst_34 = arith.constant 0.000000e+00 : f32
    %45 = vector.broadcast %cst_34 : f32 to vector<2x800xf32>
    %46 = arith.maximumf %44, %45 : vector<2x800xf32>
    %c0_35 = arith.constant 0 : index
    %c0_36 = arith.constant 0 : index
    %47 = vector.load %arg12[%c0_35, %c0_36] : memref<800x1xf32, #tpu.memory_space<vmem>>, vector<800x1xf32>
    %cst_37 = arith.constant dense<0.000000e+00> : vector<2x1xf32>
    %48 = tpu.matmul %46, %47, %cst_37 {dimension_numbers = #tpu.dot_dimension_numbers<[1], [0], [0], [1], [0, 0, 1, 1], [], []>} : vector<2x800xf32>, vector<800x1xf32>, vector<2x1xf32> -> vector<2x1xf32>
    %c0_38 = arith.constant 0 : index
    %c0_39 = arith.constant 0 : index
    %49 = vector.load %arg13[%c0_38, %c0_39] : memref<1x1xf32, #tpu.memory_space<vmem>>, vector<1x1xf32>
    %50 = vector.broadcast %49 : vector<1x1xf32> to vector<2x1xf32>
    %51 = arith.addf %48, %50 : vector<2x1xf32>
    %c0_40 = arith.constant 0 : index
    %c0_41 = arith.constant 0 : index
    %52 = vector.load %arg14[%c0_40, %c0_41] : memref<2x1xf32, #tpu.memory_space<vmem>>, vector<2x1xf32>
    tpu.vector_store %arg14[%c0_40, %c0_41], %51 {strides = array<i32>} : memref<2x1xf32, #tpu.memory_space<vmem>>, vector<2x1xf32>,
    return
  }
}

</mosaic_0001>

<bundles_post_ra>
// kernel: graphnet_forward.11
= control target key start
LH: loop header
LB: loop body
LE: loop exit
PB: predicated region body
PF: predicated region fallthrough
CT: control target
= control target key end

     0   :  { %8 = vsyncpa [#allocation3], 0  ;;  %s405_s12 = smov 0   ;;  %s428_s0 = inlined_call_operand.vmem [shape: bf16[32,16], index: 0, kind: input, shape index: {}]   ;;  %s429_s1 = inlined_call_operand.vmem [shape: bf16[16,64], index: 1, kind: input, shape index: {}]   ;;  %s430_s2 = inlined_call_operand.hbm [shape: f32[1,64], index: 2, kind: input, shape index: {}]   ;;  %s431_s3 = inlined_call_operand.vmem [shape: f32[32,64], index: 3, kind: output, shape index: {}]  }
   0x1 LB: > { %s298_s13 = sadd.s32 4294967295, %s382_s12   ;;  %p300_p0 = scmp.ge.s32.totalorder %s382_s12, 1  ;;  %s382_s12 = sphi %s405_s12, %s14_s12  }
   0x2   : > { %p113_p1 = scmp.lt.s32.totalorder %s382_s12, 3  ;;  %s128_s16 = sshll.u32 %s430_s2, 4  ;;  %s129_s16 = int_to_ptr.hbm [resolvable:$true] %s128_s16 }
   0x3   : > { %p330_p3 = scmp.eq.s32.totalorder %s298_s13, 0  ;;  %s384_s17 = smov [#allocation2]  }
   0x4   : > { %p114_p2 = pnand %p300_p0, %p113_p1  ;;  %s130_s18 = sshll.u32 %s384_s17, 4  ;;  %s131_s18 = int_to_ptr.vmem [resolvable:$true] %s130_s18 }
   0x6   : > { %p326_p4 = pneg %p114_p2  ;;  %152 = sbr.rel (%p114_p2) target bundleno = 156 (0x9c), region = 32 }
   0x8   : > { %p327_p5 = pnand %p330_p3, %p326_p4 }
   0xa   : > { %329 = dma.hbm_to_vmem [thread:$0]  (!%p327_p5), %s129_s16, 16, %s131_s18, [#allocation3]  }
   0xb   : > { %377 = dma.done.wait (%p330_p3), [#allocation3], 16  }
   0xc   : > { %379 = vsyncadd (%p330_p3), [#allocation3], 4294967280  ;;  %s305_s19 = sshll.u32 %s298_s13, 1  ;;  %v321_v0 = vld [vmem:[%s429_s1] sm:$0xff]  ;;  %vm209_vm0 = vcmask 130048   ;;  %vm227_vm1 = vcmask 523264  }
   0xd   : > { %p178_p6 = scmp.lt.s32.totalorder %s305_s19, 3  ;;  %220 = vmatpush.bf16.msra.mxu0 %v321_v0  ;;  %v341_v2 = vld [vmem:[#allocation2] ss:$0 sm:$0xff] }
   0xf   : > { %s433_s19 = smov (!%p178_p6, %s305_s19), 3 }
  0x10   : > { %s306_s20 = sshll.u32 %s433_s19, 2  ;;  %s308_s26 = sshll.u32 %s433_s19, 3 }
  0x11   : > { %s181_s23 = scalar_lea.vmem %s428_s0, %s306_s20  ;;  %s187_s29 = scalar_lea.vmem %s431_s3, %s308_s26 }
  0x12   : > { %v320_v1 = vld [vmem:[%s181_s23] sm:$0xff] }
  0x13   : > { %317 = vmatmul.msk.bf16.vlgmr.msra.gmra.mxu0 %vm209_vm0, %v320_v1 }
  0x90   : > { %v222_v3 = vpop.f32.mrf.mxu0 }
  0x91   : > { %v223_v4 = vadd.f32 %v341_v2, %v222_v3 }
  0x93   : > { %228 = vst.msk [vmem:[%s187_s29] sm:$0xff] %vm227_vm1, %v223_v4 }
  0x98   : > { %v224_v5 = vpop.f32.mrf.mxu0 }
  0x99   : > { %v225_v6 = vadd.f32 %v341_v2, %v224_v5 }
  0x9b   : > { %229 = vst.msk [vmem:[%s187_s29 + $0x8] sm:$0xff] %vm227_vm1, %v225_v6 }
  0x9c PF: > { %s14_s12 = sadd.s32 1, %s382_s12  }
  0x9d   : > { %p11_p7 = scmp.ge.s32.totalorder %s14_s12, 4  }
  0x9f   :  { %13 = sbr.rel (!%p11_p7) target bundleno = 1 (0x1), region = 67 }
  0xa4   :  { %252 = vsyncpa [#allocation3], 1 }
  0xa5   :  { %254 = vsyncpa [#allocation3 + $0x1], 1 }

// kernel: graphnet_forward.14
= control target key start
LH: loop header
LB: loop body
LE: loop exit
PB: predicated region body
PF: predicated region fallthrough
CT: control target
= control target key end

     0   :  { %s404_s15 = smov 0   ;;  %s435_s0 = inlined_call_operand.vmem [shape: f32[32,64], index: 0, kind: input, shape index: {}]   ;;  %s436_s1 = inlined_call_operand.vmem [shape: f32[32,64], index: 1, kind: input, shape index: {}]   ;;  %s437_s2 = inlined_call_operand.vmem [shape: f32[1,64], index: 2, kind: input, shape index: {}]   ;;  %s438_s3 = inlined_call_operand.vmem [shape: f32[1,64], index: 3, kind: input, shape index: {}]   ;;  %s439_s4 = inlined_call_operand.vmem [shape: f32[32,64], index: 4, kind: output, shape index: {}]  }
   0x1 LB: > { %s340_s16 = sadd.s32 4294967295, %s377_s15   ;;  %p344_p0 = scmp.ge.s32.totalorder %s377_s15, 1  ;;  %s377_s15 = sphi %s404_s15, %s14_s15  }
   0x2   : > { %p174_p1 = scmp.lt.s32.totalorder %s377_s15, 3 }
   0x4   : > { %p175_p2 = pnand %p344_p0, %p174_p1 }
   0x5   : > { %s345_s17 = sshll.u32 (!%p175_p2), %s340_s16, 1 }
   0x6   : > { %178 = sbr.rel (%p175_p2) target bundleno = 48 (0x30), region = 36  ;;  %p206_p3 = scmp.lt.s32.totalorder (!%p175_p2), %s345_s17, 3 }
   0xb   : > { %s441_s17 = smov (!%p206_p3, %s345_s17), 3  ;;  %v361_v0 = vld [vmem:[%s437_s2] ss:$0 sm:$0xff]  ;;  %vm269_vm3 = vcmask 523264  }
   0xc   : > { %s415_s20 = sshll.u32 %s441_s17, 3  ;;  %v362_v6 = vld [vmem:[%s438_s3] ss:$0 sm:$0xff] }
   0xd   : > { %s209_s23 = scalar_lea.vmem %s435_s0, %s415_s20  ;;  %s215_s26 = scalar_lea.vmem %s436_s1, %s415_s20 }
   0xe   : > { %v223_v1 = vld [vmem:[%s215_s26] sm:$0xff]  ;;  %v224_v3 = vld [vmem:[%s215_s26 + $0x8] sm:$0xff]  ;;  %s221_s5 = scalar_lea.vmem %s439_s4, %s415_s20 }
   0xf   : > { %v225_v2 = vld [vmem:[%s209_s23] sm:$0xff]  ;;  %v226_v4 = vld [vmem:[%s209_s23 + $0x8] sm:$0xff] }
  0x10   : > { %v231_v5 = vmul.f32 %v361_v0, %v225_v2  ;;  %v232_v7 = vmul.f32 %v361_v0, %v226_v4 }
  0x12   : > { %v233_v8 = vadd.f32 %v231_v5, %v223_v1  ;;  %v234_v9 = vadd.f32 %v232_v7, %v224_v3 }
  0x14   : > { %v239_v10 = vadd.f32 %v362_v6, %v233_v8  ;;  %v240_v11 = vadd.f32 %v362_v6, %v234_v9 }
  0x16   : > { %v243_v12 = vmin.f32 %v239_v10, 20.0  ;;  %v244_v13 = vmin.f32 %v240_v11, 20.0  ;;  %vm241_vm1 = vcmp.gt.f32.partialorder %v239_v10, 20.0  ;;  %vm242_vm4 = vcmp.gt.f32.partialorder %v240_v11, 20.0 }
  0x18   : > { %v245_v14 = vmul.f32 1.442695, %v243_v12  ;;  %v247_v15 = vmul.f32 1.442695, %v244_v13 }
  0x1a   : > { %363 = vpow2.f32 %v245_v14 }
  0x1b   : > { %365 = vpow2.f32 %v247_v15 }
  0x20   : > { %v364_v16 = vpop.eup %363 }
  0x21   : > { %v366_v17 = vpop.eup %365  ;;  %v249_v18 = vadd.f32 1.0, %v364_v16  ;;  %v252_v19 = vmul.f32 -0.5, %v364_v16  ;;  %v255_v23 = vand.u32 2147483647, %v364_v16 }
  0x22   : > { %v258_v20 = vadd.f32 1.0, %v366_v17  ;;  %v261_v21 = vmul.f32 -0.5, %v366_v17  ;;  %v264_v25 = vand.u32 2147483647, %v366_v17 }
  0x23   : > { %367 = vlog2.f32 %v249_v18  ;;  %v253_v22 = vadd.f32 1.0, %v252_v19  ;;  %vm256_vm0 = vcmp.lt.f32.partialorder %v255_v23, 0.0004427343 }
  0x24   : > { %369 = vlog2.f32 %v258_v20  ;;  %v262_v24 = vadd.f32 1.0, %v261_v21  ;;  %vm265_vm2 = vcmp.lt.f32.partialorder %v264_v25, 0.0004427343 }
  0x25   : > { %v254_v26 = vmul.f32 %v364_v16, %v253_v22 }
  0x26   : > { %v263_v28 = vmul.f32 %v366_v17, %v262_v24 }
  0x29   : > { %v368_v27 = vpop.eup %367 }
  0x2a   : > { %v370_v29 = vpop.eup %369  ;;  %v251_v30 = vmul.f32 0.6931472, %v368_v27 }
  0x2b   : > { %v260_v31 = vmul.f32 0.6931472, %v370_v29 }
  0x2c   : > { %v257_v32 = vsel %vm256_vm0, %v254_v26, %v251_v30 }
  0x2d   : > { %v267_v33 = vsel %vm241_vm1, %v239_v10, %v257_v32  ;;  %v266_v34 = vsel %vm265_vm2, %v263_v28, %v260_v31 }
  0x2e   : > { %270 = vst.msk [vmem:[%s221_s5] sm:$0xff] %vm269_vm3, %v267_v33  ;;  %v268_v35 = vsel %vm242_vm4, %v240_v11, %v266_v34 }
  0x2f   : > { %271 = vst.msk [vmem:[%s221_s5 + $0x8] sm:$0xff] %vm269_vm3, %v268_v35 }
  0x30 PF: > { %s14_s15 = sadd.s32 1, %s377_s15  }
  0x31   : > { %p11_p4 = scmp.ge.s32.totalorder %s14_s15, 4  }
  0x33   :  { %13 = sbr.rel (!%p11_p4) target bundleno = 1 (0x1), region = 69 }

// kernel: graphnet_forward.12
= control target key start
LH: loop header
LB: loop body
LE: loop exit
PB: predicated region body
PF: predicated region fallthrough
CT: control target
= control target key end

     0   :  { %s1649_s30 = smov 0   ;;  %s1651_s10 = smov 0   ;;  %s1886_s0 = inlined_call_operand.vmem [shape: bf16[32,64], index: 0, kind: input, shape index: {}]   ;;  %s1887_s1 = inlined_call_operand.vmem [shape: bf16[8,32,64], index: 1, kind: input, shape index: {}]   ;;  %s1888_s2 = inlined_call_operand.vmem [shape: bf16[8,32,32], index: 2, kind: input, shape index: {}]   ;;  %s1889_s3 = inlined_call_operand.vmem [shape: bf16[64,128], index: 3, kind: input, shape index: {}]   ;;  %s1890_s4 = inlined_call_operand.vmem [shape: bf16[64,128], index: 4, kind: input, shape index: {}]   ;;  %s1891_s5 = inlined_call_operand.vmem [shape: bf16[32,128], index: 5, kind: input, shape index: {}]   ;;  %s1892_s6 = inlined_call_operand.vmem [shape: f32[1,128], index: 6, kind: input, shape index: {}]   ;;  %s1893_s7 = inlined_call_operand.vmem [shape: bf16[8,32,128], index: 7, kind: output, shape index: {0}]   ;;  %s1894_s8 = inlined_call_operand.vmem [shape: f32[2,1,128], index: 8, kind: output, shape index: {1}]   ;;  %s1895_s9 = inlined_call_operand.vmem [shape: f32[2,1,128], index: 9, kind: output, shape index: {2}]  }
   0x1   :  { %s1653_s11 = smov 0  }
   0x2 LB: > { %s1665_s12 = sadd.s32 4294967295, %s1597_s11   ;;  %s1668_s13 = sadd.s32 1, %s1597_s11   ;;  %s1597_s11 = sphi %s1653_s11, %s1900_s11   ;;  %s1593_s10 = sphi %s1651_s10, %s1899_s10   ;;  %s1589_s30 = sphi %s1649_s30, %s1898_s30  }
   0x3   : > { %s50_s14 = ssub.s32 %s1597_s11, %s1668_s13  ;;  %s53_s15 = sadd.s32 1, %s1593_s10 }
   0x4   : > { %p51_p0 = scmp.eq.s32.totalorder %s50_s14, 0  ;;  %p60_p1 = scmp.ne.s32.totalorder %s1593_s10, %s1589_s30 }
   0x5   : > { %p61_p2 = scmp.eq.s32.totalorder %s1597_s11, 0  ;;  %p200_p3 = scmp.eq.s32.totalorder %s1665_s12, 1 }
   0x6   : > { %s1678_s16 = scalar_select %p51_p0, %s1593_s10, %s53_s15  }
   0x7   : > { %p1680_p4 = por %p61_p2, %p60_p1  ;;  %p1684_p5 = por %p200_p3, %p60_p1 }
   0x8   : > { %p1324_p6 = scmp.ge.s32.totalorder %s1597_s11, 2 }
   0xa   : > { %286 = sbr.rel (%p1324_p6) target bundleno = 39 (0x27), region = 32 }
   0xf   : > { %298 = sbr.rel (!%p1680_p4) target bundleno = 27 (0x1b), region = 40  ;;  %s300_s19 = sand.u32 (%p1680_p4), 1, %s1593_s10  }
  0x10   : > { %s1467_s20 = sshll.u32 (%p1680_p4), %s1597_s11, 3  ;;  %s1325_s21 = sshll.u32 (%p1680_p4), %s300_s19, 6 }
  0x11   : > { %s305_s24 = scalar_lea.vmem (%p1680_p4), %s1887_s1, %s1467_s20  ;;  %s302_s25 = scalar_lea.vmem (%p1680_p4), [#allocation2], %s1325_s21 }
  0x12   : > { %v322_v0 = vld [vmem:[%s305_s24] sm:$0xff] (%p1680_p4)   ;;  %v326_v1 = vld [vmem:[%s305_s24 + $0x10] sm:$0xff] (%p1680_p4)  }
  0x13   : > { %v330_v2 = vld [vmem:[%s305_s24 + $0x20] sm:$0xff] (%p1680_p4)   ;;  %323 = vst [vmem:[%s302_s25] sm:$0xff] (%p1680_p4), %v322_v0   ;;  %v334_v3 = vld [vmem:[%s305_s24 + $0x30] sm:$0xff] (%p1680_p4)  }
  0x14   : > { %327 = vst [vmem:[%s302_s25 + $0x8] sm:$0xff] %v326_v1   ;;  %v338_v4 = vld [vmem:[%s305_s24 + $0x40] sm:$0xff]   ;;  %v342_v5 = vld [vmem:[%s305_s24 + $0x50] sm:$0xff]  }
  0x15   : > { %331 = vst [vmem:[%s302_s25 + $0x10] sm:$0xff] %v330_v2   ;;  %v346_v6 = vld [vmem:[%s305_s24 + $0x60] sm:$0xff]   ;;  %v350_v7 = vld [vmem:[%s305_s24 + $0x70] sm:$0xff]  }
  0x16   : > { %335 = vst [vmem:[%s302_s25 + $0x18] sm:$0xff] %v334_v3  }
  0x17   : > { %339 = vst [vmem:[%s302_s25 + $0x20] sm:$0xff] %v338_v4  }
  0x18   : > { %343 = vst [vmem:[%s302_s25 + $0x28] sm:$0xff] %v342_v5  }
  0x19   : > { %347 = vst [vmem:[%s302_s25 + $0x30] sm:$0xff] %v346_v6  }
  0x1a   : > { %351 = vst [vmem:[%s302_s25 + $0x38] sm:$0xff] %v350_v7  }
  0x1b PF: > { %409 = sbr.rel (!%p1680_p4) target bundleno = 39 (0x27), region = 81  ;;  %s411_s26 = sand.u32 (%p1680_p4), 1, %s1593_s10  }
  0x1c   : > { %s1468_s27 = sshll.u32 (%p1680_p4), %s1597_s11, 3  ;;  %s1328_s28 = sshll.u32 (%p1680_p4), %s411_s26, 6 }
  0x1d   : > { %s416_s15 = scalar_lea.vmem (%p1680_p4), %s1888_s2, %s1468_s27  ;;  %s413_s19 = scalar_lea.vmem (%p1680_p4), [#allocation3], %s1328_s28 }
  0x1e   : > { %v433_v8 = vld [vmem:[%s416_s15] sm:$0xff] (%p1680_p4)   ;;  %v437_v9 = vld [vmem:[%s416_s15 + $0x10] sm:$0xff] (%p1680_p4)  }
  0x1f   : > { %v441_v10 = vld [vmem:[%s416_s15 + $0x20] sm:$0xff] (%p1680_p4)   ;;  %434 = vst [vmem:[%s413_s19] sm:$0xff] (%p1680_p4), %v433_v8   ;;  %v445_v11 = vld [vmem:[%s416_s15 + $0x30] sm:$0xff] (%p1680_p4)  }
  0x20   : > { %438 = vst [vmem:[%s413_s19 + $0x8] sm:$0xff] %v437_v9   ;;  %v449_v12 = vld [vmem:[%s416_s15 + $0x40] sm:$0xff]   ;;  %v453_v13 = vld [vmem:[%s416_s15 + $0x50] sm:$0xff]  }
  0x21   : > { %442 = vst [vmem:[%s413_s19 + $0x10] sm:$0xff] %v441_v10   ;;  %v457_v14 = vld [vmem:[%s416_s15 + $0x60] sm:$0xff]   ;;  %v461_v15 = vld [vmem:[%s416_s15 + $0x70] sm:$0xff]  }
  0x22   : > { %446 = vst [vmem:[%s413_s19 + $0x18] sm:$0xff] %v445_v11  }
  0x23   : > { %450 = vst [vmem:[%s413_s19 + $0x20] sm:$0xff] %v449_v12  }
  0x24   : > { %454 = vst [vmem:[%s413_s19 + $0x28] sm:$0xff] %v453_v13  }
  0x25   : > { %458 = vst [vmem:[%s413_s19 + $0x30] sm:$0xff] %v457_v14  }
  0x26   : > { %462 = vst [vmem:[%s413_s19 + $0x38] sm:$0xff] %v461_v15  }
  0x27 PF: > { %p1331_p7 = scmp.ge.s32.totalorder %s1597_s11, 1  ;;  %p519_p8 = scmp.lt.s32.totalorder %s1597_s11, 3 }
  0x29   : > { %p520_p9 = pnand %p1331_p7, %p519_p8 }
  0x2a   : > { %s526_s25 = sand.u32 (!%p520_p9), 1, %s1589_s30   ;;  %s1335_s26 = sshll.u32 (!%p520_p9), %s1665_s12, 1 }
  0x2b   : > { %523 = sbr.rel (%p520_p9) target bundleno = 298 (0x12a), region = 122  ;;  %s1716_s27 = sshll.u32 (!%p520_p9), %s526_s25, 6 }
  0x2c   : > { %p583_p10 = scmp.lt.s32.totalorder (!%p520_p9), %s1335_s26, 3  ;;  %s1728_s30 = scalar_lea.vmem (!%p520_p9), [#allocation3], %s1716_s27 }
  0x2d   : > { %s1800_s17 = scalar_lea.vmem (!%p520_p9), [#allocation4], %s1716_s27  ;;  %p591_p11 = scmp.lt.s32.totalorder (!%p520_p9), %s1665_s12, 1 }
  0x30   : > { %v1473_v16 = vld [vmem:[%s1889_s3 + $0x18] sm:$0xff]  ;;  %v1495_v17 = vld [vmem:[%s1891_s5 + $0x8] sm:$0xff]  ;;  %v1472_v19 = vld [vmem:[%s1889_s3 + $0x10] sm:$0xff]  ;;  %s1902_s26 = smov (!%p583_p10, %s1335_s26), 3  ;;  %vm755_vm0 = vcmask 261120   ;;  %vm641_vm1 = vcmask 523264  }
  0x31   : > { %v1493_v18 = vld [vmem:[%s1890_s4 + $0x18] sm:$0xff]  ;;  %649 = vmatpush.bf16.msra.mxu0 %v1473_v16  ;;  %1544 = vmatpush.bf16.msra.mxu1 %v1495_v17  ;;  %v1494_v20 = vld [vmem:[%s1891_s5] sm:$0xff]  ;;  %v1492_v21 = vld [vmem:[%s1890_s4 + $0x10] sm:$0xff]  ;;  %s1336_s23 = sshll.u32 %s1902_s26, 2  ;;  %s1748_s26 = scalar_lea.vmem [#allocation2], %s1716_s27 }
  0x32   : > { %921 = vmatpush.bf16.msra.mxu2 %v1493_v18  ;;  %1546 = vmatpush.bf16.msra.mxu3 %v1493_v18  ;;  %v1485_v22 = vld [vmem:[%s1728_s30 + $0x18] sm:$0xff]  ;;  %v1471_v23 = vld [vmem:[%s1889_s3 + $0x8] sm:$0xff]  ;;  %v1470_v25 = vld [vmem:[%s1889_s3] sm:$0xff]  ;;  %s586_s29 = scalar_lea.vmem %s1886_s0, %s1336_s23  ;;  %s1496_s11 = sshll.u32 (%p1684_p5), %s1665_s12, 3 }
  0x33   : > { %v1491_v24 = vld [vmem:[%s1890_s4 + $0x8] sm:$0xff]  ;;  %v1490_v26 = vld [vmem:[%s1890_s4] sm:$0xff]  ;;  %v1480_v33 = vld [vmem:[%s1748_s26 + $0x30] sm:$0xff]  ;;  %s592_s27 = scalar_select %p591_p11, %s1665_s12, 1 }
  0x34   : > { %v1469_v27 = vld [vmem:[%s586_s29] sm:$0xff]  ;;  %v1479_v29 = vld [vmem:[%s1748_s26 + $0x28] sm:$0xff]  ;;  %v1476_v36 = vld [vmem:[%s1748_s26 + $0x10] sm:$0xff]  ;;  %s1089_s14 = scalar_lea.vmem (%p1684_p5), %s1893_s7, %s1496_s11 }
  0x35   : > { %650 = vmatpush.bf16.msra.mxu0 %v1472_v19  ;;  %1545 = vmatpush.bf16.msra.mxu1 %v1494_v20  ;;  %v1474_v28 = vld [vmem:[%s1748_s26] sm:$0xff]  ;;  %v1475_v32 = vld [vmem:[%s1748_s26 + $0x8] sm:$0xff]  ;;  %v1481_v37 = vld [vmem:[%s1748_s26 + $0x38] sm:$0xff]  ;;  %s593_s22 = scalar_lea.vmem %s1894_s8, %s592_s27  ;;  %s596_s25 = scalar_lea.vmem %s1895_s9, %s592_s27 }
  0x36   : > { %922 = vmatpush.bf16.msra.mxu2 %v1492_v21  ;;  %1547 = vmatpush.bf16.msra.mxu3 %v1492_v21  ;;  %v1486_v30 = vld [vmem:[%s1728_s30 + $0x20] sm:$0xff]  ;;  %v1487_v34 = vld [vmem:[%s1728_s30 + $0x28] sm:$0xff]  ;;  %v1488_v38 = vld [vmem:[%s1728_s30 + $0x30] sm:$0xff] }
  0x37   : > { %v1482_v31 = vld [vmem:[%s1728_s30] sm:$0xff]  ;;  %v1483_v35 = vld [vmem:[%s1728_s30 + $0x8] sm:$0xff]  ;;  %v1484_v39 = vld [vmem:[%s1728_s30 + $0x10] sm:$0xff] }
  0x38   : > { %1401 = vmatmul.msk.bf16.vlgmr.msra.gmra.mxu1 %vm755_vm0, %v1485_v22  ;;  %v1477_v40 = vld [vmem:[%s1748_s26 + $0x18] sm:$0xff]  ;;  %v1478_v42 = vld [vmem:[%s1748_s26 + $0x20] sm:$0xff] }
  0x39   : > { %651 = vmatpush.bf16.msra.mxu0 %v1471_v23  ;;  %v1489_v41 = vld [vmem:[%s1728_s30 + $0x38] sm:$0xff]  ;;  %v1574_v53 = vld [vmem:[%s1892_s6] ss:$0 sm:$0xff] }
  0x3a   : > { %923 = vmatpush.bf16.msra.mxu2 %v1491_v24  ;;  %1548 = vmatpush.bf16.msra.mxu3 %v1491_v24 }
  0x3d   : > { %652 = vmatpush.bf16.msra.mxu0 %v1470_v25 }
  0x3e   : > { %924 = vmatpush.bf16.msra.mxu2 %v1490_v26  ;;  %1549 = vmatpush.bf16.msra.mxu3 %v1490_v26 }
  0x40   : > { %1357 = vmatmul.msk.bf16.vlgmr.msra.gmra.mxu0 %vm641_vm1, %v1469_v27 }
  0x41   : > { %786 = vmatpush.bf16.msrb.mxu0 %v1495_v17  ;;  %1454 = vmatmul.msk.bf16.vlgmr.msra.gmra.mxu2 %vm641_vm1, %v1474_v28 }
  0x42   : > { %1459 = vmatmul.msk.bf16.vlgmr.msra.gmra.mxu3 %vm641_vm1, %v1479_v29 }
  0x45   : > { %787 = vmatpush.bf16.msrb.mxu0 %v1494_v20 }
  0x48   : > { %1402 = vmatmul.msk.bf16.gmra.mxu1 %vm755_vm0, %v1486_v30 }
  0x50   : > { %1398 = vmatmul.msk.bf16.vlgmr.msrb.gmra.mxu0 %vm755_vm0, %v1482_v31 }
  0x51   : > { %1455 = vmatmul.msk.bf16.gmra.mxu2 %vm641_vm1, %v1475_v32 }
  0x52   : > { %1460 = vmatmul.msk.bf16.gmra.mxu3 %vm641_vm1, %v1480_v33 }
  0x58   : > { %1403 = vmatmul.msk.bf16.gmra.mxu1 %vm755_vm0, %v1487_v34 }
  0x60   : > { %1399 = vmatmul.msk.bf16.gmra.mxu0 %vm755_vm0, %v1483_v35 }
  0x61   : > { %1456 = vmatmul.msk.bf16.gmra.mxu2 %vm641_vm1, %v1476_v36 }
  0x62   : > { %1461 = vmatmul.msk.bf16.gmra.mxu3 %vm641_vm1, %v1481_v37 }
  0x68   : > { %1404 = vmatmul.msk.bf16.gmra.mxu1 %vm755_vm0, %v1488_v38 }
  0x70   : > { %1400 = vmatmul.msk.bf16.gmra.mxu0 %vm755_vm0, %v1484_v39 }
  0x71   : > { %1457 = vmatmul.msk.bf16.gmra.mxu2 %vm641_vm1, %v1477_v40 }
  0x78   : > { %1405 = vmatmul.msk.bf16.gmra.mxu1 %vm755_vm0, %v1489_v41 }
  0x81   : > { %1458 = vmatmul.msk.bf16.gmra.mxu2 %vm641_vm1, %v1478_v42 }
  0xb5   : > { %v804_v43 = vpop.f32.mrf.mxu1 }
  0xbd   : > { %v654_v44 = vpop.f32.mrf.mxu0  ;;  %v1781_v45 = vpop.f32.mrf.mxu1 }
  0xbe   : > { %v1790_v55 = vadd.f32 %v1574_v53, %v654_v44 }
  0xc4   : > { %v926_v46 = vpop.f32.mrf.mxu2 }
  0xc5   : > { %v656_v47 = vpop.f32.mrf.mxu0  ;;  %v1783_v48 = vpop.f32.mrf.mxu1 }
  0xc6   : > { %v951_v49 = vpop.f32.mrf.mxu3  ;;  %v1792_v60 = vadd.f32 %v1574_v53, %v656_v47 }
  0xcc   : > { %v928_v50 = vpop.f32.mrf.mxu2 }
  0xcd   : > { %v789_v51 = vpop.f32.mrf.mxu0  ;;  %v1785_v52 = vpop.f32.mrf.mxu1 }
  0xce   : > { %v953_v54 = vpop.f32.mrf.mxu3  ;;  %v927_v56 = vadd.f32 %v926_v46, %v789_v51 }
  0xd0   : > { %v966_v62 = vadd.f32 %v927_v56, %v1790_v55 }
  0xd2   : > { %v1028_v53 = vmul.f32 %v966_v62, %v966_v62 }
  0xd4   : > { %v931_v57 = vpop.f32.mrf.mxu2 }
  0xd5   : > { %v791_v58 = vpop.f32.mrf.mxu0  ;;  %v814_v59 = vpop.f32.mrf.mxu1 }
  0xd6   : > { %v929_v61 = vadd.f32 %v928_v50, %v791_v58  ;;  %v952_v1 = vadd.f32 %v951_v49, %v814_v59  ;;  %v956_v3 = vpop.f32.mrf.mxu3 }
  0xd8   : > { %v1796_v63 = vadd.f32 %v929_v61, %v1792_v60  ;;  %v1804_v7 = vadd.f32 %v952_v1, %v1790_v55 }
  0xda   : > { %v1500_v0 = vpack.c.bf16 %v1796_v63, %v966_v62 }
  0xdc   : > { %1501 = vst [vmem:[%s1800_s17] sm:$0xff] %v1500_v0   ;;  %v933_v2 = vpop.f32.mrf.mxu2 }
  0xdd   : > { %v794_v4 = vpop.f32.mrf.mxu0  ;;  %v816_v5 = vpop.f32.mrf.mxu1 }
  0xde   : > { %v954_v6 = vadd.f32 %v953_v54, %v816_v5  ;;  %v932_v10 = vadd.f32 %v931_v57, %v794_v4  ;;  %v958_v15 = vpop.f32.mrf.mxu3 }
  0xe0   : > { %v1807_v8 = vadd.f32 %v954_v6, %v1792_v60  ;;  %v968_v16 = vadd.f32 %v932_v10, %v1790_v55 }
  0xe2   : > { %v1525_v9 = vpack.c.bf16 %v1807_v8, %v1804_v7  ;;  %v1030_v50 = vmul.f32 %v968_v16, %v968_v16  ;;  %v1014_v54 = vadd.f32 %v968_v16, %v966_v62  ;;  %v1029_v62 = vmul.f32 %v1796_v63, %v1796_v63 }
  0xe4   : > { %1541 = vst [vmem:[%s1800_s17 + $0x28] sm:$0xff] %v1525_v9   ;;  %v936_v11 = vpop.f32.mrf.mxu2 }
  0xe5   : > { %v796_v12 = vpop.f32.mrf.mxu0  ;;  %v819_v13 = vpop.f32.mrf.mxu1 }
  0xe6   : > { %v934_v14 = vadd.f32 %v933_v2, %v796_v12  ;;  %v957_v19 = vadd.f32 %v956_v3, %v819_v13  ;;  %v961_v26 = vpop.f32.mrf.mxu3 }
  0xe8   : > { %v969_v17 = vadd.f32 %v934_v14, %v1792_v60  ;;  %v1816_v24 = vadd.f32 %v957_v19, %v1790_v55 }
  0xea   : > { %v1505_v18 = vpack.c.bf16 %v969_v17, %v968_v16  ;;  %v1031_v3 = vmul.f32 %v969_v17, %v969_v17  ;;  %v1021_v10 = vadd.f32 %v969_v17, %v1796_v63 }
  0xec   : > { %1537 = vst [vmem:[%s1800_s17 + $0x8] sm:$0xff] %v1505_v18   ;;  %v938_v20 = vpop.f32.mrf.mxu2  ;;  %v1051_v12 = vadd.f32 %v1031_v3, %v1029_v62 }
  0xed   : > { %v799_v21 = vpop.f32.mrf.mxu0  ;;  %v821_v22 = vpop.f32.mrf.mxu1 }
  0xee   : > { %v959_v23 = vadd.f32 %v958_v15, %v821_v22  ;;  %v937_v28 = vadd.f32 %v936_v11, %v799_v21  ;;  %v963_v37 = vpop.f32.mrf.mxu3 }
  0xf0   : > { %v1819_v25 = vadd.f32 %v959_v23, %v1792_v60  ;;  %v970_v33 = vadd.f32 %v937_v28, %v1790_v55 }
  0xf2   : > { %v1530_v27 = vpack.c.bf16 %v1819_v25, %v1816_v24  ;;  %v1032_v56 = vmul.f32 %v970_v33, %v970_v33  ;;  %v1015_v58 = vadd.f32 %v1014_v54, %v970_v33 }
  0xf3   : > { %v1110_v54 = vld [vmem:[%s1800_s17 + $0x8] sm:$0xff] (%p1684_p5)  }
  0xf4   : > { %1542 = vst [vmem:[%s1800_s17 + $0x30] sm:$0xff] %v1530_v27   ;;  %v941_v29 = vpop.f32.mrf.mxu2 }
  0xf5   : > { %v801_v30 = vpop.f32.mrf.mxu0  ;;  %v824_v31 = vpop.f32.mrf.mxu1  ;;  %v942_v36 = vadd.f32 %v941_v29, %v804_v43  ;;  %1111 = vst [vmem:[%s1089_s14 + $0x10] sm:$0xff] (%p1684_p5), %v1110_v54  }
  0xf6   : > { %v939_v32 = vadd.f32 %v938_v20, %v801_v30  ;;  %v962_v38 = vadd.f32 %v961_v26, %v824_v31  ;;  %v1039_v26 = vmul.f32 %v1807_v8, %v1807_v8 }
  0xf7   : > { %v972_v44 = vadd.f32 %v942_v36, %v1790_v55 }
  0xf8   : > { %v971_v34 = vadd.f32 %v939_v32, %v1792_v60  ;;  %v980_v47 = vadd.f32 %v962_v38, %v1790_v55 }
  0xf9   : > { %v1034_v59 = vmul.f32 %v972_v44, %v972_v44  ;;  %v1016_v1 = vadd.f32 %v1015_v58, %v972_v44  ;;  %v1126_v58 = vld [vmem:[%s1800_s17 + $0x28] sm:$0xff] (%p1684_p5)  }
  0xfa   : > { %v1510_v35 = vpack.c.bf16 %v971_v34, %v970_v33  ;;  %v1033_v9 = vmul.f32 %v971_v34, %v971_v34  ;;  %v1042_v32 = vmul.f32 %v980_v47, %v980_v47  ;;  %1127 = vst [vmem:[%s1089_s14 + $0x50] sm:$0xff] (%p1684_p5), %v1126_v58  }
  0xfc   : > { %1538 = vst [vmem:[%s1800_s17 + $0x10] sm:$0xff] %v1510_v35   ;;  %v943_v39 = vpop.f32.mrf.mxu2  ;;  %v1052_v16 = vadd.f32 %v1051_v12, %v1033_v9 }
  0xfd   : > { %v944_v40 = vadd.f32 %v943_v39, %v1781_v45  ;;  %v826_v41 = vpop.f32.mrf.mxu1  ;;  %v1044_v45 = vadd.f32 %v1030_v50, %v1028_v53  ;;  %v1106_v53 = vld [vmem:[%s1800_s17] sm:$0xff] (%p1684_p5)  }
  0xfe   : > { %v964_v42 = vadd.f32 %v963_v37, %v826_v41  ;;  %1107 = vst [vmem:[%s1089_s14] sm:$0xff] (%p1684_p5), %v1106_v53  }
  0xff   : > { %v973_v46 = vadd.f32 %v944_v40, %v1792_v60  ;;  %v1045_v0 = vadd.f32 %v1044_v45, %v1032_v56 }
 0x100   : > { %v981_v49 = vadd.f32 %v964_v42, %v1792_v60 }
 0x101   : > { %v1515_v43 = vpack.c.bf16 %v973_v46, %v972_v44  ;;  %v1046_v4 = vadd.f32 %v1045_v0, %v1034_v59  ;;  %v1035_v13 = vmul.f32 %v973_v46, %v973_v46  ;;  %v1130_v59 = vld [vmem:[%s1800_s17 + $0x30] sm:$0xff] (%p1684_p5)  }
 0x102   : > { %v1535_v51 = vpack.c.bf16 %v981_v49, %v980_v47  ;;  %v1043_v33 = vmul.f32 %v981_v49, %v981_v49  ;;  %1131 = vst [vmem:[%s1089_s14 + $0x60] sm:$0xff] (%p1684_p5), %v1130_v59  }
 0x103   : > { %1539 = vst [vmem:[%s1800_s17 + $0x18] sm:$0xff] %v1515_v43   ;;  %v1053_v21 = vadd.f32 %v1052_v16, %v1035_v13  ;;  %v1114_v56 = vld [vmem:[%s1800_s17 + $0x10] sm:$0xff] (%p1684_p5)  }
 0x104   : > { %1543 = vst [vmem:[%s1800_s17 + $0x38] sm:$0xff] %v1535_v51   ;;  %v946_v57 = vpop.f32.mrf.mxu2 }
 0x105   : > { %v947_v61 = vadd.f32 %v946_v57, %v1783_v48  ;;  %v1022_v48 = vadd.f32 %v1021_v10, %v971_v34  ;;  %1115 = vst [vmem:[%s1089_s14 + $0x20] sm:$0xff] (%p1684_p5), %v1114_v56  }
 0x107   : > { %v974_v2 = vadd.f32 %v947_v61, %v1790_v55  ;;  %v1038_v55 = vmul.f32 %v1804_v7, %v1804_v7  ;;  %v1023_v18 = vadd.f32 %v1022_v48, %v973_v46 }
 0x109   : > { %v1017_v5 = vadd.f32 %v1016_v1, %v974_v2  ;;  %v1036_v6 = vmul.f32 %v974_v2, %v974_v2 }
 0x10a   : > { %v1118_v57 = vld [vmem:[%s1800_s17 + $0x18] sm:$0xff] (%p1684_p5)  }
 0x10b   : > { %v1047_v11 = vadd.f32 %v1046_v4, %v1036_v6  ;;  %v1018_v19 = vadd.f32 %v1017_v5, %v1804_v7  ;;  %1119 = vst [vmem:[%s1089_s14 + $0x30] sm:$0xff] (%p1684_p5), %v1118_v57   ;;  %v1134_v61 = vld [vmem:[%s1800_s17 + $0x38] sm:$0xff] (%p1684_p5)  }
 0x10c   : > { %v948_v14 = vpop.f32.mrf.mxu2  ;;  %1135 = vst [vmem:[%s1089_s14 + $0x70] sm:$0xff] (%p1684_p5), %v1134_v61  }
 0x10d   : > { %v949_v15 = vadd.f32 %v948_v14, %v1785_v52  ;;  %v1048_v22 = vadd.f32 %v1047_v11, %v1038_v55  ;;  %v1040_v52 = vmul.f32 %v1816_v24, %v1816_v24  ;;  %v1019_v27 = vadd.f32 %v1018_v19, %v1816_v24 }
 0x10f   : > { %v975_v20 = vadd.f32 %v949_v15, %v1792_v60  ;;  %v1041_v60 = vmul.f32 %v1819_v25, %v1819_v25  ;;  %v1049_v29 = vadd.f32 %v1048_v22, %v1040_v52  ;;  %v1020_v34 = vadd.f32 %v1019_v27, %v980_v47 }
 0x111   : > { %v1520_v63 = vpack.c.bf16 %v975_v20, %v974_v2  ;;  %v1024_v17 = vadd.f32 %v1023_v18, %v975_v20  ;;  %v1037_v23 = vmul.f32 %v975_v20, %v975_v20  ;;  %v1050_v37 = vadd.f32 %v1049_v29, %v1042_v32 }
 0x113   : > { %1540 = vst [vmem:[%s1800_s17 + $0x20] sm:$0xff] %v1520_v63   ;;  %v1025_v28 = vadd.f32 %v1024_v17, %v1807_v8  ;;  %v1054_v7 = vadd.f32 %v1053_v21, %v1037_v23 }
 0x115   : > { %v1026_v30 = vadd.f32 %v1025_v28, %v1819_v25  ;;  %v1055_v31 = vadd.f32 %v1054_v7, %v1039_v26 }
 0x117   : > { %v1027_v35 = vadd.f32 %v1026_v30, %v981_v49  ;;  %v1056_v36 = vadd.f32 %v1055_v31, %v1041_v60 }
 0x119   : > { %v1057_v24 = vadd.f32 %v1056_v36, %v1043_v33  ;;  %v1058_v38 = vadd.f32 %v1027_v35, %v1020_v34 }
 0x11a   : > { %v1122_v45 = vld [vmem:[%s1800_s17 + $0x20] sm:$0xff] (%p1684_p5)  }
 0x11b   : > { %v1059_v39 = vrot.slane %v1058_v38, 4  ;;  %v1066_v8 = vadd.f32 %v1057_v24, %v1050_v37  ;;  %1123 = vst [vmem:[%s1089_s14 + $0x40] sm:$0xff] (%p1684_p5), %v1122_v45  }
 0x11d   : > { %v1060_v40 = vadd.f32 %v1059_v39, %v1058_v38  ;;  %v1067_v41 = vrot.slane %v1066_v8, 4 }
 0x11f   : > { %v1061_v42 = vrot.slane %v1060_v40, 2  ;;  %v1068_v44 = vadd.f32 %v1067_v41, %v1066_v8 }
 0x121   : > { %v1062_v46 = vadd.f32 %v1061_v42, %v1060_v40  ;;  %v1069_v25 = vrot.slane %v1068_v44, 2 }
 0x123   : > { %v1063_v50 = vrot.slane %v1062_v46, 1  ;;  %v1070_v43 = vadd.f32 %v1069_v25, %v1068_v44 }
 0x125   : > { %v1064_v47 = vadd.f32 %v1063_v50, %v1062_v46  ;;  %v1071_v49 = vrot.slane %v1070_v43, 1  ;;  %1086 = sbr.rel (!%p1684_p5) target bundleno = 298 (0x12a), region = 134 }
 0x127   : > { %1065 = vst [vmem:[%s593_s22] sm:$0x1] %v1064_v47  ;;  %v1072_v51 = vadd.f32 %v1071_v49, %v1070_v43 }
 0x129   : > { %1073 = vst [vmem:[%s596_s25] sm:$0x1] %v1072_v51 }
 0x12a PF: > { %p17_p12 = scmp.ge.s32.totalorder %s1668_s13, 4   ;;  %s1898_s30 = smov %s1593_s10 }
 0x12b   : > { %s1899_s10 = smov %s1678_s16  ;;  %s1900_s11 = smov %s1668_s13 }
 0x12c   :  { %19 = sbr.rel (!%p17_p12) target bundleno = 2 (0x2), region = 241 }

// kernel: graphnet_forward.13
= control target key start
LH: loop header
LB: loop body
LE: loop exit
PB: predicated region body
PF: predicated region fallthrough
CT: control target
= control target key end

     0   :  { %s1475_s18 = smov 0   ;;  %s1477_s19 = smov 0   ;;  %s2271_s0 = inlined_call_operand.vmem [shape: bf16[8,32,128], index: 0, kind: input, shape index: {}]   ;;  %s2272_s1 = inlined_call_operand.vmem [shape: f32[1,128], index: 1, kind: input, shape index: {}]   ;;  %s2273_s2 = inlined_call_operand.vmem [shape: f32[1,128], index: 2, kind: input, shape index: {}]   ;;  %s2274_s3 = inlined_call_operand.vmem [shape: f32[32,64], index: 3, kind: output, shape index: {0}]   ;;  %s2275_s4 = inlined_call_operand.vmem [shape: f32[2,1,64], index: 4, kind: output, shape index: {1}]   ;;  %s2276_s5 = inlined_call_operand.vmem [shape: f32[2,1,64], index: 5, kind: output, shape index: {2}]  }
   0x1   :  { %s1479_s20 = smov 0  }
   0x2 LB: > { %s1491_s21 = sadd.s32 4294967295, %s1442_s20   ;;  %s1494_s22 = sadd.s32 1, %s1442_s20   ;;  %s1442_s20 = sphi %s1479_s20, %s2356_s20   ;;  %s1438_s19 = sphi %s1477_s19, %s2355_s19   ;;  %s1434_s18 = sphi %s1475_s18, %s2354_s18  }
   0x3   : > { %s20_s23 = ssub.s32 %s1442_s20, %s1494_s22  ;;  %s23_s24 = sadd.s32 1, %s1438_s19 }
   0x4   : > { %p21_p0 = scmp.eq.s32.totalorder %s20_s23, 0  ;;  %p30_p1 = scmp.ne.s32.totalorder %s1438_s19, %s1434_s18 }
   0x5   : > { %p31_p2 = scmp.eq.s32.totalorder %s1442_s20, 0  ;;  %p1199_p4 = scmp.ge.s32.totalorder %s1442_s20, 2 }
   0x6   : > { %s1503_s25 = scalar_select %p21_p0, %s1438_s19, %s23_s24  }
   0x7   : > { %p32_p3 = por %p31_p2, %p30_p1  ;;  %182 = sbr.rel (%p1199_p4) target bundleno = 24 (0x18), region = 24 }
   0xc   : > { %185 = sbr.rel (!%p32_p3) target bundleno = 24 (0x18), region = 28  ;;  %s187_s26 = sand.u32 (%p32_p3), 1, %s1438_s19  }
   0xd   : > { %s1225_s27 = sshll.u32 (%p32_p3), %s1442_s20, 3  ;;  %s1200_s28 = sshll.u32 (%p32_p3), %s187_s26, 6 }
   0xe   : > { %s192_s6 = scalar_lea.vmem (%p32_p3), %s2271_s0, %s1225_s27  ;;  %s189_s7 = scalar_lea.vmem (%p32_p3), [#allocation2], %s1200_s28 }
   0xf   : > { %v209_v0 = vld [vmem:[%s192_s6] sm:$0xff] (%p32_p3)   ;;  %v213_v1 = vld [vmem:[%s192_s6 + $0x10] sm:$0xff] (%p32_p3)  }
  0x10   : > { %v217_v2 = vld [vmem:[%s192_s6 + $0x20] sm:$0xff] (%p32_p3)   ;;  %210 = vst [vmem:[%s189_s7] sm:$0xff] (%p32_p3), %v209_v0   ;;  %v221_v3 = vld [vmem:[%s192_s6 + $0x30] sm:$0xff] (%p32_p3)  }
  0x11   : > { %214 = vst [vmem:[%s189_s7 + $0x8] sm:$0xff] %v213_v1   ;;  %v225_v4 = vld [vmem:[%s192_s6 + $0x40] sm:$0xff]   ;;  %v229_v5 = vld [vmem:[%s192_s6 + $0x50] sm:$0xff]  }
  0x12   : > { %218 = vst [vmem:[%s189_s7 + $0x10] sm:$0xff] %v217_v2   ;;  %v233_v6 = vld [vmem:[%s192_s6 + $0x60] sm:$0xff]   ;;  %v237_v7 = vld [vmem:[%s192_s6 + $0x70] sm:$0xff]  }
  0x13   : > { %222 = vst [vmem:[%s189_s7 + $0x18] sm:$0xff] %v221_v3  }
  0x14   : > { %226 = vst [vmem:[%s189_s7 + $0x20] sm:$0xff] %v225_v4  }
  0x15   : > { %230 = vst [vmem:[%s189_s7 + $0x28] sm:$0xff] %v229_v5  }
  0x16   : > { %234 = vst [vmem:[%s189_s7 + $0x30] sm:$0xff] %v233_v6  }
  0x17   : > { %238 = vst [vmem:[%s189_s7 + $0x38] sm:$0xff] %v237_v7  }
  0x18 PF: > { %p1203_p5 = scmp.ge.s32.totalorder %s1442_s20, 1  ;;  %p295_p6 = scmp.lt.s32.totalorder %s1442_s20, 3 }
  0x1a   : > { %p296_p7 = pnand %p1203_p5, %p295_p6 }
  0x1b   : > { %s302_s8 = sand.u32 (!%p296_p7), 1, %s1434_s18   ;;  %s1444_s15 = smov (!%p296_p7), 64  }
  0x1c   : > { %299 = sbr.rel (%p296_p7) target bundleno = 243 (0xf3), region = 69  ;;  %s1204_s9 = sshll.u32 (!%p296_p7), %s302_s8, 6 }
  0x1d   : > { %s1519_s12 = scalar_lea.vmem (!%p296_p7), [#allocation2], %s1204_s9  ;;  %s1205_s16 = sshll.u32 (!%p296_p7), %s1491_s21, 1 }
  0x1e   : > { %p2215_p8 = scmp.lt.s32.totalorder (!%p296_p7), %s1205_s16, 3  ;;  %p342_p9 = scmp.lt.s32.totalorder (!%p296_p7), %s1491_s21, 1 }
  0x21   : > { %v1517_v8 = vld [vmem:[%s2272_s1] ss:$0 sm:$0xff]  ;;  %v1258_v9 = vld [vmem:[%s1519_s12 + $0x8] sm:$0xff]   ;;  %v1260_v11 = vld [vmem:[%s1519_s12 + $0x18] sm:$0xff]   ;;  %s2358_s16 = smov (!%p2215_p8, %s1205_s16), 3  ;;  %s2360_s21 = smov (!%p342_p9, %s1491_s21), 1 }
  0x22   : > { %v1227_v10 = vld [vmem:[%s1519_s12] sm:$0xff]   ;;  %v1232_v12 = vunpack.c.l.bf16 %v1258_v9  ;;  %v1233_v15 = vunpack.c.h.bf16 %v1258_v9  ;;  %v1241_v17 = vunpack.c.h.bf16 %v1260_v11  ;;  %v1240_v18 = vunpack.c.l.bf16 %v1260_v11  ;;  %v1530_v19 = vld [vmem:[%s1519_s12 + $0x28] sm:$0xff]   ;;  %v1577_v56 = vld [vmem:[%s1519_s12 + $0x10] sm:$0xff]   ;;  %s1206_s18 = sshll.u32 %s2358_s16, 3  ;;  %s344_s28 = scalar_lea.vmem %s2275_s4, %s2360_s21 }
  0x23   : > { %v1527_v13 = vld [vmem:[%s2273_s2] ss:$0 sm:$0xff]  ;;  %v1228_v14 = vunpack.c.l.bf16 %v1227_v10  ;;  %v1229_v16 = vunpack.c.h.bf16 %v1227_v10  ;;  %v1248_v28 = vunpack.c.l.bf16 %v1530_v19  ;;  %v1236_v0 = vunpack.c.l.bf16 %v1577_v56  ;;  %s340_s24 = scalar_lea.vmem %s2274_s3, %s1206_s18  ;;  %s347_s6 = scalar_lea.vmem %s2276_s5, %s2360_s21 }
  0x24   : > { %v387_v20 = vmul.f32 %v1517_v8, %v1232_v12  ;;  %v388_v22 = vmul.f32 %v1517_v8, %v1233_v15  ;;  %v392_v24 = vmul.f32 %v1517_v8, %v1241_v17  ;;  %v1548_v29 = vld [vmem:[%s1519_s12 + $0x20] sm:$0xff]   ;;  %v391_v31 = vmul.f32 %v1517_v8, %v1240_v18 }
  0x25   : > { %v385_v21 = vmul.f32 %v1517_v8, %v1228_v14  ;;  %v386_v23 = vmul.f32 %v1517_v8, %v1229_v16  ;;  %v1245_v35 = vunpack.c.h.bf16 %v1548_v29  ;;  %v395_v38 = vmul.f32 %v1517_v8, %v1248_v28 }
  0x26   : > { %v1538_v25 = vadd.f32 %v1527_v13, %v387_v20  ;;  %v1544_v27 = vadd.f32 %v1527_v13, %v388_v22  ;;  %v1557_v34 = vadd.f32 %v1527_v13, %v392_v24  ;;  %v1564_v41 = vadd.f32 %v1527_v13, %v391_v31 }
  0x27   : > { %v1541_v26 = vadd.f32 %v1527_v13, %v385_v21  ;;  %v1551_v30 = vadd.f32 %v1527_v13, %v386_v23  ;;  %v394_v45 = vmul.f32 %v1517_v8, %v1245_v35  ;;  %v1569_v46 = vadd.f32 %v1527_v13, %v395_v38 }
  0x28   : > { %v742_v32 = vmin.f32 %v1538_v25, 20.0  ;;  %v743_v37 = vmin.f32 %v1544_v27, 20.0  ;;  %v747_v44 = vmin.f32 %v1557_v34, 20.0  ;;  %v746_v48 = vmin.f32 %v1564_v41, 20.0 }
  0x29   : > { %v740_v33 = vmin.f32 %v1541_v26, 20.0  ;;  %v741_v40 = vmin.f32 %v1551_v30, 20.0  ;;  %v1573_v49 = vadd.f32 %v1527_v13, %v394_v45  ;;  %v750_v51 = vmin.f32 %v1569_v46, 20.0 }
  0x2a   : > { %v760_v36 = vmul.f32 1.442695, %v742_v32  ;;  %v762_v42 = vmul.f32 1.442695, %v743_v37  ;;  %v770_v47 = vmul.f32 1.442695, %v747_v44  ;;  %v389_v21 = vmul.f32 %v1517_v8, %v1236_v0 }
  0x2b   : > { %v756_v39 = vmul.f32 1.442695, %v740_v33  ;;  %v758_v43 = vmul.f32 1.442695, %v741_v40  ;;  %v768_v55 = vmul.f32 1.442695, %v746_v48 }
  0x2c   : > { %1292 = vpow2.f32 %v760_v36  ;;  %vm726_vm0 = vcmp.gt.f32.partialorder %v1538_v25, 20.0  ;;  %v749_v61 = vmin.f32 %v1573_v49, 20.0  ;;  %v776_v63 = vmul.f32 1.442695, %v750_v51 }
  0x2d   : > { %1294 = vpow2.f32 %v756_v39  ;;  %vm724_vm1 = vcmp.gt.f32.partialorder %v1541_v26, 20.0  ;;  %vm727_vm6 = vcmp.gt.f32.partialorder %v1544_v27, 20.0  ;;  %vm725_vm7 = vcmp.gt.f32.partialorder %v1551_v30, 20.0 }
  0x2e   : > { %1296 = vpow2.f32 %v762_v42  ;;  %v774_v12 = vmul.f32 1.442695, %v749_v61  ;;  %vm731_vm10 = vcmp.gt.f32.partialorder %v1557_v34, 20.0  ;;  %vm730_vm11 = vcmp.gt.f32.partialorder %v1564_v41, 20.0 }
  0x2f   : > { %1298 = vpow2.f32 %v758_v43  ;;  %vm734_vm14 = vcmp.gt.f32.partialorder %v1569_v46, 20.0  ;;  %vm733_vm15 = vcmp.gt.f32.partialorder %v1573_v49, 20.0 }
  0x30   : > { %1300 = vpow2.f32 %v770_v47 }
  0x32   : > { %v1293_v50 = vpop.eup %1292 }
  0x33   : > { %v1295_v52 = vpop.eup %1294  ;;  %v806_v53 = vadd.f32 1.0, %v1293_v50  ;;  %v809_v54 = vmul.f32 -0.5, %v1293_v50  ;;  %v812_v2 = vand.u32 2147483647, %v1293_v50 }
  0x34   : > { %v788_v57 = vadd.f32 1.0, %v1295_v52  ;;  %v791_v58 = vmul.f32 -0.5, %v1295_v52  ;;  %v1297_v59 = vpop.eup %1296  ;;  %v794_v5 = vand.u32 2147483647, %v1295_v52 }
  0x35   : > { %1302 = vlog2.f32 %v806_v53  ;;  %v810_v60 = vadd.f32 1.0, %v809_v54  ;;  %v815_v62 = vadd.f32 1.0, %v1297_v59  ;;  %v1299_v1 = vpop.eup %1298  ;;  %v818_v4 = vmul.f32 -0.5, %v1297_v59 }
  0x36   : > { %1304 = vlog2.f32 %v788_v57  ;;  %v792_v3 = vadd.f32 1.0, %v791_v58  ;;  %v797_v6 = vadd.f32 1.0, %v1299_v1  ;;  %v800_v7 = vmul.f32 -0.5, %v1299_v1  ;;  %v1301_v9 = vpop.eup %1300 }
  0x37   : > { %1306 = vpow2.f32 %v768_v55  ;;  %v811_v10 = vmul.f32 %v1293_v50, %v810_v60  ;;  %v821_v11 = vand.u32 2147483647, %v1297_v59  ;;  %v819_v14 = vadd.f32 1.0, %v818_v4 }
  0x38   : > { %1308 = vlog2.f32 %v815_v62  ;;  %v801_v15 = vadd.f32 1.0, %v800_v7  ;;  %v851_v16 = vadd.f32 1.0, %v1301_v9  ;;  %vm1583_vm2 = vcmp.lt.f32.partialorder %v812_v2, 0.0004427343 }
  0x39   : > { %1310 = vlog2.f32 %v797_v6  ;;  %v793_v20 = vmul.f32 %v1295_v52, %v792_v3  ;;  %vm1588_vm3 = vcmp.lt.f32.partialorder %v794_v5, 0.0004427343  ;;  %v803_v28 = vand.u32 2147483647, %v1299_v1  ;;  %v1263_v52 = vld [vmem:[%s1519_s12 + $0x30] sm:$0xff]  }
  0x3a   : > { %1312 = vpow2.f32 %v776_v63  ;;  %vm1592_vm4 = vcmp.lt.f32.partialorder %v821_v11, 0.0004427343  ;;  %v854_v35 = vmul.f32 -0.5, %v1301_v9  ;;  %v820_v38 = vmul.f32 %v1297_v59, %v819_v14 }
  0x3b   : > { %v1303_v17 = vpop.eup %1302  ;;  %1314 = vlog2.f32 %v851_v16  ;;  %v802_v39 = vmul.f32 %v1299_v1, %v801_v15  ;;  %vm1607_vm5 = vcmp.lt.f32.partialorder %v803_v28, 0.0004427343  ;;  %v857_v51 = vand.u32 2147483647, %v1301_v9  ;;  %v1648_v28 = vld [vmem:[%s1519_s12 + $0x38] sm:$0xff]  }
  0x3c   : > { %v1305_v22 = vpop.eup %1304  ;;  %v808_v23 = vmul.f32 0.6931472, %v1303_v17  ;;  %1316 = vpow2.f32 %v774_v12  ;;  %v855_v55 = vadd.f32 1.0, %v854_v35  ;;  %v1618_v60 = vadd.f32 %v1527_v13, %v389_v21 }
  0x3d   : > { %v1307_v31 = vpop.eup %1306  ;;  %v790_v32 = vmul.f32 0.6931472, %v1305_v22  ;;  %v1253_v0 = vunpack.c.h.bf16 %v1263_v52  ;;  %v1252_v1 = vunpack.c.l.bf16 %v1263_v52  ;;  %vm1622_vm8 = vcmp.lt.f32.partialorder %v857_v51, 0.0004427343 }
  0x3e   : > { %v1309_v36 = vpop.eup %1308  ;;  %v814_v37 = vsel %vm1583_vm2, %v811_v10, %v808_v23  ;;  %v842_v40 = vadd.f32 1.0, %v1307_v31  ;;  %v845_v45 = vmul.f32 -0.5, %v1307_v31  ;;  %v848_v3 = vand.u32 2147483647, %v1307_v31 }
  0x3f   : > { %v934_v42 = vsel %vm726_vm0, %v1538_v25, %v814_v37  ;;  %v796_v43 = vsel %vm1588_vm3, %v793_v20, %v790_v32  ;;  %v817_v44 = vmul.f32 0.6931472, %v1309_v36  ;;  %v1311_v47 = vpop.eup %1310  ;;  %v1237_v5 = vunpack.c.h.bf16 %v1577_v56 }
  0x40   : > { %968 = vrot.lane.b32.xlu1 %v934_v42, %s1444_s15  ;;  %v932_v48 = vsel %vm724_vm1, %v1541_v26, %v796_v43  ;;  %1318 = vlog2.f32 %v842_v40  ;;  %v1313_v53 = vpop.eup %1312  ;;  %v799_v54 = vmul.f32 0.6931472, %v1311_v47  ;;  %v846_v63 = vadd.f32 1.0, %v845_v45 }
  0x41   : > { %964 = vrot.lane.b32.xlu0 %v932_v48, %s1444_s15  ;;  %v1315_v57 = vpop.eup %1314  ;;  %v823_v58 = vsel %vm1592_vm4, %v820_v38, %v817_v44  ;;  %v878_v59 = vadd.f32 1.0, %v1313_v53  ;;  %v856_v7 = vmul.f32 %v1301_v9, %v855_v55  ;;  %v881_v10 = vmul.f32 -0.5, %v1313_v53 }
  0x42   : > { %v1317_v61 = vpop.eup %1316  ;;  %v805_v62 = vsel %vm1607_vm5, %v802_v39, %v799_v54  ;;  %v935_v6 = vsel %vm727_vm6, %v1544_v27, %v823_v58  ;;  %v853_v14 = vmul.f32 0.6931472, %v1315_v57  ;;  %v744_v15 = vmin.f32 %v1618_v60, 20.0 }
  0x43   : > { %v869_v4 = vadd.f32 1.0, %v1317_v61  ;;  %1320 = vlog2.f32 %v878_v59  ;;  %v933_v12 = vsel %vm725_vm7, %v1551_v30, %v805_v62  ;;  %v847_v17 = vmul.f32 %v1307_v31, %v846_v63 }
  0x44   : > { %v872_v56 = vmul.f32 -0.5, %v1317_v61  ;;  %v398_v18 = vmul.f32 %v1517_v8, %v1253_v0  ;;  %vm1636_vm9 = vcmp.lt.f32.partialorder %v848_v3, 0.0004427343  ;;  %v764_v20 = vmul.f32 1.442695, %v744_v15 }
  0x45   : > { %1322 = vlog2.f32 %v869_v4  ;;  %v397_v21 = vmul.f32 %v1517_v8, %v1252_v1  ;;  %v390_v22 = vmul.f32 %v1517_v8, %v1237_v5  ;;  %v882_v23 = vadd.f32 1.0, %v881_v10 }
  0x46   : > { %v1319_v11 = vpop.eup %1318  ;;  %v1645_v24 = vadd.f32 %v1527_v13, %v398_v18  ;;  %v859_v31 = vsel %vm1622_vm8, %v856_v7, %v853_v14  ;;  %1324 = vpow2.f32 %v764_v20  ;;  %v884_v36 = vand.u32 2147483647, %v1313_v53 }
  0x47   : > { %v844_v16 = vmul.f32 0.6931472, %v1319_v11  ;;  %v1654_v32 = vadd.f32 %v1527_v13, %v397_v21  ;;  %v873_v37 = vadd.f32 1.0, %v872_v56  ;;  %v1659_v38 = vadd.f32 %v1527_v13, %v390_v22 }
  0x48   : > { %970 = vrot.lane.b32.xlu1 %v935_v6, %s1444_s15  ;;  %v875_v40 = vand.u32 2147483647, %v1317_v61  ;;  %v753_v42 = vmin.f32 %v1645_v24, 20.0  ;;  %v1257_v44 = vunpack.c.h.bf16 %v1648_v28  ;;  %v939_v45 = vsel %vm731_vm10, %v1557_v34, %v859_v31 }
  0x49   : > { %966 = vrot.lane.b32.xlu0 %v933_v12, %s1444_s15  ;;  %v1321_v33 = vpop.eup %1320  ;;  %v850_v35 = vsel %vm1636_vm9, %v847_v17, %v844_v16  ;;  %v752_v43 = vmin.f32 %v1654_v32, 20.0  ;;  %v883_v47 = vmul.f32 %v1313_v53, %v882_v23  ;;  %vm1668_vm12 = vcmp.lt.f32.partialorder %v884_v36, 0.0004427343 }
  0x4a   : > { %v938_v48 = vsel %vm730_vm11, %v1564_v41, %v850_v35  ;;  %v880_v50 = vmul.f32 0.6931472, %v1321_v33  ;;  %v782_v51 = vmul.f32 1.442695, %v753_v42  ;;  %v874_v57 = vmul.f32 %v1317_v61, %v873_v37 }
  0x4b   : > { %v1323_v39 = vpop.eup %1322  ;;  %v780_v52 = vmul.f32 1.442695, %v752_v43  ;;  %v745_v58 = vmin.f32 %v1659_v38, 20.0  ;;  %vm1674_vm13 = vcmp.lt.f32.partialorder %v875_v40, 0.0004427343  ;;  %v400_v53 = vmul.f32 %v1517_v8, %v1257_v44 }
  0x4c   : > { %v871_v55 = vmul.f32 0.6931472, %v1323_v39  ;;  %v1325_v59 = vpop.eup %1324  ;;  %1326 = vpow2.f32 %v782_v51  ;;  %v1244_v63 = vunpack.c.l.bf16 %v1548_v29  ;;  %v886_v61 = vsel %vm1668_vm12, %v883_v47, %v880_v50 }
  0x4d   : > { %v824_v0 = vadd.f32 1.0, %v1325_v59  ;;  %v827_v1 = vmul.f32 -0.5, %v1325_v59  ;;  %1328 = vpow2.f32 %v780_v52  ;;  %v766_v2 = vmul.f32 1.442695, %v745_v58 }
  0x4e   : > { %v1685_v3 = vadd.f32 %v1527_v13, %v400_v53  ;;  %v877_v4 = vsel %vm1674_vm13, %v874_v57, %v871_v55  ;;  %v393_v6 = vmul.f32 %v1517_v8, %v1244_v63  ;;  %v942_v7 = vsel %vm734_vm14, %v1569_v46, %v886_v61 }
  0x4f   : > { %1330 = vlog2.f32 %v824_v0  ;;  %v828_v29 = vadd.f32 1.0, %v827_v1  ;;  %v830_v10 = vand.u32 2147483647, %v1325_v59  ;;  %v941_v12 = vsel %vm733_vm15, %v1573_v49, %v877_v4 }
  0x50   : > { %978 = vrot.lane.b32.xlu1 %v939_v45, %s1444_s15  ;;  %1332 = vpow2.f32 %v766_v2  ;;  %v755_v5 = vmin.f32 %v1685_v3, 20.0  ;;  %v1249_v15 = vunpack.c.h.bf16 %v1530_v19  ;;  %v1256_v16 = vunpack.c.l.bf16 %v1648_v28 }
  0x51   : > { %976 = vrot.lane.b32.xlu0 %v938_v48, %s1444_s15  ;;  %vm728_vm0 = vcmp.gt.f32.partialorder %v1618_v60, 20.0  ;;  %v829_v56 = vmul.f32 %v1325_v59, %v828_v29  ;;  %v1699_v22 = vadd.f32 %v1527_v13, %v393_v6  ;;  %vm1702_vm1 = vcmp.lt.f32.partialorder %v830_v10, 0.0004427343 }
  0x52   : > { %v1327_v11 = vpop.eup %1326  ;;  %v786_v14 = vmul.f32 1.442695, %v755_v5  ;;  %v396_v36 = vmul.f32 %v1517_v8, %v1249_v15  ;;  %v399_v37 = vmul.f32 %v1517_v8, %v1256_v16  ;;  %vm737_vm3 = vcmp.gt.f32.partialorder %v1645_v24, 20.0 }
  0x53   : > { %v1329_v17 = vpop.eup %1328  ;;  %v905_v18 = vadd.f32 1.0, %v1327_v11  ;;  %v908_v9 = vmul.f32 -0.5, %v1327_v11  ;;  %v911_v31 = vand.u32 2147483647, %v1327_v11  ;;  %v748_v45 = vmin.f32 %v1699_v22, 20.0 }
  0x54   : > { %v896_v20 = vadd.f32 1.0, %v1329_v17  ;;  %v899_v21 = vmul.f32 -0.5, %v1329_v17  ;;  %1334 = vpow2.f32 %v786_v14  ;;  %v902_v44 = vand.u32 2147483647, %v1329_v17 }
  0x55   : > { %v1331_v23 = vpop.eup %1330  ;;  %1336 = vlog2.f32 %v905_v18  ;;  %v909_v28 = vadd.f32 1.0, %v908_v9  ;;  %vm1714_vm2 = vcmp.lt.f32.partialorder %v911_v31, 0.0004427343  ;;  %v772_v52 = vmul.f32 1.442695, %v748_v45 }
  0x56   : > { %v1333_v33 = vpop.eup %1332  ;;  %v826_v35 = vmul.f32 0.6931472, %v1331_v23  ;;  %1338 = vlog2.f32 %v896_v20  ;;  %v900_v39 = vadd.f32 1.0, %v899_v21  ;;  %v1720_v54 = vadd.f32 %v1527_v13, %v396_v36 }
  0x57   : > { %v833_v40 = vadd.f32 1.0, %v1333_v33  ;;  %v836_v42 = vmul.f32 -0.5, %v1333_v33  ;;  %v910_v48 = vmul.f32 %v1327_v11, %v909_v28  ;;  %v1723_v55 = vadd.f32 %v1527_v13, %v399_v37 }
  0x58   : > { %984 = vrot.lane.b32.xlu1 %v942_v7, %s1444_s15  ;;  %v832_v43 = vsel %vm1702_vm1, %v829_v56, %v826_v35  ;;  %v901_v58 = vmul.f32 %v1329_v17, %v900_v39  ;;  %v839_v59 = vand.u32 2147483647, %v1333_v33  ;;  %vm1726_vm4 = vcmp.lt.f32.partialorder %v902_v44, 0.0004427343 }
  0x59   : > { %982 = vrot.lane.b32.xlu0 %v941_v12, %s1444_s15  ;;  %v936_v47 = vsel %vm728_vm0, %v1618_v60, %v832_v43  ;;  %1340 = vlog2.f32 %v833_v40  ;;  %v837_v51 = vadd.f32 1.0, %v836_v42  ;;  %vm736_vm5 = vcmp.gt.f32.partialorder %v1654_v32, 20.0 }
  0x5a   : > { %v1335_v8 = vpop.eup %1334  ;;  %972 = vrot.lane.b32.xlu2 %v936_v47, %s1444_s15  ;;  %1342 = vpow2.f32 %v772_v52  ;;  %v751_v29 = vmin.f32 %v1720_v54, 20.0  ;;  %vm840_vm6 = vcmp.lt.f32.partialorder %v839_v59, 0.0004427343  ;;  %vm729_vm7 = vcmp.gt.f32.partialorder %v1659_v38, 20.0 }
  0x5b   : > { %v1337_v57 = vpop.eup %1336  ;;  %v923_v62 = vadd.f32 1.0, %v1335_v8  ;;  %v926_v53 = vmul.f32 -0.5, %v1335_v8  ;;  %v838_v2 = vmul.f32 %v1333_v33, %v837_v51  ;;  %v929_v10 = vand.u32 2147483647, %v1335_v8 }
  0x5c   : > { %v1339_v63 = vpop.eup %1338  ;;  %v907_v0 = vmul.f32 0.6931472, %v1337_v57  ;;  %v778_v14 = vmul.f32 1.442695, %v751_v29  ;;  %v754_v15 = vmin.f32 %v1723_v55, 20.0  ;;  %vm739_vm9 = vcmp.gt.f32.partialorder %v1685_v3, 20.0 }
  0x5d   : > { %v898_v61 = vmul.f32 0.6931472, %v1339_v63  ;;  %1344 = vlog2.f32 %v923_v62  ;;  %v927_v4 = vadd.f32 1.0, %v926_v53  ;;  %vm930_vm8 = vcmp.lt.f32.partialorder %v929_v10, 0.0004427343 }
  0x5e   : > { %v913_v13 = vsel %vm1714_vm2, %v910_v48, %v907_v0  ;;  %1346 = vpow2.f32 %v778_v14  ;;  %v784_v19 = vmul.f32 1.442695, %v754_v15  ;;  %vm732_vm11 = vcmp.gt.f32.partialorder %v1699_v22, 20.0 }
  0x5f   : > { %v1341_v5 = vpop.eup %1340  ;;  %v945_v6 = vsel %vm737_vm3, %v1645_v24, %v913_v13  ;;  %v904_v7 = vsel %vm1726_vm4, %v901_v58, %v898_v61  ;;  %v928_v56 = vmul.f32 %v1335_v8, %v927_v4  ;;  %vm735_vm13 = vcmp.gt.f32.partialorder %v1720_v54, 20.0 }
  0x60   : > { %990 = vrot.lane.b32.xlu1 %v945_v6, %s1444_s15  ;;  %v944_v11 = vsel %vm736_vm5, %v1654_v32, %v904_v7  ;;  %v835_v12 = vmul.f32 0.6931472, %v1341_v5  ;;  %v1343_v16 = vpop.eup %1342  ;;  %v1209_v13 = vmul.f32 -1.442695, %v1538_v25  ;;  %vm738_vm15 = vcmp.gt.f32.partialorder %v1723_v55, 20.0 }
  0x61   : > { %988 = vrot.lane.b32.xlu0 %v944_v11, %s1444_s15  ;;  %v860_v20 = vadd.f32 1.0, %v1343_v16  ;;  %v863_v21 = vmul.f32 -0.5, %v1343_v16  ;;  %v866_v35 = vand.u32 2147483647, %v1343_v16  ;;  %v1211_v29 = vmul.f32 -1.442695, %v1618_v60 }
  0x62   : > { %v841_v17 = vsel %vm840_vm6, %v838_v2, %v835_v12  ;;  %v1207_v2 = vmul.f32 -1.442695, %v1541_v26  ;;  %v1210_v6 = vmul.f32 -1.442695, %v1544_v27  ;;  %v1208_v25 = vmul.f32 -1.442695, %v1551_v30 }
  0x63   : > { %v1345_v18 = vpop.eup %1344  ;;  %v937_v9 = vsel %vm729_vm7, %v1659_v38, %v841_v17  ;;  %1348 = vlog2.f32 %v860_v20  ;;  %v864_v31 = vadd.f32 1.0, %v863_v21  ;;  %vm867_vm10 = vcmp.lt.f32.partialorder %v866_v35, 0.0004427343 }
  0x64   : > { %974 = vrot.lane.b32.xlu2 %v937_v9, %s1444_s15  ;;  %v925_v23 = vmul.f32 0.6931472, %v1345_v18  ;;  %1350 = vpow2.f32 %v784_v19  ;;  %v1347_v36 = vpop.eup %1346  ;;  %v1212_v11 = vmul.f32 -1.442695, %v1659_v38  ;;  %v1214_v27 = vmul.f32 -1.442695, %v1557_v34 }
  0x65   : > { %v887_v37 = vadd.f32 1.0, %v1347_v36  ;;  %v890_v39 = vmul.f32 -0.5, %v1347_v36  ;;  %v865_v40 = vmul.f32 %v1343_v16, %v864_v31  ;;  %v893_v47 = vand.u32 2147483647, %v1347_v36 }
  0x66   : > { %v931_v28 = vsel %vm930_vm8, %v928_v56, %v925_v23  ;;  %v1213_v15 = vmul.f32 -1.442695, %v1564_v41  ;;  %v1217_v17 = vmul.f32 -1.442695, %v1569_v46  ;;  %v1216_v9 = vmul.f32 -1.442695, %v1573_v49 }
  0x67   : > { %v947_v33 = vsel %vm739_vm9, %v1685_v3, %v931_v28  ;;  %1352 = vlog2.f32 %v887_v37  ;;  %v891_v45 = vadd.f32 1.0, %v890_v39  ;;  %vm894_vm12 = vcmp.lt.f32.partialorder %v893_v47, 0.0004427343 }
  0x68   : > { %v1220_v46 = vmul.f32 -1.442695, %v1645_v24  ;;  %v1219_v21 = vmul.f32 -1.442695, %v1654_v32  ;;  %v1222_v28 = vmul.f32 -1.442695, %v1685_v3 }
  0x69   : > { %994 = vrot.lane.b32.xlu0 %v947_v33, %s1444_s15  ;;  %v1349_v42 = vpop.eup %1348  ;;  %v892_v52 = vmul.f32 %v1347_v36, %v891_v45  ;;  %v1215_v24 = vmul.f32 -1.442695, %v1699_v22  ;;  %v1218_v32 = vmul.f32 -1.442695, %v1720_v54  ;;  %v1221_v45 = vmul.f32 -1.442695, %v1723_v55 }
  0x6a   : > { %v1351_v43 = vpop.eup %1350  ;;  %v862_v44 = vmul.f32 0.6931472, %v1349_v42 }
  0x6b   : > { %v914_v48 = vadd.f32 1.0, %v1351_v43  ;;  %v917_v8 = vmul.f32 -0.5, %v1351_v43  ;;  %v920_v62 = vand.u32 2147483647, %v1351_v43 }
  0x6c   : > { %v868_v50 = vsel %vm867_vm10, %v865_v40, %v862_v44 }
  0x6d   : > { %v940_v51 = vsel %vm732_vm11, %v1699_v22, %v868_v50  ;;  %1354 = vlog2.f32 %v914_v48  ;;  %v1353_v57 = vpop.eup %1352  ;;  %v918_v59 = vadd.f32 1.0, %v917_v8  ;;  %vm921_vm14 = vcmp.lt.f32.partialorder %v920_v62, 0.0004427343 }
  0x6e   : > { %980 = vrot.lane.b32.xlu2 %v940_v51, %s1444_s15  ;;  %v889_v58 = vmul.f32 0.6931472, %v1353_v57  ;;  %1356 = vpow2.f32 %v1209_v13 }
  0x6f   : > { %v919_v61 = vmul.f32 %v1351_v43, %v918_v59  ;;  %1358 = vpow2.f32 %v1207_v2 }
  0x70   : > { %v895_v53 = vsel %vm894_vm12, %v892_v52, %v889_v58  ;;  %1360 = vpow2.f32 %v1211_v29 }
  0x71   : > { %v943_v0 = vsel %vm735_vm13, %v1720_v54, %v895_v53  ;;  %1362 = vpow2.f32 %v1210_v6 }
  0x72   : > { %1364 = vpow2.f32 %v1208_v25 }
  0x73   : > { %v1355_v63 = vpop.eup %1354 }
  0x74   : > { %v916_v1 = vmul.f32 0.6931472, %v1355_v63  ;;  %v1357_v7 = vpop.eup %1356 }
  0x75   : > { %v1359_v10 = vpop.eup %1358  ;;  %v1762_v12 = vadd.f32 1.0, %v1357_v7 }
  0x76   : > { %986 = vrot.lane.b32.xlu2 %v943_v0, %s1444_s15  ;;  %v922_v4 = vsel %vm921_vm14, %v919_v61, %v916_v1  ;;  %v1361_v26 = vpop.eup %1360  ;;  %v1764_v60 = vadd.f32 1.0, %v1359_v10 }
  0x77   : > { %v946_v5 = vsel %vm738_vm15, %v1723_v55, %v922_v4  ;;  %1366 = vrcp.f32 %v1762_v12  ;;  %v1768_v14 = vadd.f32 1.0, %v1361_v26  ;;  %v1363_v30 = vpop.eup %1362  ;;  %vm519_vm0 = vweird.f32 %v1762_v12 }
  0x78   : > { %1368 = vrcp.f32 %v1764_v60  ;;  %v1365_v16 = vpop.eup %1364  ;;  %v1776_v56 = vadd.f32 1.0, %v1363_v30  ;;  %v523_v54 = vand.u32 2147483647, %v1762_v12  ;;  %v525_v42 = vand.u32 2147483648, %v1762_v12 }
  0x79   : > { %1370 = vpow2.f32 %v1212_v11  ;;  %v1783_v20 = vadd.f32 1.0, %v1365_v16  ;;  %vm489_vm3 = vweird.f32 %v1764_v60  ;;  %v495_v51 = vand.u32 2147483648, %v1764_v60 }
  0x7a   : > { %1372 = vrcp.f32 %v1768_v14  ;;  %v493_v55 = vand.u32 2147483647, %v1764_v60  ;;  %v553_v59 = vand.u32 2147483647, %v1768_v14  ;;  %vm1834_vm5 = vcmp.eq.f32.partialorder %v523_v54, 8.507059e+37 }
  0x7b   : > { %1374 = vpow2.f32 %v1214_v27  ;;  %v526_v0 = vor.u32 1.1754944e-38, %v525_v42  ;;  %v555_v1 = vand.u32 2147483648, %v1768_v14  ;;  %v496_v25 = vor.u32 1.1754944e-38, %v495_v51 }
  0x7c   : > { %1376 = vpow2.f32 %v1213_v15  ;;  %vm1858_vm7 = vcmp.eq.f32.partialorder %v493_v55, 8.507059e+37  ;;  %vm549_vm8 = vweird.f32 %v1768_v14  ;;  %vm1864_vm10 = vcmp.eq.f32.partialorder %v553_v59, 8.507059e+37 }
  0x7d   : > { %v1774_v38 = vpop.eup %1366  ;;  %1378 = vrcp.f32 %v1776_v56  ;;  %v556_v27 = vor.u32 1.1754944e-38, %v555_v1  ;;  %vm534_vm11 = vweird.f32 %v1776_v56  ;;  %vm504_vm14 = vweird.f32 %v1783_v20 }
  0x7e   : > { %992 = vrot.lane.b32.xlu2 %v946_v5, %s1444_s15  ;;  %v1778_v18 = vpop.eup %1368  ;;  %v515_v34 = vmul.f32 %v1774_v38, %v1762_v12  ;;  %1380 = vpow2.f32 %v1217_v17  ;;  %vm520_vm1 = vweird.f32 %v1774_v38 }
  0x7f   : > { %v1371_v41 = vpop.eup %1370  ;;  %v485_v19 = vmul.f32 %v1778_v18, %v1764_v60  ;;  %1382 = vrcp.f32 %v1783_v20  ;;  %vm1817_vm2 = vmor %vm519_vm0, %vm520_vm1  ;;  %vm490_vm4 = vweird.f32 %v1778_v18  ;;  %vm1028_vm1 = vcmask 523264  }
  0x80   : > { %v516_v23 = vsub.f32 1.0, %v515_v34  ;;  %v1791_v49 = vpop.eup %1372  ;;  %1384 = vpow2.f32 %v1216_v9  ;;  %v1794_v31 = vadd.f32 1.0, %v1371_v41  ;;  %vm1853_vm6 = vmor %vm489_vm3, %vm490_vm4  ;;  %v540_v41 = vand.u32 2147483648, %v1776_v56 }
  0x81   : > { %v1375_v33 = vpop.eup %1374  ;;  %1386 = vpow2.f32 %v1220_v46  ;;  %v486_v37 = vsub.f32 1.0, %v485_v19  ;;  %v545_v40 = vmul.f32 %v1791_v49, %v1768_v14  ;;  %vm550_vm9 = vweird.f32 %v1791_v49 }
  0x82   : > { %v1377_v35 = vpop.eup %1376  ;;  %1388 = vpow2.f32 %v1219_v21  ;;  %v517_v36 = vmul.f32 %v1774_v38, %v516_v23  ;;  %v1830_v62 = vadd.f32 1.0, %v1375_v33  ;;  %vm1891_vm13 = vmor %vm549_vm8, %vm550_vm9  ;;  %v538_v19 = vand.u32 2147483647, %v1776_v56 }
  0x83   : > { %v1799_v39 = vpop.eup %1378  ;;  %1390 = vrcp.f32 %v1794_v31  ;;  %v487_v48 = vmul.f32 %v1778_v18, %v486_v37  ;;  %v546_v52 = vsub.f32 1.0, %v545_v40  ;;  %v1874_v15 = vadd.f32 1.0, %v1377_v35 }
  0x84   : > { %v1381_v3 = vpop.eup %1380  ;;  %1392 = vpow2.f32 %v1222_v28  ;;  %v530_v43 = vmul.f32 %v1799_v39, %v1776_v56  ;;  %v518_v47 = vadd.f32 %v1774_v38, %v517_v36  ;;  %vm535_vm12 = vweird.f32 %v1799_v39 }
  0x85   : > { %v1806_v22 = vpop.eup %1382  ;;  %1394 = vpow2.f32 %v1215_v24  ;;  %v1845_v4 = vadd.f32 %v1778_v18, %v487_v48  ;;  %v547_v10 = vmul.f32 %v1791_v49, %v546_v52  ;;  %v510_v14 = vand.u32 2147483648, %v1783_v20  ;;  %vm1909_vm0 = vmor %vm534_vm11, %vm535_vm12 }
  0x86   : > { %v1385_v44 = vpop.eup %1384  ;;  %1396 = vpow2.f32 %v1218_v32  ;;  %v500_v57 = vmul.f32 %v1806_v22, %v1783_v20  ;;  %v531_v61 = vsub.f32 1.0, %v530_v43  ;;  %v522_v2 = vsel %vm1817_vm2, %v1774_v38, %v518_v47 }
  0x87   : > { %v1815_v50 = vpop.eup %1386  ;;  %1398 = vpow2.f32 %v1221_v45  ;;  %v1871_v60 = vsel %vm1834_vm5, %v526_v0, %v522_v2  ;;  %v492_v16 = vsel %vm1853_vm6, %v1778_v18, %v1845_v4  ;;  %v548_v34 = vadd.f32 %v1791_v49, %v547_v10 }
  0x88   : > { %v1825_v58 = vpop.eup %1388  ;;  %v501_v29 = vsub.f32 1.0, %v500_v57  ;;  %1400 = vrcp.f32 %v1830_v62  ;;  %v532_v30 = vmul.f32 %v1799_v39, %v531_v61  ;;  %vm505_vm15 = vweird.f32 %v1806_v22 }
  0x89   : > { %v1832_v53 = vpop.eup %1390  ;;  %1402 = vrcp.f32 %v1874_v15  ;;  %v1898_v18 = vadd.f32 1.0, %v1381_v3  ;;  %v1905_v28 = vadd.f32 1.0, %v1385_v44  ;;  %v508_v32 = vand.u32 2147483647, %v1783_v20  ;;  %vm1924_vm2 = vmor %vm504_vm14, %vm505_vm15 }
  0x8a   : > { %v1839_v13 = vpop.eup %1392  ;;  %v560_v5 = vmul.f32 %v1832_v53, %v1794_v31  ;;  %v502_v17 = vmul.f32 %v1806_v22, %v501_v29  ;;  %v533_v23 = vadd.f32 %v1799_v39, %v532_v30  ;;  %v552_v56 = vsel %vm1891_vm13, %v1791_v49, %v548_v34 }
  0x8b   : > { %v1395_v6 = vpop.eup %1394  ;;  %v541_v37 = vor.u32 1.1754944e-38, %v540_v41  ;;  %vm564_vm3 = vweird.f32 %v1794_v31  ;;  %vm565_vm4 = vweird.f32 %v1832_v53  ;;  %v568_v3 = vand.u32 2147483647, %v1794_v31 }
  0x8c   : > { %v1397_v26 = vpop.eup %1396  ;;  %v561_v38 = vsub.f32 1.0, %v560_v5  ;;  %v1881_v9 = vadd.f32 1.0, %v1395_v6  ;;  %v503_v35 = vadd.f32 %v1806_v22, %v502_v17  ;;  %v570_v54 = vand.u32 2147483648, %v1794_v31  ;;  %vm1955_vm8 = vmor %vm564_vm3, %vm565_vm4 }
  0x8d   : > { %v1900_v21 = vpop.eup %1398  ;;  %v537_v20 = vsel %vm1909_vm0, %v1799_v39, %v533_v23  ;;  %vm539_vm5 = vcmp.eq.f32.partialorder %v538_v19, 8.507059e+37  ;;  %v511_v42 = vor.u32 1.1754944e-38, %v510_v14  ;;  %vm509_vm6 = vcmp.eq.f32.partialorder %v508_v32, 8.507059e+37 }
  0x8e   : > { %v1907_v33 = vpop.eup %1400  ;;  %v562_v36 = vmul.f32 %v1832_v53, %v561_v38  ;;  %1404 = vrcp.f32 %v1881_v9  ;;  %v507_v44 = vsel %vm1924_vm2, %v1806_v22, %v503_v35  ;;  %v1945_v47 = vadd.f32 1.0, %v1397_v26 }
  0x8f   : > { %v590_v49 = vmul.f32 %v1907_v33, %v1830_v62  ;;  %1406 = vrcp.f32 %v1898_v18  ;;  %v1939_v43 = vpop.eup %1402  ;;  %v497_v48 = vsel %vm1858_vm7, %v496_v25, %v492_v16  ;;  %v557_v39 = vsel %vm1864_vm10, %v556_v27, %v552_v56 }
  0x90   : > { %1408 = vrcp.f32 %v1905_v28  ;;  %v563_v45 = vadd.f32 %v1832_v53, %v562_v36  ;;  %v600_v22 = vand.u32 2147483648, %v1830_v62  ;;  %v575_v51 = vmul.f32 %v1939_v43, %v1874_v15 }
  0x91   : > { %v542_v57 = vsel %vm539_vm5, %v541_v37, %v537_v20  ;;  %vm1964_vm7 = vcmp.eq.f32.partialorder %v568_v3, 8.507059e+37  ;;  %v571_v59 = vor.u32 1.1754944e-38, %v570_v54  ;;  %v591_v63 = vsub.f32 1.0, %v590_v49 }
  0x92   : > { %v512_v0 = vsel %vm509_vm6, %v511_v42, %v507_v44  ;;  %vm594_vm9 = vweird.f32 %v1830_v62  ;;  %v598_v31 = vand.u32 2147483647, %v1830_v62  ;;  %v585_v1 = vand.u32 2147483648, %v1874_v15 }
  0x93   : > { %v567_v2 = vsel %vm1955_vm8, %v1832_v53, %v563_v45  ;;  %v576_v4 = vsub.f32 1.0, %v575_v51  ;;  %1410 = vrcp.f32 %v1945_v47  ;;  %v1981_v7 = vor.u32 1.1754944e-38, %v600_v22 }
  0x94   : > { %v1962_v52 = vpop.eup %1404  ;;  %vm579_vm10 = vweird.f32 %v1874_v15  ;;  %v583_v25 = vand.u32 2147483647, %v1874_v15  ;;  %v592_v11 = vmul.f32 %v1907_v33, %v591_v63  ;;  %vm609_vm11 = vweird.f32 %v1881_v9 }
  0x95   : > { %v1971_v61 = vpop.eup %1406  ;;  %v605_v29 = vmul.f32 %v1962_v52, %v1881_v9  ;;  %v1991_v12 = vadd.f32 1.0, %v1815_v50  ;;  %v1995_v30 = vsel %vm1964_vm7, %v571_v59, %v567_v2  ;;  %vm595_vm12 = vweird.f32 %v1907_v33 }
  0x96   : > { %v1979_v5 = vpop.eup %1408  ;;  %v635_v10 = vmul.f32 %v1971_v61, %v1898_v18  ;;  %v586_v16 = vor.u32 1.1754944e-38, %v585_v1  ;;  %vm1999_vm13 = vcmp.eq.f32.partialorder %v598_v31, 8.507059e+37  ;;  %v577_v38 = vmul.f32 %v1939_v43, %v576_v4  ;;  %vm2022_vm0 = vmor %vm594_vm9, %vm595_vm12 }
  0x97   : > { %v606_v34 = vsub.f32 1.0, %v605_v29  ;;  %v620_v50 = vmul.f32 %v1979_v5, %v1905_v28  ;;  %vm2007_vm14 = vcmp.eq.f32.partialorder %v583_v25, 8.507059e+37  ;;  %v613_v23 = vand.u32 2147483647, %v1881_v9 }
  0x98   : > { %v615_v19 = vand.u32 2147483648, %v1881_v9  ;;  %v636_v14 = vsub.f32 1.0, %v635_v10  ;;  %v593_v32 = vadd.f32 %v1907_v33, %v592_v11  ;;  %vm580_vm15 = vweird.f32 %v1939_v43 }
  0x99   : > { %v2013_v24 = vpop.eup %1410  ;;  %1412 = vrcp.f32 %v1991_v12  ;;  %vm610_vm2 = vweird.f32 %v1962_v52  ;;  %vm639_vm3 = vweird.f32 %v1898_v18  ;;  %v621_v37 = vsub.f32 1.0, %v620_v50  ;;  %vm2036_vm4 = vmor %vm579_vm10, %vm580_vm15 }
  0x9a   : > { %v2029_v40 = vadd.f32 1.0, %v1825_v58  ;;  %v578_v54 = vadd.f32 %v1939_v43, %v577_v38  ;;  %v607_v49 = vmul.f32 %v1962_v52, %v606_v34  ;;  %v643_v20 = vand.u32 2147483647, %v1898_v18  ;;  %vm2065_vm7 = vmor %vm609_vm11, %vm610_vm2 }
  0x9b   : > { %v637_v44 = vmul.f32 %v1971_v61, %v636_v14  ;;  %v645_v45 = vand.u32 2147483648, %v1898_v18  ;;  %vm624_vm5 = vweird.f32 %v1905_v28  ;;  %v650_v58 = vmul.f32 %v2013_v24, %v1945_v47 }
  0x9c   : > { %v597_v15 = vsel %vm2022_vm0, %v1907_v33, %v593_v32  ;;  %vm640_vm6 = vweird.f32 %v1971_v61  ;;  %v622_v55 = vmul.f32 %v1979_v5, %v621_v37  ;;  %vm625_vm8 = vweird.f32 %v1979_v5 }
  0x9d   : > { %v608_v31 = vadd.f32 %v1962_v52, %v607_v49  ;;  %v628_v33 = vand.u32 2147483647, %v1905_v28  ;;  %v638_v2 = vadd.f32 %v1971_v61, %v637_v44  ;;  %v630_v4 = vand.u32 2147483648, %v1905_v28  ;;  %vm2079_vm10 = vmor %vm639_vm3, %vm640_vm6 }
  0x9e   : > { %v651_v29 = vsub.f32 1.0, %v650_v58  ;;  %vm2071_vm9 = vcmp.eq.f32.partialorder %v613_v23, 8.507059e+37  ;;  %v616_v25 = vor.u32 1.1754944e-38, %v615_v19  ;;  %v2084_v10 = vadd.f32 1.0, %v1900_v21  ;;  %vm2105_vm12 = vmor %vm624_vm5, %vm625_vm8 }
  0x9f   : > { %v2052_v59 = vpop.eup %1412  ;;  %vm2089_vm11 = vcmp.eq.f32.partialorder %v643_v20, 8.507059e+37  ;;  %v623_v11 = vadd.f32 %v1979_v5, %v622_v55  ;;  %v612_v21 = vsel %vm2065_vm7, %v1962_v52, %v608_v31  ;;  %1414 = vrcp.f32 %v2029_v40 }
  0xa0   : > { %v680_v18 = vmul.f32 %v2052_v59, %v1991_v12  ;;  %v631_v52 = vor.u32 1.1754944e-38, %v630_v4  ;;  %v652_v50 = vmul.f32 %v2013_v24, %v651_v29  ;;  %1416 = vrcp.f32 %v2084_v10 }
  0xa1   : > { %vm655_vm15 = vweird.f32 %v2013_v24  ;;  %v660_v32 = vand.u32 2147483648, %v1945_v47  ;;  %vm684_vm3 = vweird.f32 %v1991_v12  ;;  %v688_v55 = vand.u32 2147483647, %v1991_v12 }
  0xa2   : > { %v681_v19 = vsub.f32 1.0, %v680_v18  ;;  %v653_v37 = vadd.f32 %v2013_v24, %v652_v50  ;;  %vm669_vm5 = vweird.f32 %v2029_v40  ;;  %v705_v50 = vand.u32 2147483648, %v2084_v10 }
  0xb2   : > { %v969_v6 = vpop.permute.xlu1 %968 }
  0xb3   : > { %v1014_v53 = vmul.f32 %v969_v6, %v1871_v60  ;;  %v965_v26 = vpop.permute.xlu0 %964 }
  0xb4   : > { %v1012_v27 = vmul.f32 %v965_v26, %v497_v48  ;;  %v973_v36 = vpop.permute.xlu2 %972 }
  0xb5   : > { %v1030_v17 = vsel %vm1028_vm1, %v1014_v53, 0.0  ;;  %v1016_v3 = vmul.f32 %v973_v36, %v557_v39  ;;  %v602_v53 = vsel %vm1999_vm13, %v1981_v7, %v597_v15  ;;  %vm2113_vm13 = vcmp.eq.f32.partialorder %v628_v33, 8.507059e+37 }
  0xb6   : > { %v1029_v41 = vsel %vm1028_vm1, %v1012_v27, 0.0 }
  0xb7   : > { %v1031_v35 = vadd.f32 %v1030_v17, %v1029_v41  ;;  %v1032_v48 = vsel %vm1028_vm1, %v1016_v3, 0.0  ;;  %v646_v17 = vor.u32 1.1754944e-38, %v645_v45  ;;  %v2131_v3 = vpop.eup %1414  ;;  %v682_v45 = vmul.f32 %v2052_v59, %v681_v19 }
  0xb8   : > { %v665_v58 = vmul.f32 %v2131_v3, %v2029_v40  ;;  %vm670_vm6 = vweird.f32 %v2131_v3 }
  0xb9   : > { %v1033_v22 = vadd.f32 %v1032_v48, %v1031_v35  ;;  %v2151_v48 = vpop.eup %1416  ;;  %v683_v33 = vadd.f32 %v2052_v59, %v682_v45  ;;  %vm2185_vm7 = vmor %vm669_vm5, %vm670_vm6 }
  0xba   : > { %v971_v62 = vpop.permute.xlu1 %970  ;;  %v666_v15 = vsub.f32 1.0, %v665_v58 }
  0xbb   : > { %v1015_v39 = vmul.f32 %v971_v62, %v542_v57  ;;  %v967_v8 = vpop.permute.xlu0 %966  ;;  %v582_v57 = vsel %vm2036_vm4, %v1939_v43, %v578_v54  ;;  %v2144_v62 = vadd.f32 1.0, %v1839_v13  ;;  %vm685_vm4 = vweird.f32 %v2052_v59 }
  0xbc   : > { %v1013_v51 = vmul.f32 %v967_v8, %v512_v0  ;;  %v587_v27 = vsel %vm2007_vm14, %v586_v16, %v582_v57  ;;  %v642_v16 = vsel %vm2079_vm10, %v1971_v61, %v638_v2  ;;  %vm654_vm14 = vweird.f32 %v1945_v47  ;;  %vm2174_vm8 = vmor %vm684_vm3, %vm685_vm4 }
  0xbd   : > { %v1045_v63 = vsel %vm1028_vm1, %v1015_v39, 0.0  ;;  %v627_v61 = vsel %vm2105_vm12, %v1979_v5, %v623_v11  ;;  %v617_v5 = vsel %vm2071_vm9, %v616_v25, %v612_v21  ;;  %v647_v49 = vsel %vm2089_vm11, %v646_v17, %v642_v16  ;;  %vm2139_vm0 = vmor %vm654_vm14, %vm655_vm15 }
  0xbe   : > { %v1044_v1 = vsel %vm1028_vm1, %v1013_v51, 0.0  ;;  %v975_v60 = vpop.permute.xlu2 %974  ;;  %v632_v44 = vsel %vm2113_vm13, %v631_v52, %v627_v61  ;;  %v661_v39 = vor.u32 1.1754944e-38, %v660_v32  ;;  %1418 = vrcp.f32 %v2144_v62 }
  0xbf   : > { %v1046_v43 = vadd.f32 %v1045_v63, %v1044_v1  ;;  %v1017_v28 = vmul.f32 %v975_v60, %v1995_v30  ;;  %v658_v30 = vand.u32 2147483647, %v1945_v47  ;;  %v657_v8 = vsel %vm2139_vm0, %v2013_v24, %v653_v37 }
  0xc0   : > { %v690_v63 = vand.u32 2147483648, %v1991_v12  ;;  %v673_v57 = vand.u32 2147483647, %v2029_v40  ;;  %v667_v24 = vmul.f32 %v2131_v3, %v666_v15  ;;  %v675_v2 = vand.u32 2147483648, %v2029_v40 }
  0xc1   : > { %v1047_v14 = vsel %vm1028_vm1, %v1017_v28, 0.0  ;;  %vm2153_vm2 = vcmp.eq.f32.partialorder %v658_v30, 8.507059e+37  ;;  %v687_v18 = vsel %vm2174_vm8, %v2052_v59, %v683_v33  ;;  %vm689_vm9 = vcmp.eq.f32.partialorder %v688_v55, 8.507059e+37 }
  0xc2   : > { %v979_v38 = vpop.permute.xlu1 %978  ;;  %v1048_v36 = vadd.f32 %v1047_v14, %v1046_v43  ;;  %v668_v6 = vadd.f32 %v2131_v3, %v667_v24  ;;  %v662_v26 = vsel %vm2153_vm2, %v661_v39, %v657_v8  ;;  %v691_v12 = vor.u32 1.1754944e-38, %v690_v63 }
  0xc3   : > { %v1019_v41 = vmul.f32 %v979_v38, %v602_v53  ;;  %v977_v46 = vpop.permute.xlu0 %976  ;;  %vm2192_vm10 = vcmp.eq.f32.partialorder %v673_v57, 8.507059e+37  ;;  %v676_v40 = vor.u32 1.1754944e-38, %v675_v2  ;;  %vm699_vm11 = vweird.f32 %v2084_v10 }
  0xc4   : > { %v1018_v23 = vmul.f32 %v977_v46, %v587_v27  ;;  %v1419_v25 = vpop.eup %1418  ;;  %v672_v16 = vsel %vm2185_vm7, %v2131_v3, %v668_v6  ;;  %v692_v34 = vsel %vm689_vm9, %v691_v12, %v687_v18  ;;  %vm700_vm12 = vweird.f32 %v2151_v48 }
  0xc5   : > { %v1049_v35 = vsel %vm1028_vm1, %v1019_v41, 0.0  ;;  %v710_v21 = vmul.f32 %v1419_v25, %v2144_v62  ;;  %v703_v52 = vand.u32 2147483647, %v2084_v10  ;;  %vm714_vm13 = vweird.f32 %v2144_v62  ;;  %vm2221_vm15 = vmor %vm699_vm11, %vm700_vm12 }
  0xc6   : > { %v1034_v56 = vsel %vm1028_vm1, %v1018_v23, 0.0  ;;  %v1050_v42 = vadd.f32 %v1049_v35, %v1048_v36  ;;  %vm715_vm14 = vweird.f32 %v1419_v25  ;;  %v677_v46 = vsel %vm2192_vm10, %v676_v40, %v672_v16 }
  0xc7   : > { %v1035_v54 = vadd.f32 %v1034_v56, %v1033_v22  ;;  %v695_v22 = vmul.f32 %v2151_v48, %v2084_v10  ;;  %v711_v59 = vsub.f32 1.0, %v710_v21  ;;  %v720_v61 = vand.u32 2147483648, %v2144_v62  ;;  %vm2226_vm0 = vmor %vm714_vm13, %vm715_vm14 }
  0xc8   : > { %v981_v29 = vpop.permute.xlu2 %980  ;;  %v718_v32 = vand.u32 2147483647, %v2144_v62  ;;  %vm704_vm2 = vcmp.eq.f32.partialorder %v703_v52, 8.507059e+37  ;;  %vm1070_vm4 = vcmask 516096  }
  0xc9   : > { %v696_v4 = vsub.f32 1.0, %v695_v22  ;;  %v1020_v9 = vmul.f32 %v981_v29, %v617_v5  ;;  %v712_v41 = vmul.f32 %v1419_v25, %v711_v59  ;;  %v706_v5 = vor.u32 1.1754944e-38, %v705_v50 }
  0xca   : > { %v985_v13 = vpop.permute.xlu1 %984  ;;  %vm719_vm3 = vcmp.eq.f32.partialorder %v718_v32, 8.507059e+37 }
  0xcb   : > { %v983_v51 = vpop.permute.xlu0 %982  ;;  %v1022_v1 = vmul.f32 %v985_v13, %v647_v49  ;;  %v1036_v17 = vsel %vm1028_vm1, %v1020_v9, 0.0  ;;  %v697_v60 = vmul.f32 %v2151_v48, %v696_v4  ;;  %v713_v30 = vadd.f32 %v1419_v25, %v712_v41 }
  0xcc   : > { %v1021_v31 = vmul.f32 %v983_v51, %v632_v44  ;;  %v1037_v38 = vadd.f32 %v1036_v17, %v1035_v54 }
  0xcd   : > { %v1038_v7 = vsel %vm1028_vm1, %v1022_v1, 0.0  ;;  %v698_v23 = vadd.f32 %v2151_v48, %v697_v60  ;;  %v717_v45 = vsel %vm2226_vm0, %v1419_v25, %v713_v30 }
  0xce   : > { %v1051_v43 = vsel %vm1028_vm1, %v1021_v31, 0.0  ;;  %v1039_v28 = vadd.f32 %v1038_v7, %v1037_v38 }
  0xcf   : > { %v1052_v53 = vadd.f32 %v1051_v43, %v1050_v42  ;;  %v702_v20 = vsel %vm2221_vm15, %v2151_v48, %v698_v23  ;;  %v721_v42 = vor.u32 1.1754944e-38, %v720_v61 }
  0xd0   : > { %v987_v19 = vpop.permute.xlu2 %986  ;;  %v707_v39 = vsel %vm704_vm2, %v706_v5, %v702_v20 }
  0xd1   : > { %v1023_v36 = vmul.f32 %v987_v19, %v662_v26  ;;  %v722_v13 = vsel %vm719_vm3, %v721_v42, %v717_v45 }
  0xd2   : > { %v991_v14 = vpop.permute.xlu1 %990 }
  0xd3   : > { %v1025_v56 = vmul.f32 %v991_v14, %v692_v34  ;;  %v989_v37 = vpop.permute.xlu0 %988  ;;  %v1053_v10 = vsel %vm1028_vm1, %v1023_v36, 0.0 }
  0xd4   : > { %v1024_v54 = vmul.f32 %v989_v37, %v677_v46  ;;  %v1054_v62 = vadd.f32 %v1053_v10, %v1052_v53 }
  0xd5   : > { %v1055_v49 = vsel %vm1028_vm1, %v1025_v56, 0.0 }
  0xd6   : > { %v1040_v44 = vsel %vm1028_vm1, %v1024_v54, 0.0  ;;  %v1056_v47 = vadd.f32 %v1055_v49, %v1054_v62 }
  0xd7   : > { %v1041_v58 = vadd.f32 %v1040_v44, %v1039_v28 }
  0xd8   : > { %v993_v8 = vpop.permute.xlu2 %992 }
  0xd9   : > { %v1026_v15 = vmul.f32 %v993_v8, %v707_v39 }
  0xdb   : > { %v995_v22 = vpop.permute.xlu0 %994  ;;  %v1042_v51 = vsel %vm1028_vm1, %v1026_v15, 0.0 }
  0xdc   : > { %v1027_v48 = vmul.f32 %v995_v22, %v722_v13  ;;  %v1043_v55 = vadd.f32 %v1042_v51, %v1041_v58 }
  0xde   : > { %v1057_v63 = vsel %vm1028_vm1, %v1027_v48, 0.0  ;;  %1059 = vst.msk [vmem:[%s340_s24] sm:$0xff] %vm1028_vm1, %v1043_v55  ;;  %v1072_v31 = vmul.f32 %v1043_v55, %v1043_v55  ;;  %v1061_v33 = vsel %vm1028_vm1, %v1043_v55, 0.0 }
  0xdf   : > { %v1058_v57 = vadd.f32 %v1057_v63, %v1056_v47 }
  0xe0   : > { %v1074_v2 = vsel %vm1028_vm1, %v1072_v31, 0.0 }
  0xe1   : > { %1060 = vst.msk [vmem:[%s340_s24 + $0x8] sm:$0xff] %vm1028_vm1, %v1058_v57  ;;  %v1062_v24 = vsel %vm1028_vm1, %v1058_v57, 0.0  ;;  %v1073_v1 = vmul.f32 %v1058_v57, %v1058_v57 }
  0xe2   : > { %v1063_v0 = vadd.f32 %v1062_v24, %v1061_v33 }
  0xe3   : > { %v1075_v4 = vsel %vm1028_vm1, %v1073_v1, 0.0 }
  0xe4   : > { %v1064_v29 = vrot.slane %v1063_v0, 4  ;;  %v1076_v43 = vadd.f32 %v1075_v4, %v1074_v2 }
  0xe6   : > { %v1065_v6 = vadd.f32 %v1064_v29, %v1063_v0  ;;  %v1077_v25 = vrot.slane %v1076_v43, 4 }
  0xe8   : > { %v1066_v9 = vrot.slane %v1065_v6, 2  ;;  %v1078_v53 = vadd.f32 %v1077_v25, %v1076_v43 }
  0xea   : > { %v1067_v26 = vadd.f32 %v1066_v9, %v1065_v6  ;;  %v1079_v12 = vrot.slane %v1078_v53, 2 }
  0xec   : > { %v1068_v11 = vrot.slane %v1067_v26, 1  ;;  %v1080_v18 = vadd.f32 %v1079_v12, %v1078_v53 }
  0xee   : > { %v1069_v27 = vadd.f32 %v1068_v11, %v1067_v26  ;;  %v1081_v21 = vrot.slane %v1080_v18, 1 }
  0xf0   : > { %1071 = vst.msk [vmem:[%s344_s28] sm:$0x1] %vm1070_vm4, %v1069_v27  ;;  %v1082_v17 = vadd.f32 %v1081_v21, %v1080_v18 }
  0xf2   : > { %1083 = vst.msk [vmem:[%s347_s6] sm:$0x1] %vm1070_vm4, %v1082_v17 }
  0xf3 PF: > { %p13_p10 = scmp.ge.s32.totalorder %s1494_s22, 4   ;;  %s2354_s18 = smov %s1438_s19 }
  0xf4   : > { %s2355_s19 = smov %s1503_s25  ;;  %s2356_s20 = smov %s1494_s22 }
  0xf5   :  { %15 = sbr.rel (!%p13_p10) target bundleno = 2 (0x2), region = 132 }

// kernel: graphnet_forward.21
= control target key start
LH: loop header
LB: loop body
LE: loop exit
PB: predicated region body
PF: predicated region fallthrough
CT: control target
= control target key end

     0   :  { %vm54_vm0 = vcmask 261120   ;;  %vm185_vm1 = vcmask 1040384   ;;  %vm104_vm3 = vcmask 523264   ;;  %vm181_vm5 = vcmask 138240   ;;  %s3746_s1 = inlined_call_operand.vmem [shape: f32[32,64], index: 1, kind: input, shape index: {}]   ;;  %s3747_s0 = inlined_call_operand.vmem [shape: f32[2,32], index: 0, kind: input, shape index: {}]   ;;  %s3748_s4 = inlined_call_operand.vmem [shape: f32[1,128], index: 4, kind: input, shape index: {}]   ;;  %s3749_s3 = inlined_call_operand.vmem [shape: f32[64,128], index: 3, kind: input, shape index: {}]   ;;  %s3750_s6 = inlined_call_operand.vmem [shape: f32[17,200], index: 6, kind: input, shape index: {}]   ;;  %s3751_s5 = inlined_call_operand.vmem [shape: f32[128,200], index: 5, kind: input, shape index: {}]   ;;  %s3752_s2 = inlined_call_operand.vmem [shape: f32[2,17], index: 2, kind: input, shape index: {}]   ;;  %s3753_s8 = inlined_call_operand.vmem [shape: f32[200,400], index: 8, kind: input, shape index: {}]   ;;  %s3754_s7 = inlined_call_operand.vmem [shape: f32[1,200], index: 7, kind: input, shape index: {}]   ;;  %s3755_s10 = inlined_call_operand.vmem [shape: f32[400,800], index: 10, kind: input, shape index: {}]   ;;  %s3756_s9 = inlined_call_operand.vmem [shape: f32[1,400], index: 9, kind: input, shape index: {}]   ;;  %s3757_s12 = inlined_call_operand.vmem [shape: f32[800,1], index: 12, kind: input, shape index: {}]   ;;  %s3758_s11 = inlined_call_operand.vmem [shape: f32[1,800], index: 11, kind: input, shape index: {}]   ;;  %s3759_s13 = inlined_call_operand.<no memory space> [shape: f32[1,1], index: 13, kind: input, shape index: {}]   ;;  %s3760_s14 = inlined_call_operand.vmem [shape: f32[2,1], index: 14, kind: output, shape index: {}]  }
   0x1   :  { %v53_v0 = vld [vmem:[%s3746_s1 + $0x18] sm:$0xff]  ;;  %v52_v1 = vld [vmem:[%s3746_s1 + $0x10] sm:$0xff]  ;;  %v51_v2 = vld [vmem:[%s3746_s1 + $0x8] sm:$0xff]  ;;  %vm392_vm8 = vcmask 588800   ;;  %vm926_vm9 = vcmask 130048   ;;  %vm1744_vm10 = vcmask 1024  }
   0x2   :  { %70 = vmatpush.msra.mxu1 %v53_v0  ;;  %v50_v3 = vld [vmem:[%s3746_s1] sm:$0xff]  ;;  %v99_v5 = vld [vmem:[%s3749_s3 + $0x38] sm:$0xff]  ;;  %v98_v6 = vld [vmem:[%s3749_s3 + $0x30] sm:$0xff] }
   0x3   :  { %v49_v4 = vld [vmem:[%s3747_s0] sm:$0x3]  ;;  %v97_v7 = vld [vmem:[%s3749_s3 + $0x28] sm:$0xff]  ;;  %v95_v9 = vld [vmem:[%s3749_s3 + $0x18] sm:$0xff] }
   0x4   :  { %71 = vmatpush.msra.mxu1 %v52_v1  ;;  %v96_v8 = vld [vmem:[%s3749_s3 + $0x20] sm:$0xff]  ;;  %v94_v10 = vld [vmem:[%s3749_s3 + $0x10] sm:$0xff]  ;;  %v93_v11 = vld [vmem:[%s3749_s3 + $0x8] sm:$0xff] }
   0x5   :  { %v92_v12 = vld [vmem:[%s3749_s3] sm:$0xff]  ;;  %v180_v14 = vld [vmem:[%s3750_s6 + $0x28] sm:$0x1]  ;;  %v177_v15 = vld [vmem:[%s3750_s6 + $0x10] sm:$0xff] }
   0x6   :  { %72 = vmatpush.msra.mxu1 %v51_v2  ;;  %v179_v13 = vld [vmem:[%s3750_s6 + $0x20] sm:$0x1]  ;;  %1754 = vmatpush.msk.msra.mxu3 %vm185_vm1, %v180_v14  ;;  %v178_v16 = vld [vmem:[%s3750_s6 + $0x18] sm:$0xff]  ;;  %v176_v18 = vld [vmem:[%s3750_s6 + $0x8] sm:$0xff] }
   0x7   :  { %1752 = vmatpush.msk.msra.mxu2 %vm185_vm1, %v179_v13  ;;  %v175_v17 = vld [vmem:[%s3750_s6] sm:$0xff]  ;;  %v172_v19 = vld [vmem:[%s3751_s5 + $0xf0] sm:$0xff]  ;;  %v173_v20 = vld [vmem:[%s3751_s5 + $0xf8] sm:$0xff] }
   0x8   :  { %73 = vmatpush.msra.mxu1 %v50_v3  ;;  %226 = vmatpush.msra.mxu3 %v178_v16  ;;  %v170_v21 = vld [vmem:[%s3751_s5 + $0xe0] sm:$0xff]  ;;  %v171_v22 = vld [vmem:[%s3751_s5 + $0xe8] sm:$0xff]  ;;  %v168_v36 = vld [vmem:[%s3751_s5 + $0xd0] sm:$0xff] }
   0x9   :  { %1750 = vmatmul.msk.f32.vlgmr.msra.gmra.mxu1 %vm54_vm0, %v49_v4  ;;  %206 = vmatpush.msra.mxu2 %v177_v15  ;;  %v169_v37 = vld [vmem:[%s3751_s5 + $0xd8] sm:$0xff]  ;;  %v166_v38 = vld [vmem:[%s3751_s5 + $0xc0] sm:$0xff]  ;;  %v167_v39 = vld [vmem:[%s3751_s5 + $0xc8] sm:$0xff] }
   0xa   :  { %116 = vmatpush.msrb.mxu1 %v99_v5  ;;  %227 = vmatpush.msra.mxu3 %v176_v18  ;;  %v164_v40 = vld [vmem:[%s3751_s5 + $0xb0] sm:$0xff]  ;;  %v165_v41 = vld [vmem:[%s3751_s5 + $0xb8] sm:$0xff]  ;;  %v162_v42 = vld [vmem:[%s3751_s5 + $0xa0] sm:$0xff] }
   0xb   :  { %207 = vmatpush.msra.mxu2 %v175_v17  ;;  %v163_v43 = vld [vmem:[%s3751_s5 + $0xa8] sm:$0xff]  ;;  %v160_v44 = vld [vmem:[%s3751_s5 + $0x90] sm:$0xff]  ;;  %v161_v45 = vld [vmem:[%s3751_s5 + $0x98] sm:$0xff] }
   0xc   :  { %117 = vmatpush.msrb.mxu1 %v98_v6  ;;  %252 = vmatpush.msrb.mxu3 %v173_v20  ;;  %v158_v46 = vld [vmem:[%s3751_s5 + $0x80] sm:$0xff]  ;;  %v159_v47 = vld [vmem:[%s3751_s5 + $0x88] sm:$0xff]  ;;  %v156_v48 = vld [vmem:[%s3751_s5 + $0x70] sm:$0xff] }
   0xd   :  { %232 = vmatpush.msrb.mxu2 %v172_v19  ;;  %v157_v49 = vld [vmem:[%s3751_s5 + $0x78] sm:$0xff]  ;;  %v154_v50 = vld [vmem:[%s3751_s5 + $0x60] sm:$0xff]  ;;  %v155_v51 = vld [vmem:[%s3751_s5 + $0x68] sm:$0xff] }
   0xe   :  { %118 = vmatpush.msrb.mxu1 %v97_v7  ;;  %253 = vmatpush.msrb.mxu3 %v171_v22  ;;  %v174_v52 = vld [vmem:[%s3752_s2] sm:$0x3]  ;;  %v152_v53 = vld [vmem:[%s3751_s5 + $0x50] sm:$0xff]  ;;  %v153_v54 = vld [vmem:[%s3751_s5 + $0x58] sm:$0xff] }
   0xf   :  { %233 = vmatpush.msrb.mxu2 %v170_v21  ;;  %1755 = vmatmul.msk.f32.vlgmr.msra.gmra.mxu3 %vm181_vm5, %v174_v52  ;;  %v150_v55 = vld [vmem:[%s3751_s5 + $0x40] sm:$0xff]  ;;  %v151_v56 = vld [vmem:[%s3751_s5 + $0x48] sm:$0xff]  ;;  %v148_v57 = vld [vmem:[%s3751_s5 + $0x30] sm:$0xff] }
  0x10   :  { %119 = vmatpush.msrb.mxu1 %v96_v8  ;;  %254 = vmatpush.msrb.mxu3 %v169_v37  ;;  %v149_v58 = vld [vmem:[%s3751_s5 + $0x38] sm:$0xff]  ;;  %v146_v59 = vld [vmem:[%s3751_s5 + $0x20] sm:$0xff]  ;;  %v147_v60 = vld [vmem:[%s3751_s5 + $0x28] sm:$0xff] }
  0x11   :  { %234 = vmatpush.msrb.mxu2 %v168_v36  ;;  %v144_v61 = vld [vmem:[%s3751_s5 + $0x10] sm:$0xff]  ;;  %v145_v62 = vld [vmem:[%s3751_s5 + $0x18] sm:$0xff]  ;;  %v142_v63 = vld [vmem:[%s3751_s5] sm:$0xff] }
  0x12   :  { %120 = vmatpush.msrb.mxu1 %v95_v9  ;;  %255 = vmatpush.msrb.mxu3 %v167_v39  ;;  %v143_v0 = vld [vmem:[%s3751_s5 + $0x8] sm:$0xff]  ;;  %v342_v1 = vld [vmem:[%s3753_s8 + $0x1e0] sm:$0xff]  ;;  %v344_v17 = vld [vmem:[%s3753_s8 + $0x1f0] sm:$0xff] }
  0x13   :  { %235 = vmatpush.msrb.mxu2 %v166_v38  ;;  %v338_v2 = vld [vmem:[%s3753_s8 + $0x1c0] sm:$0xff]  ;;  %396 = vmatpush.msra.mxu0 %v342_v1  ;;  %v379_v6 = vld [vmem:[%s3753_s8 + $0x308] sm:$0xff]  ;;  %v340_v19 = vld [vmem:[%s3753_s8 + $0x1d0] sm:$0xff] }
  0x14   :  { %121 = vmatpush.msrb.mxu1 %v94_v10  ;;  %256 = vmatpush.msrb.mxu3 %v165_v41  ;;  %v1768_v3 = vld [vmem:[%s3748_s4] ss:$0 sm:$0xff]  ;;  %v375_v8 = vld [vmem:[%s3753_s8 + $0x2e8] sm:$0xff]  ;;  %v324_v37 = vld [vmem:[%s3753_s8 + $0x150] sm:$0xff] }
  0x15   :  { %236 = vmatpush.msrb.mxu2 %v164_v40  ;;  %v378_v4 = vld [vmem:[%s3753_s8 + $0x300] sm:$0xff]  ;;  %397 = vmatpush.msra.mxu0 %v338_v2  ;;  %v367_v16 = vld [vmem:[%s3753_s8 + $0x2a8] sm:$0xff]  ;;  %v320_v41 = vld [vmem:[%s3753_s8 + $0x130] sm:$0xff] }
  0x16   :  { %122 = vmatpush.msrb.mxu1 %v93_v11  ;;  %257 = vmatpush.msrb.mxu3 %v163_v43  ;;  %v334_v5 = vld [vmem:[%s3753_s8 + $0x1a0] sm:$0xff]  ;;  %v371_v11 = vld [vmem:[%s3753_s8 + $0x2c8] sm:$0xff]  ;;  %v337_v1 = vld [vmem:[%s3753_s8 + $0x1b8] sm:$0xff] }
  0x17   :  { %237 = vmatpush.msrb.mxu2 %v162_v42  ;;  %v374_v7 = vld [vmem:[%s3753_s8 + $0x2e0] sm:$0xff]  ;;  %398 = vmatpush.msra.mxu0 %v334_v5  ;;  %v363_v22 = vld [vmem:[%s3753_s8 + $0x288] sm:$0xff]  ;;  %v333_v2 = vld [vmem:[%s3753_s8 + $0x198] sm:$0xff] }
  0x18   :  { %123 = vmatpush.msrb.mxu1 %v92_v12  ;;  %258 = vmatpush.msrb.mxu3 %v161_v45  ;;  %v370_v9 = vld [vmem:[%s3753_s8 + $0x2c0] sm:$0xff]  ;;  %v347_v39 = vld [vmem:[%s3753_s8 + $0x208] sm:$0xff]  ;;  %v376_v5 = vld [vmem:[%s3753_s8 + $0x2f0] sm:$0xff] }
  0x19   :  { %238 = vmatpush.msrb.mxu2 %v160_v44  ;;  %v330_v10 = vld [vmem:[%s3753_s8 + $0x180] sm:$0xff]  ;;  %v343_v40 = vld [vmem:[%s3753_s8 + $0x1e8] sm:$0xff] }
  0x1a   :  { %259 = vmatpush.msrb.mxu3 %v159_v47  ;;  %1753 = vmatmul.msk.f32.vlgmr.msra.gmra.mxu2 %vm181_vm5, %v174_v52  ;;  %v366_v13 = vld [vmem:[%s3753_s8 + $0x2a0] sm:$0xff]  ;;  %v339_v45 = vld [vmem:[%s3753_s8 + $0x1c8] sm:$0xff] }
  0x1b   :  { %239 = vmatpush.msrb.mxu2 %v158_v46  ;;  %423 = vmatpush.msra.mxu1 %v378_v4  ;;  %v326_v15 = vld [vmem:[%s3753_s8 + $0x160] sm:$0xff]  ;;  %v316_v46 = vld [vmem:[%s3753_s8 + $0x110] sm:$0xff] }
  0x1c   :  { %260 = vmatpush.msrb.mxu3 %v157_v49  ;;  %399 = vmatpush.msra.mxu0 %v330_v10  ;;  %v362_v18 = vld [vmem:[%s3753_s8 + $0x280] sm:$0xff]  ;;  %v335_v49 = vld [vmem:[%s3753_s8 + $0x1a8] sm:$0xff]  ;;  %v312_v4 = vld [vmem:[%s3753_s8 + $0xf0] sm:$0xff] }
  0x1d   :  { %240 = vmatpush.msrb.mxu2 %v156_v48  ;;  %424 = vmatpush.msra.mxu1 %v374_v7  ;;  %v322_v21 = vld [vmem:[%s3753_s8 + $0x140] sm:$0xff]  ;;  %v323_v7 = vld [vmem:[%s3753_s8 + $0x148] sm:$0xff]  ;;  %v325_v10 = vld [vmem:[%s3753_s8 + $0x158] sm:$0xff] }
  0x1e   :  { %261 = vmatpush.msrb.mxu3 %v155_v51  ;;  %400 = vmatpush.msra.mxu0 %v326_v15  ;;  %v346_v36 = vld [vmem:[%s3753_s8 + $0x200] sm:$0xff]  ;;  %v331_v51 = vld [vmem:[%s3753_s8 + $0x188] sm:$0xff] }
  0x1f   :  { %241 = vmatpush.msrb.mxu2 %v154_v50  ;;  %425 = vmatpush.msra.mxu1 %v370_v9  ;;  %v306_v38 = vld [vmem:[%s3753_s8 + $0xc0] sm:$0xff]  ;;  %v372_v9 = vld [vmem:[%s3753_s8 + $0x2d0] sm:$0xff]  ;;  %v315_v15 = vld [vmem:[%s3753_s8 + $0x108] sm:$0xff] }
  0x20   :  { %262 = vmatpush.msrb.mxu3 %v153_v54  ;;  %401 = vmatpush.msra.mxu0 %v322_v21  ;;  %v302_v43 = vld [vmem:[%s3753_s8 + $0xa0] sm:$0xff]  ;;  %v360_v21 = vld [vmem:[%s3753_s8 + $0x270] sm:$0xff] }
  0x21   :  { %242 = vmatpush.msrb.mxu2 %v152_v53  ;;  %426 = vmatpush.msra.mxu1 %v366_v13  ;;  %v298_v48 = vld [vmem:[%s3753_s8 + $0x80] sm:$0xff]  ;;  %v368_v13 = vld [vmem:[%s3753_s8 + $0x2b0] sm:$0xff] }
  0x22   :  { %263 = vmatpush.msrb.mxu3 %v151_v56  ;;  %v294_v50 = vld [vmem:[%s3753_s8 + $0x60] sm:$0xff] }
  0x23   :  { %243 = vmatpush.msrb.mxu2 %v150_v55  ;;  %427 = vmatpush.msra.mxu1 %v362_v18  ;;  %v290_v53 = vld [vmem:[%s3753_s8 + $0x40] sm:$0xff]  ;;  %v317_v18 = vld [vmem:[%s3753_s8 + $0x118] sm:$0xff] }
  0x24   :  { %264 = vmatpush.msrb.mxu3 %v149_v58  ;;  %v286_v55 = vld [vmem:[%s3753_s8 + $0x20] sm:$0xff] }
  0x25   :  { %244 = vmatpush.msrb.mxu2 %v148_v57 }
  0x26   :  { %265 = vmatpush.msrb.mxu3 %v147_v60 }
  0x27   :  { %245 = vmatpush.msrb.mxu2 %v146_v59  ;;  %v282_v59 = vld [vmem:[%s3753_s8] sm:$0xff] }
  0x28   :  { %266 = vmatpush.msrb.mxu3 %v145_v62  ;;  %v380_v62 = vld [vmem:[%s3753_s8 + $0x310] sm:$0xff] }
  0x29   :  { %246 = vmatpush.msrb.mxu2 %v144_v61  ;;  %v345_v61 = vld [vmem:[%s3753_s8 + $0x1f8] sm:$0xff] }
  0x2a   :  { %267 = vmatpush.msrb.mxu3 %v143_v0  ;;  %v341_v0 = vld [vmem:[%s3753_s8 + $0x1d8] sm:$0xff] }
  0x2b   :  { %247 = vmatpush.msrb.mxu2 %v142_v63 }
  0x2c   :  { %476 = vmatpush.msra.mxu3 %v344_v17  ;;  %v364_v17 = vld [vmem:[%s3753_s8 + $0x290] sm:$0xff] }
  0x2d   :  { %463 = vmatpush.msra.mxu2 %v379_v6  ;;  %v329_v6 = vld [vmem:[%s3753_s8 + $0x178] sm:$0xff] }
  0x2e   :  { %477 = vmatpush.msra.mxu3 %v340_v19  ;;  %v311_v19 = vld [vmem:[%s3753_s8 + $0xe8] sm:$0xff] }
  0x2f   :  { %464 = vmatpush.msra.mxu2 %v375_v8  ;;  %v308_v8 = vld [vmem:[%s3753_s8 + $0xd0] sm:$0xff] }
  0x31   :  { %465 = vmatpush.msra.mxu2 %v371_v11  ;;  %v319_v11 = vld [vmem:[%s3753_s8 + $0x128] sm:$0xff] }
  0x33   :  { %466 = vmatpush.msra.mxu2 %v367_v16  ;;  %v300_v16 = vld [vmem:[%s3753_s8 + $0x90] sm:$0xff] }
  0x35   :  { %467 = vmatpush.msra.mxu2 %v363_v22  ;;  %v313_v22 = vld [vmem:[%s3753_s8 + $0xf8] sm:$0xff] }
  0x86   :  { %v75_v23 = vpop.f32.mrf.mxu1 }
  0x87   :  { %v79_v24 = vmin.f32 %v75_v23, 20.0  ;;  %vm78_vm4 = vcmp.gt.f32.partialorder %v75_v23, 20.0 }
  0x89   :  { %v80_v25 = vmul.f32 1.442695, %v79_v24  ;;  %v336_v24 = vld [vmem:[%s3753_s8 + $0x1b0] sm:$0xff] }
  0x8a   :  { %478 = vmatpush.msra.mxu3 %v336_v24  ;;  %v292_v24 = vld [vmem:[%s3753_s8 + $0x50] sm:$0xff] }
  0x8b   :  { %1770 = vpow2.f32 %v80_v25 }
  0x91   :  { %v1771_v26 = vpop.eup %1770 }
  0x92   :  { %v82_v27 = vadd.f32 1.0, %v1771_v26  ;;  %v85_v28 = vmul.f32 -0.5, %v1771_v26  ;;  %v88_v30 = vand.u32 2147483647, %v1771_v26 }
  0x94   :  { %1772 = vlog2.f32 %v82_v27  ;;  %v86_v29 = vadd.f32 1.0, %v85_v28  ;;  %vm89_vm2 = vcmp.lt.f32.partialorder %v88_v30, 0.0004427343  ;;  %v359_v27 = vld [vmem:[%s3753_s8 + $0x268] sm:$0xff]  ;;  %v354_v28 = vld [vmem:[%s3753_s8 + $0x240] sm:$0xff] }
  0x95   :  { %v314_v30 = vld [vmem:[%s3753_s8 + $0x100] sm:$0xff]  ;;  %468 = vmatpush.msra.mxu2 %v359_v27  ;;  %v303_v27 = vld [vmem:[%s3753_s8 + $0xa8] sm:$0xff] }
  0x96   :  { %v87_v33 = vmul.f32 %v1771_v26, %v86_v29  ;;  %v318_v26 = vld [vmem:[%s3753_s8 + $0x120] sm:$0xff]  ;;  %v332_v29 = vld [vmem:[%s3753_s8 + $0x190] sm:$0xff] }
  0x97   :  { %402 = vmatpush.msra.mxu0 %v318_v26  ;;  %479 = vmatpush.msra.mxu3 %v332_v29  ;;  %v309_v26 = vld [vmem:[%s3753_s8 + $0xd8] sm:$0xff]  ;;  %v352_v29 = vld [vmem:[%s3753_s8 + $0x230] sm:$0xff] }
  0x99   :  { %403 = vmatpush.msra.mxu0 %v314_v30  ;;  %v305_v30 = vld [vmem:[%s3753_s8 + $0xb8] sm:$0xff] }
  0x9a   :  { %v1773_v31 = vpop.eup %1772 }
  0x9b   :  { %v84_v32 = vmul.f32 0.6931472, %v1773_v31  ;;  %v355_v31 = vld [vmem:[%s3753_s8 + $0x248] sm:$0xff] }
  0x9c   :  { %469 = vmatpush.msra.mxu2 %v355_v31  ;;  %v299_v31 = vld [vmem:[%s3753_s8 + $0x88] sm:$0xff] }
  0x9d   :  { %v90_v34 = vsel %vm89_vm2, %v87_v33, %v84_v32  ;;  %v350_v32 = vld [vmem:[%s3753_s8 + $0x220] sm:$0xff]  ;;  %v328_v33 = vld [vmem:[%s3753_s8 + $0x170] sm:$0xff] }
  0x9e   :  { %v91_v35 = vsel %vm78_vm4, %v75_v23, %v90_v34  ;;  %v358_v23 = vld [vmem:[%s3753_s8 + $0x260] sm:$0xff]  ;;  %480 = vmatpush.msra.mxu3 %v328_v33  ;;  %v348_v33 = vld [vmem:[%s3753_s8 + $0x210] sm:$0xff] }
  0x9f   :  { %1751 = vmatmul.msk.f32.vlgmr.msrb.gmra.mxu1 %vm104_vm3, %v91_v35  ;;  %v310_v34 = vld [vmem:[%s3753_s8 + $0xe0] sm:$0xff]  ;;  %v351_v35 = vld [vmem:[%s3753_s8 + $0x228] sm:$0xff] }
  0xa0   :  { %428 = vmatpush.msra.mxu1 %v358_v23  ;;  %404 = vmatpush.msra.mxu0 %v310_v34  ;;  %v307_v23 = vld [vmem:[%s3753_s8 + $0xc8] sm:$0xff]  ;;  %v301_v34 = vld [vmem:[%s3753_s8 + $0x98] sm:$0xff] }
  0xa1   :  { %470 = vmatpush.msra.mxu2 %v351_v35  ;;  %481 = vmatpush.msra.mxu3 %v324_v37  ;;  %v295_v35 = vld [vmem:[%s3753_s8 + $0x68] sm:$0xff] }
  0xa2   :  { %429 = vmatpush.msra.mxu1 %v354_v28  ;;  %405 = vmatpush.msra.mxu0 %v306_v38  ;;  %v288_v28 = vld [vmem:[%s3753_s8 + $0x30] sm:$0xff]  ;;  %v291_v37 = vld [vmem:[%s3753_s8 + $0x48] sm:$0xff]  ;;  %v293_v38 = vld [vmem:[%s3753_s8 + $0x58] sm:$0xff] }
  0xa3   :  { %471 = vmatpush.msra.mxu2 %v347_v39  ;;  %482 = vmatpush.msra.mxu3 %v320_v41  ;;  %v287_v39 = vld [vmem:[%s3753_s8 + $0x28] sm:$0xff] }
  0xa4   :  { %430 = vmatpush.msra.mxu1 %v350_v32  ;;  %406 = vmatpush.msra.mxu0 %v302_v43  ;;  %v284_v32 = vld [vmem:[%s3753_s8 + $0x10] sm:$0xff]  ;;  %v283_v41 = vld [vmem:[%s3753_s8 + $0x8] sm:$0xff]  ;;  %v209_v43 = vpop.f32.mrf.mxu2 }
  0xa5   :  { %483 = vmatpush.msra.mxu3 %v316_v46  ;;  %v777_v46 = vld [vmem:[%s3755_s10 + $0x6c8] sm:$0xff] }
  0xa6   :  { %431 = vmatpush.msra.mxu1 %v346_v36  ;;  %407 = vmatpush.msra.mxu0 %v298_v48  ;;  %v297_v36 = vld [vmem:[%s3753_s8 + $0x78] sm:$0xff] }
  0xa7   :  { %484 = vmatpush.msra.mxu3 %v312_v4  ;;  %v763_v48 = vld [vmem:[%s3755_s10 + $0x658] sm:$0xff] }
  0xa8   :  { %436 = vmatpush.msrb.mxu1 %v343_v40  ;;  %408 = vmatpush.msra.mxu0 %v294_v50  ;;  %v289_v40 = vld [vmem:[%s3753_s8 + $0x38] sm:$0xff] }
  0xa9   :  { %485 = vmatpush.msra.mxu3 %v308_v8  ;;  %v651_v4 = vld [vmem:[%s3755_s10 + $0x2d8] sm:$0xff]  ;;  %v644_v8 = vld [vmem:[%s3755_s10 + $0x2a0] sm:$0xff] }
  0xaa   :  { %437 = vmatpush.msrb.mxu1 %v339_v45  ;;  %409 = vmatpush.msra.mxu0 %v290_v53  ;;  %v272_v45 = vld [vmem:[%s3754_s7] sm:$0x3] }
  0xab   :  { %v275_v50 = vperm.slane %v272_v45, 1  ;;  %v756_v53 = vld [vmem:[%s3755_s10 + $0x620] sm:$0xff] }
  0xac   :  { %438 = vmatpush.msrb.mxu1 %v335_v49  ;;  %410 = vmatpush.msra.mxu0 %v286_v55  ;;  %v274_v49 = vperm.slane %v272_v45, 0  ;;  %v854_v45 = vld [vmem:[%s3755_s10 + $0x930] sm:$0xff] }
  0xae   :  { %439 = vmatpush.msrb.mxu1 %v331_v51  ;;  %411 = vmatpush.msra.mxu0 %v282_v59 }
  0xb0   :  { %503 = vmatpush.msrb.mxu0 %v380_v62  ;;  %v665_v62 = vld [vmem:[%s3755_s10 + $0x348] sm:$0xff] }
  0xb2   :  { %504 = vmatpush.msrb.mxu0 %v376_v5  ;;  %v728_v5 = vld [vmem:[%s3755_s10 + $0x540] sm:$0xff] }
  0xb4   :  { %505 = vmatpush.msrb.mxu0 %v372_v9  ;;  %v721_v9 = vld [vmem:[%s3755_s10 + $0x508] sm:$0xff] }
  0xb6   :  { %506 = vmatpush.msrb.mxu0 %v368_v13  ;;  %v357_v13 = vld [vmem:[%s3753_s8 + $0x258] sm:$0xff] }
  0xb8   :  { %507 = vmatpush.msrb.mxu0 %v364_v17  ;;  %v623_v17 = vld [vmem:[%s3755_s10 + $0x1f8] sm:$0xff] }
  0xba   :  { %508 = vmatpush.msrb.mxu0 %v360_v21  ;;  %v616_v21 = vld [vmem:[%s3755_s10 + $0x1c0] sm:$0xff] }
 0x11c   :  { %v125_v12 = vpop.f32.mrf.mxu1 }
 0x11d   :  { %v2046_v14 = vadd.f32 %v1768_v3, %v125_v12  ;;  %v327_v3 = vld [vmem:[%s3753_s8 + $0x168] sm:$0xff]  ;;  %v304_v12 = vld [vmem:[%s3753_s8 + $0xb0] sm:$0xff] }
 0x11e   :  { %440 = vmatpush.msrb.mxu1 %v327_v3  ;;  %486 = vmatpush.msra.mxu3 %v304_v12  ;;  %v373_v3 = vld [vmem:[%s3753_s8 + $0x2d8] sm:$0xff]  ;;  %v714_v12 = vld [vmem:[%s3755_s10 + $0x4d0] sm:$0xff] }
 0x11f   :  { %v129_v20 = vmin.f32 %v2046_v14, 20.0  ;;  %vm128_vm7 = vcmp.gt.f32.partialorder %v2046_v14, 20.0 }
 0x120   :  { %441 = vmatpush.msrb.mxu1 %v323_v7  ;;  %487 = vmatpush.msra.mxu3 %v300_v16  ;;  %v365_v7 = vld [vmem:[%s3753_s8 + $0x298] sm:$0xff] }
 0x121   :  { %v130_v25 = vmul.f32 1.442695, %v129_v20  ;;  %v296_v20 = vld [vmem:[%s3753_s8 + $0x70] sm:$0xff]  ;;  %v353_v16 = vld [vmem:[%s3753_s8 + $0x238] sm:$0xff] }
 0x122   :  { %442 = vmatpush.msrb.mxu1 %v319_v11  ;;  %488 = vmatpush.msra.mxu3 %v296_v20  ;;  %v637_v11 = vld [vmem:[%s3755_s10 + $0x268] sm:$0xff]  ;;  %v349_v20 = vld [vmem:[%s3753_s8 + $0x218] sm:$0xff] }
 0x123   :  { %1774 = vpow2.f32 %v130_v25  ;;  %v356_v25 = vld [vmem:[%s3753_s8 + $0x250] sm:$0xff] }
 0x124   :  { %443 = vmatpush.msrb.mxu1 %v315_v15  ;;  %489 = vmatpush.msra.mxu3 %v292_v24  ;;  %v707_v15 = vld [vmem:[%s3755_s10 + $0x498] sm:$0xff]  ;;  %v609_v24 = vld [vmem:[%s3755_s10 + $0x188] sm:$0xff] }
 0x125   :  { %509 = vmatpush.msrb.mxu0 %v356_v25  ;;  %v889_v25 = vld [vmem:[%s3755_s10 + $0xa48] sm:$0xff] }
 0x126   :  { %444 = vmatpush.msrb.mxu1 %v311_v19  ;;  %490 = vmatpush.msra.mxu3 %v288_v28  ;;  %v700_v19 = vld [vmem:[%s3755_s10 + $0x460] sm:$0xff]  ;;  %v602_v28 = vld [vmem:[%s3755_s10 + $0x150] sm:$0xff] }
 0x127   :  { %510 = vmatpush.msrb.mxu0 %v352_v29  ;;  %v882_v29 = vld [vmem:[%s3755_s10 + $0xa10] sm:$0xff] }
 0x128   :  { %445 = vmatpush.msrb.mxu1 %v307_v23  ;;  %491 = vmatpush.msra.mxu3 %v284_v32  ;;  %v693_v23 = vld [vmem:[%s3755_s10 + $0x428] sm:$0xff]  ;;  %v595_v32 = vld [vmem:[%s3755_s10 + $0x118] sm:$0xff] }
 0x129   :  { %v1775_v42 = vpop.eup %1774  ;;  %511 = vmatpush.msrb.mxu0 %v348_v33  ;;  %v875_v33 = vld [vmem:[%s3755_s10 + $0x9d8] sm:$0xff] }
 0x12a   :  { %v132_v44 = vadd.f32 1.0, %v1775_v42  ;;  %v135_v47 = vmul.f32 -0.5, %v1775_v42  ;;  %v138_v54 = vand.u32 2147483647, %v1775_v42  ;;  %446 = vmatpush.msrb.mxu1 %v303_v27  ;;  %v666_v27 = vld [vmem:[%s3755_s10 + $0x350] sm:$0xff] }
 0x12c   :  { %1776 = vlog2.f32 %v132_v44  ;;  %v136_v52 = vadd.f32 1.0, %v135_v47  ;;  %vm139_vm6 = vcmp.lt.f32.partialorder %v138_v54, 0.0004427343  ;;  %447 = vmatpush.msrb.mxu1 %v299_v31  ;;  %v229_v44 = vpop.f32.mrf.mxu3  ;;  %v770_v47 = vld [vmem:[%s3755_s10 + $0x690] sm:$0xff]  ;;  %v659_v31 = vld [vmem:[%s3755_s10 + $0x318] sm:$0xff] }
 0x12e   :  { %v137_v58 = vmul.f32 %v1775_v42, %v136_v52  ;;  %448 = vmatpush.msrb.mxu1 %v295_v35  ;;  %v285_v42 = vld [vmem:[%s3753_s8 + $0x18] sm:$0xff]  ;;  %v652_v35 = vld [vmem:[%s3755_s10 + $0x2e0] sm:$0xff] }
 0x130   :  { %449 = vmatpush.msrb.mxu1 %v291_v37  ;;  %v868_v37 = vld [vmem:[%s3755_s10 + $0x9a0] sm:$0xff] }
 0x132   :  { %v1777_v56 = vpop.eup %1776  ;;  %450 = vmatpush.msrb.mxu1 %v287_v39  ;;  %v645_v39 = vld [vmem:[%s3755_s10 + $0x2a8] sm:$0xff] }
 0x133   :  { %v134_v57 = vmul.f32 0.6931472, %v1777_v56  ;;  %v749_v56 = vld [vmem:[%s3755_s10 + $0x5e8] sm:$0xff] }
 0x134   :  { %451 = vmatpush.msrb.mxu1 %v283_v41  ;;  %v861_v41 = vld [vmem:[%s3755_s10 + $0x968] sm:$0xff] }
 0x135   :  { %v140_v60 = vsel %vm139_vm6, %v137_v58, %v134_v57 }
 0x136   :  { %v141_v63 = vsel %vm128_vm7, %v2046_v14, %v140_v60  ;;  %v321_v14 = vld [vmem:[%s3753_s8 + $0x138] sm:$0xff] }
 0x137   :  { %248 = vmatmul.f32.vlgmr.msrb.gmra.mxu2 %v141_v63  ;;  %268 = vmatmul.f32.vlgmr.msrb.gmra.mxu3 %v141_v63  ;;  %v742_v63 = vld [vmem:[%s3755_s10 + $0x5b0] sm:$0xff] }
 0x138   :  { %516 = vmatpush.msrb.mxu2 %v345_v61  ;;  %950 = vmatpush.msrb.mxu3 %v777_v46  ;;  %v381_v61 = vld [vmem:[%s3753_s8 + $0x318] sm:$0xff]  ;;  %v876_v46 = vld [vmem:[%s3755_s10 + $0x9e0] sm:$0xff] }
 0x13a   :  { %517 = vmatpush.msrb.mxu2 %v341_v0  ;;  %951 = vmatpush.msrb.mxu3 %v770_v47  ;;  %v377_v0 = vld [vmem:[%s3753_s8 + $0x2f8] sm:$0xff] }
 0x13b   :  { %v567_v47 = vld [vmem:[%s3755_s10 + $0x38] sm:$0xff] }
 0x13c   :  { %518 = vmatpush.msrb.mxu2 %v337_v1  ;;  %952 = vmatpush.msrb.mxu3 %v763_v48  ;;  %v658_v1 = vld [vmem:[%s3755_s10 + $0x310] sm:$0xff]  ;;  %v847_v48 = vld [vmem:[%s3755_s10 + $0x8f8] sm:$0xff] }
 0x13e   :  { %519 = vmatpush.msrb.mxu2 %v333_v2  ;;  %953 = vmatpush.msrb.mxu3 %v756_v53  ;;  %v735_v2 = vld [vmem:[%s3755_s10 + $0x578] sm:$0xff]  ;;  %v862_v53 = vld [vmem:[%s3755_s10 + $0x970] sm:$0xff] }
 0x140   :  { %520 = vmatpush.msrb.mxu2 %v329_v6  ;;  %954 = vmatpush.msrb.mxu3 %v749_v56  ;;  %v369_v6 = vld [vmem:[%s3753_s8 + $0x2b8] sm:$0xff] }
 0x141   :  { %v855_v56 = vld [vmem:[%s3755_s10 + $0x938] sm:$0xff] }
 0x142   :  { %521 = vmatpush.msrb.mxu2 %v325_v10  ;;  %955 = vmatpush.msrb.mxu3 %v742_v63  ;;  %v361_v10 = vld [vmem:[%s3753_s8 + $0x278] sm:$0xff]  ;;  %v736_v63 = vld [vmem:[%s3755_s10 + $0x580] sm:$0xff] }
 0x144   :  { %522 = vmatpush.msrb.mxu2 %v321_v14  ;;  %956 = vmatpush.msrb.mxu3 %v735_v2  ;;  %v630_v14 = vld [vmem:[%s3755_s10 + $0x230] sm:$0xff]  ;;  %v715_v2 = vld [vmem:[%s3755_s10 + $0x4d8] sm:$0xff] }
 0x146   :  { %523 = vmatpush.msrb.mxu2 %v317_v18  ;;  %957 = vmatpush.msrb.mxu3 %v728_v5  ;;  %v903_v18 = vld [vmem:[%s3755_s10 + $0xab8] sm:$0xff]  ;;  %v694_v5 = vld [vmem:[%s3755_s10 + $0x430] sm:$0xff] }
 0x148   :  { %524 = vmatpush.msrb.mxu2 %v313_v22  ;;  %958 = vmatpush.msrb.mxu3 %v721_v9  ;;  %v896_v22 = vld [vmem:[%s3755_s10 + $0xa80] sm:$0xff]  ;;  %v687_v9 = vld [vmem:[%s3755_s10 + $0x3f8] sm:$0xff] }
 0x14a   :  { %525 = vmatpush.msrb.mxu2 %v309_v26  ;;  %959 = vmatpush.msrb.mxu3 %v714_v12  ;;  %v686_v26 = vld [vmem:[%s3755_s10 + $0x3f0] sm:$0xff]  ;;  %v841_v12 = vld [vmem:[%s3755_s10 + $0x8c8] sm:$0xff] }
 0x14c   :  { %526 = vmatpush.msrb.mxu2 %v305_v30  ;;  %960 = vmatpush.msrb.mxu3 %v707_v15  ;;  %v679_v30 = vld [vmem:[%s3755_s10 + $0x3b8] sm:$0xff]  ;;  %v617_v15 = vld [vmem:[%s3755_s10 + $0x1c8] sm:$0xff] }
 0x14e   :  { %527 = vmatpush.msrb.mxu2 %v301_v34  ;;  %961 = vmatpush.msrb.mxu3 %v700_v19  ;;  %v672_v34 = vld [vmem:[%s3755_s10 + $0x380] sm:$0xff]  ;;  %v610_v19 = vld [vmem:[%s3755_s10 + $0x190] sm:$0xff] }
 0x150   :  { %528 = vmatpush.msrb.mxu2 %v297_v36  ;;  %962 = vmatpush.msrb.mxu3 %v693_v23  ;;  %v588_v36 = vld [vmem:[%s3755_s10 + $0xe0] sm:$0xff] }
 0x151   :  { %v820_v23 = vld [vmem:[%s3755_s10 + $0x820] sm:$0xff] }
 0x152   :  { %529 = vmatpush.msrb.mxu2 %v293_v38  ;;  %963 = vmatpush.msrb.mxu3 %v686_v26  ;;  %v890_v38 = vld [vmem:[%s3755_s10 + $0xa50] sm:$0xff]  ;;  %v813_v26 = vld [vmem:[%s3755_s10 + $0x7e8] sm:$0xff] }
 0x154   :  { %530 = vmatpush.msrb.mxu2 %v289_v40  ;;  %964 = vmatpush.msrb.mxu3 %v679_v30  ;;  %v581_v40 = vld [vmem:[%s3755_s10 + $0xa8] sm:$0xff]  ;;  %v582_v30 = vld [vmem:[%s3755_s10 + $0xb0] sm:$0xff] }
 0x156   :  { %531 = vmatpush.msrb.mxu2 %v285_v42  ;;  %965 = vmatpush.msrb.mxu3 %v672_v34  ;;  %v883_v42 = vld [vmem:[%s3755_s10 + $0xa18] sm:$0xff]  ;;  %v568_v34 = vld [vmem:[%s3755_s10 + $0x40] sm:$0xff] }
 0x1ba   :  { %v249_v51 = vpop.f32.mrf.mxu2  ;;  %v269_v52 = vpop.f32.mrf.mxu3 }
 0x1bb   :  { %v250_v54 = vadd.f32 %v249_v51, %v209_v43  ;;  %v270_v55 = vadd.f32 %v269_v52, %v229_v44  ;;  %v638_v43 = vld [vmem:[%s3755_s10 + $0x270] sm:$0xff]  ;;  %v840_v51 = vld [vmem:[%s3755_s10 + $0x8c0] sm:$0xff] }
 0x1bc   :  { %v574_v44 = vld [vmem:[%s3755_s10 + $0x70] sm:$0xff] }
 0x1bd   :  { %v278_v57 = vadd.f32 %v274_v49, %v250_v54  ;;  %v279_v58 = vadd.f32 %v275_v50, %v270_v55  ;;  %v869_v49 = vld [vmem:[%s3755_s10 + $0x9a8] sm:$0xff]  ;;  %v560_v50 = vld [vmem:[%s3755_s10] sm:$0xff]  ;;  %v778_v52 = vld [vmem:[%s3755_s10 + $0x6d0] sm:$0xff] }
 0x1be   :  { %v833_v54 = vld [vmem:[%s3755_s10 + $0x888] sm:$0xff]  ;;  %v771_v55 = vld [vmem:[%s3755_s10 + $0x698] sm:$0xff] }
 0x1bf   :  { %v280_v59 = vmax.f32 %v278_v57, 0.0  ;;  %v2309_v60 = vmax.f32 %v279_v58, 0.0  ;;  %v826_v57 = vld [vmem:[%s3755_s10 + $0x850] sm:$0xff]  ;;  %v764_v58 = vld [vmem:[%s3755_s10 + $0x660] sm:$0xff] }
 0x1c1   :  { %412 = vmatmul.f32.vlgmr.msra.gmra.mxu0 %v280_v59  ;;  %1756 = vmatmul.msk.f32.vlgmr.msra.gmra.mxu1 %vm392_vm8, %v2309_v60 }
 0x1c2   :  { %1757 = vmatmul.msk.f32.vlgmr.msra.gmra.mxu2 %vm392_vm8, %v2309_v60  ;;  %492 = vmatmul.f32.vlgmr.msra.gmra.mxu3 %v280_v59 }
 0x1c3   :  { %543 = vmatpush.msra.mxu0 %v381_v61  ;;  %930 = vmatpush.msra.mxu1 %v665_v62  ;;  %v750_v61 = vld [vmem:[%s3755_s10 + $0x5f0] sm:$0xff]  ;;  %v743_v62 = vld [vmem:[%s3755_s10 + $0x5b8] sm:$0xff] }
 0x1c4   :  { %1004 = vmatpush.msra.mxu2 %v903_v18  ;;  %1050 = vmatpush.msra.mxu3 %v890_v38  ;;  %v791_v18 = vld [vmem:[%s3755_s10 + $0x738] sm:$0xff] }
 0x1c5   :  { %544 = vmatpush.msra.mxu0 %v377_v0  ;;  %931 = vmatpush.msra.mxu1 %v658_v1  ;;  %v729_v0 = vld [vmem:[%s3755_s10 + $0x548] sm:$0xff]  ;;  %v722_v1 = vld [vmem:[%s3755_s10 + $0x510] sm:$0xff] }
 0x1c6   :  { %1005 = vmatpush.msra.mxu2 %v896_v22  ;;  %1051 = vmatpush.msra.mxu3 %v883_v42  ;;  %v603_v22 = vld [vmem:[%s3755_s10 + $0x158] sm:$0xff] }
 0x1c7   :  { %545 = vmatpush.msra.mxu0 %v373_v3  ;;  %932 = vmatpush.msra.mxu1 %v651_v4  ;;  %v708_v3 = vld [vmem:[%s3755_s10 + $0x4a0] sm:$0xff]  ;;  %v701_v4 = vld [vmem:[%s3755_s10 + $0x468] sm:$0xff] }
 0x1c8   :  { %1052 = vmatpush.msra.mxu3 %v876_v46 }
 0x1c9   :  { %546 = vmatpush.msra.mxu0 %v369_v6  ;;  %452 = vmatmul.f32.vlgmr.msrb.gmra.mxu1 %v280_v59  ;;  %v812_v6 = vld [vmem:[%s3755_s10 + $0x7e0] sm:$0xff] }
 0x1ca   :  { %1758 = vmatmul.msk.f32.vlgmr.msrb.gmra.mxu0 %vm392_vm8, %v2309_v60  ;;  %532 = vmatmul.f32.vlgmr.msrb.gmra.mxu2 %v280_v59  ;;  %v819_v59 = vld [vmem:[%s3755_s10 + $0x818] sm:$0xff] }
 0x1cb   :  { %547 = vmatpush.msra.mxu0 %v365_v7  ;;  %933 = vmatpush.msra.mxu1 %v644_v8  ;;  %v631_v7 = vld [vmem:[%s3755_s10 + $0x238] sm:$0xff]  ;;  %v848_v8 = vld [vmem:[%s3755_s10 + $0x900] sm:$0xff] }
 0x1cc   :  { %1010 = vmatpush.msrb.mxu2 %v666_v27  ;;  %1053 = vmatpush.msra.mxu3 %v869_v49  ;;  %v897_v27 = vld [vmem:[%s3755_s10 + $0xa88] sm:$0xff]  ;;  %v884_v49 = vld [vmem:[%s3755_s10 + $0xa20] sm:$0xff] }
 0x1cd   :  { %548 = vmatpush.msra.mxu0 %v361_v10  ;;  %934 = vmatpush.msra.mxu1 %v637_v11  ;;  %v805_v10 = vld [vmem:[%s3755_s10 + $0x7a8] sm:$0xff]  ;;  %v624_v11 = vld [vmem:[%s3755_s10 + $0x200] sm:$0xff] }
 0x1ce   :  { %1011 = vmatpush.msrb.mxu2 %v659_v31  ;;  %1054 = vmatpush.msra.mxu3 %v862_v53  ;;  %v799_v31 = vld [vmem:[%s3755_s10 + $0x778] sm:$0xff] }
 0x1cf   :  { %549 = vmatpush.msra.mxu0 %v357_v13  ;;  %935 = vmatpush.msra.mxu1 %v630_v14  ;;  %v680_v13 = vld [vmem:[%s3755_s10 + $0x3c0] sm:$0xff]  ;;  %v798_v14 = vld [vmem:[%s3755_s10 + $0x770] sm:$0xff] }
 0x1d0   :  { %1012 = vmatpush.msrb.mxu2 %v652_v35  ;;  %1055 = vmatpush.msra.mxu3 %v855_v56  ;;  %v785_v35 = vld [vmem:[%s3755_s10 + $0x708] sm:$0xff] }
 0x1d1   :  { %550 = vmatpush.msra.mxu0 %v353_v16  ;;  %936 = vmatpush.msra.mxu1 %v623_v17  ;;  %v834_v16 = vld [vmem:[%s3755_s10 + $0x890] sm:$0xff]  ;;  %v673_v17 = vld [vmem:[%s3755_s10 + $0x388] sm:$0xff] }
 0x1d2   :  { %1013 = vmatpush.msrb.mxu2 %v645_v39  ;;  %1056 = vmatpush.msra.mxu3 %v848_v8 }
 0x1d3   :  { %551 = vmatpush.msra.mxu0 %v349_v20  ;;  %937 = vmatpush.msra.mxu1 %v616_v21  ;;  %v827_v20 = vld [vmem:[%s3755_s10 + $0x858] sm:$0xff]  ;;  %v784_v21 = vld [vmem:[%s3755_s10 + $0x700] sm:$0xff] }
 0x1d4   :  { %1759 = vmatmul.msk.f32.vlgmr.msra.gmra.mxu0 %vm392_vm8, %v2309_v60  ;;  %1014 = vmatpush.msrb.mxu2 %v638_v43  ;;  %v757_v60 = vld [vmem:[%s3755_s10 + $0x628] sm:$0xff] }
 0x1d5   :  { %938 = vmatpush.msra.mxu1 %v609_v24  ;;  %970 = vmatpush.msrb.mxu0 %v889_v25  ;;  %v904_v24 = vld [vmem:[%s3755_s10 + $0xac0] sm:$0xff] }
 0x1d6   :  { %1015 = vmatpush.msrb.mxu2 %v631_v7  ;;  %1057 = vmatpush.msra.mxu3 %v841_v12  ;;  %v596_v25 = vld [vmem:[%s3755_s10 + $0x120] sm:$0xff]  ;;  %v849_v7 = vld [vmem:[%s3755_s10 + $0x908] sm:$0xff] }
 0x1d7   :  { %939 = vmatpush.msra.mxu1 %v602_v28  ;;  %971 = vmatpush.msrb.mxu0 %v882_v29  ;;  %v589_v28 = vld [vmem:[%s3755_s10 + $0xe8] sm:$0xff]  ;;  %v806_v29 = vld [vmem:[%s3755_s10 + $0x7b0] sm:$0xff] }
 0x1d8   :  { %1016 = vmatpush.msrb.mxu2 %v624_v11  ;;  %1058 = vmatpush.msra.mxu3 %v834_v16  ;;  %v842_v11 = vld [vmem:[%s3755_s10 + $0x8d0] sm:$0xff]  ;;  %v668_v16 = vld [vmem:[%s3755_s10 + $0x360] sm:$0xff] }
 0x1d9   :  { %940 = vmatpush.msra.mxu1 %v595_v32  ;;  %972 = vmatpush.msrb.mxu0 %v875_v33  ;;  %v575_v32 = vld [vmem:[%s3755_s10 + $0x78] sm:$0xff]  ;;  %v792_v33 = vld [vmem:[%s3755_s10 + $0x740] sm:$0xff] }
 0x1da   :  { %1017 = vmatpush.msrb.mxu2 %v617_v15  ;;  %1059 = vmatpush.msra.mxu3 %v827_v20  ;;  %v835_v15 = vld [vmem:[%s3755_s10 + $0x898] sm:$0xff]  ;;  %v661_v20 = vld [vmem:[%s3755_s10 + $0x328] sm:$0xff] }
 0x1db   :  { %941 = vmatpush.msra.mxu1 %v588_v36  ;;  %973 = vmatpush.msrb.mxu0 %v868_v37  ;;  %v561_v36 = vld [vmem:[%s3755_s10 + $0x8] sm:$0xff]  ;;  %v382_v37 = vld [vmem:[%s3756_s9] sm:$0xf] }
 0x1dc   :  { %1018 = vmatpush.msrb.mxu2 %v610_v19  ;;  %1060 = vmatpush.msra.mxu3 %v820_v23  ;;  %v384_v38 = vperm.slane %v382_v37, 0  ;;  %v386_v43 = vperm.slane %v382_v37, 2  ;;  %v385_v46 = vperm.slane %v382_v37, 1  ;;  %v828_v19 = vld [vmem:[%s3755_s10 + $0x860] sm:$0xff]  ;;  %v821_v23 = vld [vmem:[%s3755_s10 + $0x828] sm:$0xff] }
 0x1dd   :  { %942 = vmatpush.msra.mxu1 %v581_v40  ;;  %974 = vmatpush.msrb.mxu0 %v861_v41 }
 0x1de   :  { %1019 = vmatpush.msrb.mxu2 %v603_v22  ;;  %1061 = vmatpush.msra.mxu3 %v813_v26  ;;  %v618_v22 = vld [vmem:[%s3755_s10 + $0x1d0] sm:$0xff]  ;;  %v611_v26 = vld [vmem:[%s3755_s10 + $0x198] sm:$0xff] }
 0x1df   :  { %943 = vmatpush.msra.mxu1 %v574_v44  ;;  %975 = vmatpush.msrb.mxu0 %v854_v45  ;;  %v891_v45 = vld [vmem:[%s3755_s10 + $0xa58] sm:$0xff] }
 0x1e0   :  { %1020 = vmatpush.msrb.mxu2 %v596_v25  ;;  %1062 = vmatpush.msra.mxu3 %v806_v29  ;;  %v758_v25 = vld [vmem:[%s3755_s10 + $0x630] sm:$0xff]  ;;  %v751_v29 = vld [vmem:[%s3755_s10 + $0x5f8] sm:$0xff] }
 0x1e1   :  { %944 = vmatpush.msra.mxu1 %v567_v47  ;;  %976 = vmatpush.msrb.mxu0 %v847_v48 }
 0x1e2   :  { %1021 = vmatpush.msrb.mxu2 %v589_v28  ;;  %1063 = vmatpush.msra.mxu3 %v799_v31  ;;  %v647_v28 = vld [vmem:[%s3755_s10 + $0x2b8] sm:$0xff] }
 0x1e3   :  { %945 = vmatpush.msra.mxu1 %v560_v50  ;;  %977 = vmatpush.msrb.mxu0 %v840_v51  ;;  %v807_v31 = vld [vmem:[%s3755_s10 + $0x7b8] sm:$0xff] }
 0x1e4   :  { %1022 = vmatpush.msrb.mxu2 %v582_v30  ;;  %1064 = vmatpush.msra.mxu3 %v792_v33  ;;  %v604_v30 = vld [vmem:[%s3755_s10 + $0x160] sm:$0xff] }
 0x1e5   :  { %1030 = vmatpush.msrb.mxu1 %v778_v52  ;;  %978 = vmatpush.msrb.mxu0 %v833_v54  ;;  %v877_v54 = vld [vmem:[%s3755_s10 + $0x9e8] sm:$0xff]  ;;  %v744_v33 = vld [vmem:[%s3755_s10 + $0x5c0] sm:$0xff] }
 0x1e6   :  { %1023 = vmatpush.msrb.mxu2 %v575_v32  ;;  %1065 = vmatpush.msra.mxu3 %v785_v35  ;;  %v640_v32 = vld [vmem:[%s3755_s10 + $0x280] sm:$0xff] }
 0x1e7   :  { %1031 = vmatpush.msrb.mxu1 %v771_v55  ;;  %979 = vmatpush.msrb.mxu0 %v826_v57  ;;  %v870_v57 = vld [vmem:[%s3755_s10 + $0x9b0] sm:$0xff]  ;;  %v800_v35 = vld [vmem:[%s3755_s10 + $0x780] sm:$0xff] }
 0x1e8   :  { %1024 = vmatpush.msrb.mxu2 %v568_v34  ;;  %v597_v34 = vld [vmem:[%s3755_s10 + $0x128] sm:$0xff] }
 0x1e9   :  { %1032 = vmatpush.msrb.mxu1 %v764_v58  ;;  %980 = vmatpush.msrb.mxu0 %v819_v59  ;;  %v667_v59 = vld [vmem:[%s3755_s10 + $0x358] sm:$0xff] }
 0x1ea   :  { %1025 = vmatpush.msrb.mxu2 %v561_v36  ;;  %v633_v36 = vld [vmem:[%s3755_s10 + $0x248] sm:$0xff] }
 0x1eb   :  { %1033 = vmatpush.msrb.mxu1 %v757_v60  ;;  %981 = vmatpush.msrb.mxu0 %v812_v6  ;;  %v387_v60 = vperm.slane %v382_v37, 3  ;;  %v646_v6 = vld [vmem:[%s3755_s10 + $0x2b0] sm:$0xff]  ;;  %v737_v37 = vld [vmem:[%s3755_s10 + $0x588] sm:$0xff] }
 0x1ed   :  { %1034 = vmatpush.msrb.mxu1 %v750_v61  ;;  %982 = vmatpush.msrb.mxu0 %v805_v10  ;;  %v639_v10 = vld [vmem:[%s3755_s10 + $0x278] sm:$0xff] }
 0x1ef   :  { %1035 = vmatpush.msrb.mxu1 %v743_v62  ;;  %983 = vmatpush.msrb.mxu0 %v798_v14  ;;  %v905_v62 = vld [vmem:[%s3755_s10 + $0xac8] sm:$0xff]  ;;  %v632_v14 = vld [vmem:[%s3755_s10 + $0x240] sm:$0xff] }
 0x1f1   :  { %1036 = vmatpush.msrb.mxu1 %v736_v63  ;;  %984 = vmatpush.msrb.mxu0 %v791_v18  ;;  %v660_v63 = vld [vmem:[%s3755_s10 + $0x320] sm:$0xff]  ;;  %v625_v18 = vld [vmem:[%s3755_s10 + $0x208] sm:$0xff] }
 0x1f3   :  { %1037 = vmatpush.msrb.mxu1 %v729_v0  ;;  %985 = vmatpush.msrb.mxu0 %v784_v21  ;;  %v863_v0 = vld [vmem:[%s3755_s10 + $0x978] sm:$0xff]  ;;  %v765_v21 = vld [vmem:[%s3755_s10 + $0x668] sm:$0xff] }
 0x1f5   :  { %1038 = vmatpush.msrb.mxu1 %v722_v1  ;;  %1084 = vmatpush.msra.mxu0 %v904_v24  ;;  %v654_v24 = vld [vmem:[%s3755_s10 + $0x2f0] sm:$0xff] }
 0x1f7   :  { %1039 = vmatpush.msrb.mxu1 %v715_v2  ;;  %1085 = vmatpush.msra.mxu0 %v897_v27  ;;  %v898_v2 = vld [vmem:[%s3755_s10 + $0xa90] sm:$0xff] }
 0x1f8   :  { %v814_v27 = vld [vmem:[%s3755_s10 + $0x7f0] sm:$0xff] }
 0x1f9   :  { %1040 = vmatpush.msrb.mxu1 %v708_v3 }
 0x1fb   :  { %1041 = vmatpush.msrb.mxu1 %v701_v4  ;;  %v653_v4 = vld [vmem:[%s3755_s10 + $0x2e8] sm:$0xff] }
 0x1fd   :  { %1042 = vmatpush.msrb.mxu1 %v694_v5  ;;  %v856_v5 = vld [vmem:[%s3755_s10 + $0x940] sm:$0xff] }
 0x1ff   :  { %1043 = vmatpush.msrb.mxu1 %v687_v9 }
 0x201   :  { %1044 = vmatpush.msrb.mxu1 %v680_v13  ;;  %v779_v13 = vld [vmem:[%s3755_s10 + $0x6d8] sm:$0xff] }
 0x203   :  { %1045 = vmatpush.msrb.mxu1 %v673_v17  ;;  %v772_v17 = vld [vmem:[%s3755_s10 + $0x6a0] sm:$0xff] }
 0x23e   :  { %v413_v39 = vpop.f32.mrf.mxu0  ;;  %v433_v40 = vpop.f32.mrf.mxu1 }
 0x23f   :  { %v414_v41 = vadd.f32 %v413_v39, %v384_v38  ;;  %v590_v38 = vld [vmem:[%s3755_s10 + $0xf0] sm:$0xff]  ;;  %v793_v39 = vld [vmem:[%s3755_s10 + $0x748] sm:$0xff] }
 0x241   :  { %v434_v42 = vadd.f32 %v433_v40, %v414_v41  ;;  %v626_v40 = vld [vmem:[%s3755_s10 + $0x210] sm:$0xff] }
 0x242   :  { %v730_v41 = vld [vmem:[%s3755_s10 + $0x550] sm:$0xff] }
 0x243   :  { %v2634_v44 = vmax.f32 %v434_v42, 0.0  ;;  %v583_v42 = vld [vmem:[%s3755_s10 + $0xb8] sm:$0xff] }
 0x245   :  { %v473_v47 = vpop.f32.mrf.mxu2  ;;  %v493_v48 = vpop.f32.mrf.mxu3  ;;  %946 = vmatmul.f32.vlgmr.msra.gmra.mxu1 %v2634_v44 }
 0x246   :  { %v494_v50 = vadd.f32 %v493_v48, %v386_v43  ;;  %1130 = vmatpush.msra.mxu1 %v891_v45  ;;  %v453_v51 = vpop.f32.mrf.mxu1  ;;  %v786_v43 = vld [vmem:[%s3755_s10 + $0x710] sm:$0xff]  ;;  %v619_v45 = vld [vmem:[%s3755_s10 + $0x1d8] sm:$0xff] }
 0x247   :  { %v454_v52 = vadd.f32 %v453_v51, %v385_v46  ;;  %v513_v53 = vpop.f32.mrf.mxu0  ;;  %v723_v46 = vld [vmem:[%s3755_s10 + $0x518] sm:$0xff]  ;;  %v906_v48 = vld [vmem:[%s3755_s10 + $0xad0] sm:$0xff]  ;;  %v569_v51 = vld [vmem:[%s3755_s10 + $0x48] sm:$0xff] }
 0x248   :  { %v514_v55 = vadd.f32 %v513_v53, %v494_v50  ;;  %1131 = vmatpush.msra.mxu1 %v884_v49  ;;  %v612_v49 = vld [vmem:[%s3755_s10 + $0x1a0] sm:$0xff]  ;;  %v605_v53 = vld [vmem:[%s3755_s10 + $0x168] sm:$0xff] }
 0x249   :  { %v474_v56 = vadd.f32 %v473_v47, %v454_v52  ;;  %v576_v47 = vld [vmem:[%s3755_s10 + $0x80] sm:$0xff]  ;;  %v899_v52 = vld [vmem:[%s3755_s10 + $0xa98] sm:$0xff] }
 0x24a   :  { %v2649_v58 = vmax.f32 %v514_v55, 0.0  ;;  %1132 = vmatpush.msra.mxu1 %v877_v54  ;;  %v716_v50 = vld [vmem:[%s3755_s10 + $0x4e0] sm:$0xff]  ;;  %v669_v54 = vld [vmem:[%s3755_s10 + $0x368] sm:$0xff] }
 0x24b   :  { %v2654_v61 = vmax.f32 %v474_v56, 0.0  ;;  %v709_v55 = vld [vmem:[%s3755_s10 + $0x4a8] sm:$0xff]  ;;  %v562_v56 = vld [vmem:[%s3755_s10 + $0x10] sm:$0xff] }
 0x24c   :  { %986 = vmatmul.f32.vlgmr.msrb.gmra.mxu0 %v2649_v58  ;;  %1133 = vmatpush.msra.mxu1 %v870_v57  ;;  %v598_v57 = vld [vmem:[%s3755_s10 + $0x130] sm:$0xff] }
 0x24d   :  { %1090 = vmatpush.msrb.mxu0 %v667_v59  ;;  %v533_v1 = vpop.f32.mrf.mxu2  ;;  %966 = vmatmul.f32.vlgmr.msrb.gmra.mxu3 %v2654_v61  ;;  %v662_v59 = vld [vmem:[%s3755_s10 + $0x330] sm:$0xff] }
 0x24e   :  { %v534_v3 = vadd.f32 %v533_v1, %v387_v60  ;;  %1046 = vmatmul.f32.vlgmr.msrb.gmra.mxu1 %v2654_v61  ;;  %1164 = vmatpush.msrb.mxu3 %v905_v62  ;;  %v702_v60 = vld [vmem:[%s3755_s10 + $0x470] sm:$0xff]  ;;  %v780_v62 = vld [vmem:[%s3755_s10 + $0x6e0] sm:$0xff]  ;;  %v695_v1 = vld [vmem:[%s3755_s10 + $0x438] sm:$0xff] }
 0x24f   :  { %1091 = vmatpush.msrb.mxu0 %v660_v63  ;;  %1134 = vmatpush.msra.mxu1 %v863_v0  ;;  %v591_v63 = vld [vmem:[%s3755_s10 + $0xf8] sm:$0xff] }
 0x250   :  { %1165 = vmatpush.msrb.mxu3 %v898_v2  ;;  %v655_v0 = vld [vmem:[%s3755_s10 + $0x2f8] sm:$0xff]  ;;  %v773_v2 = vld [vmem:[%s3755_s10 + $0x6a8] sm:$0xff] }
 0x251   :  { %v553_v8 = vpop.f32.mrf.mxu0  ;;  %1092 = vmatpush.msrb.mxu0 %v653_v4  ;;  %1135 = vmatpush.msra.mxu1 %v856_v5  ;;  %v648_v4 = vld [vmem:[%s3755_s10 + $0x2c0] sm:$0xff] }
 0x252   :  { %v554_v9 = vadd.f32 %v553_v8, %v534_v3  ;;  %v584_v3 = vld [vmem:[%s3755_s10 + $0xc0] sm:$0xff]  ;;  %v641_v8 = vld [vmem:[%s3755_s10 + $0x288] sm:$0xff] }
 0x253   :  { %1093 = vmatpush.msrb.mxu0 %v646_v6  ;;  %1136 = vmatpush.msra.mxu1 %v849_v7  ;;  %v688_v5 = vld [vmem:[%s3755_s10 + $0x400] sm:$0xff]  ;;  %v766_v6 = vld [vmem:[%s3755_s10 + $0x670] sm:$0xff]  ;;  %v577_v7 = vld [vmem:[%s3755_s10 + $0x88] sm:$0xff] }
 0x254   :  { %v2689_v12 = vmax.f32 %v554_v9, 0.0  ;;  %v681_v9 = vld [vmem:[%s3755_s10 + $0x3c8] sm:$0xff] }
 0x255   :  { %1094 = vmatpush.msrb.mxu0 %v639_v10  ;;  %1137 = vmatpush.msra.mxu1 %v842_v11  ;;  %v759_v10 = vld [vmem:[%s3755_s10 + $0x638] sm:$0xff]  ;;  %v570_v11 = vld [vmem:[%s3755_s10 + $0x50] sm:$0xff] }
 0x256   :  { %1760 = vmatmul.msk.f32.vlgmr.msra.gmra.mxu2 %vm926_vm9, %v2689_v12  ;;  %1761 = vmatmul.msk.f32.vlgmr.msra.gmra.mxu0 %vm926_vm9, %v2689_v12 }
 0x257   :  { %1110 = vmatpush.msra.mxu2 %v779_v13  ;;  %1066 = vmatmul.f32.vlgmr.msra.gmra.mxu3 %v2649_v58  ;;  %v634_v13 = vld [vmem:[%s3755_s10 + $0x250] sm:$0xff] }
 0x258   :  { %1095 = vmatpush.msrb.mxu0 %v632_v14  ;;  %1138 = vmatpush.msra.mxu1 %v835_v15  ;;  %v674_v14 = vld [vmem:[%s3755_s10 + $0x390] sm:$0xff]  ;;  %v752_v15 = vld [vmem:[%s3755_s10 + $0x600] sm:$0xff] }
 0x259   :  { %1170 = vmatpush.msra.mxu3 %v668_v16  ;;  %1111 = vmatpush.msra.mxu2 %v772_v17  ;;  %v563_v16 = vld [vmem:[%s3755_s10 + $0x18] sm:$0xff]  ;;  %v892_v17 = vld [vmem:[%s3755_s10 + $0xa60] sm:$0xff] }
 0x25a   :  { %1096 = vmatpush.msrb.mxu0 %v625_v18  ;;  %1139 = vmatpush.msra.mxu1 %v828_v19  ;;  %v627_v18 = vld [vmem:[%s3755_s10 + $0x218] sm:$0xff]  ;;  %v745_v19 = vld [vmem:[%s3755_s10 + $0x5c8] sm:$0xff] }
 0x25b   :  { %1171 = vmatpush.msra.mxu3 %v661_v20  ;;  %1112 = vmatpush.msra.mxu2 %v765_v21  ;;  %v781_v20 = vld [vmem:[%s3755_s10 + $0x6e8] sm:$0xff] }
 0x25c   :  { %1097 = vmatpush.msrb.mxu0 %v618_v22  ;;  %1140 = vmatpush.msra.mxu1 %v821_v23  ;;  %v885_v21 = vld [vmem:[%s3755_s10 + $0xa28] sm:$0xff]  ;;  %v620_v22 = vld [vmem:[%s3755_s10 + $0x1e0] sm:$0xff]  ;;  %v738_v23 = vld [vmem:[%s3755_s10 + $0x590] sm:$0xff] }
 0x25d   :  { %1172 = vmatpush.msra.mxu3 %v654_v24  ;;  %1113 = vmatpush.msra.mxu2 %v758_v25  ;;  %v774_v24 = vld [vmem:[%s3755_s10 + $0x6b0] sm:$0xff] }
 0x25e   :  { %1098 = vmatpush.msrb.mxu0 %v611_v26  ;;  %1141 = vmatpush.msra.mxu1 %v814_v27  ;;  %v878_v25 = vld [vmem:[%s3755_s10 + $0x9f0] sm:$0xff]  ;;  %v613_v26 = vld [vmem:[%s3755_s10 + $0x1a8] sm:$0xff]  ;;  %v731_v27 = vld [vmem:[%s3755_s10 + $0x558] sm:$0xff] }
 0x25f   :  { %1173 = vmatpush.msra.mxu3 %v647_v28  ;;  %1026 = vmatmul.f32.vlgmr.msrb.gmra.mxu2 %v2634_v44  ;;  %v767_v28 = vld [vmem:[%s3755_s10 + $0x678] sm:$0xff] }
 0x260   :  { %1114 = vmatpush.msra.mxu2 %v751_v29  ;;  %1099 = vmatpush.msrb.mxu0 %v604_v30  ;;  %v871_v29 = vld [vmem:[%s3755_s10 + $0x9b8] sm:$0xff]  ;;  %v606_v30 = vld [vmem:[%s3755_s10 + $0x170] sm:$0xff] }
 0x261   :  { %1142 = vmatpush.msra.mxu1 %v807_v31  ;;  %1762 = vmatmul.msk.f32.vlgmr.msrb.gmra.mxu3 %vm926_vm9, %v2689_v12  ;;  %v724_v31 = vld [vmem:[%s3755_s10 + $0x520] sm:$0xff] }
 0x262   :  { %1174 = vmatpush.msra.mxu3 %v640_v32  ;;  %1115 = vmatpush.msra.mxu2 %v744_v33  ;;  %v760_v32 = vld [vmem:[%s3755_s10 + $0x640] sm:$0xff] }
 0x263   :  { %1100 = vmatpush.msrb.mxu0 %v597_v34  ;;  %1143 = vmatpush.msra.mxu1 %v800_v35  ;;  %v864_v33 = vld [vmem:[%s3755_s10 + $0x980] sm:$0xff]  ;;  %v599_v34 = vld [vmem:[%s3755_s10 + $0x138] sm:$0xff]  ;;  %v717_v35 = vld [vmem:[%s3755_s10 + $0x4e8] sm:$0xff] }
 0x264   :  { %1175 = vmatpush.msra.mxu3 %v633_v36  ;;  %1116 = vmatpush.msra.mxu2 %v737_v37  ;;  %v753_v36 = vld [vmem:[%s3755_s10 + $0x608] sm:$0xff] }
 0x265   :  { %1101 = vmatpush.msrb.mxu0 %v590_v38  ;;  %1144 = vmatpush.msra.mxu1 %v793_v39  ;;  %v857_v37 = vld [vmem:[%s3755_s10 + $0x948] sm:$0xff]  ;;  %v592_v38 = vld [vmem:[%s3755_s10 + $0x100] sm:$0xff]  ;;  %v710_v39 = vld [vmem:[%s3755_s10 + $0x4b0] sm:$0xff] }
 0x266   :  { %1176 = vmatpush.msra.mxu3 %v626_v40  ;;  %1117 = vmatpush.msra.mxu2 %v730_v41  ;;  %v746_v40 = vld [vmem:[%s3755_s10 + $0x5d0] sm:$0xff] }
 0x267   :  { %1102 = vmatpush.msrb.mxu0 %v583_v42  ;;  %1145 = vmatpush.msra.mxu1 %v786_v43  ;;  %v850_v41 = vld [vmem:[%s3755_s10 + $0x910] sm:$0xff]  ;;  %v585_v42 = vld [vmem:[%s3755_s10 + $0xc8] sm:$0xff]  ;;  %v703_v43 = vld [vmem:[%s3755_s10 + $0x478] sm:$0xff] }
 0x268   :  { %1177 = vmatpush.msra.mxu3 %v619_v45  ;;  %1118 = vmatpush.msra.mxu2 %v723_v46  ;;  %v739_v45 = vld [vmem:[%s3755_s10 + $0x598] sm:$0xff] }
 0x269   :  { %1146 = vmatmul.f32.vlgmr.msra.gmra.mxu1 %v2649_v58  ;;  %1103 = vmatpush.msrb.mxu0 %v576_v47  ;;  %v843_v46 = vld [vmem:[%s3755_s10 + $0x8d8] sm:$0xff]  ;;  %v578_v47 = vld [vmem:[%s3755_s10 + $0x90] sm:$0xff] }
 0x26a   :  { %1244 = vmatpush.msrb.mxu1 %v906_v48  ;;  %1178 = vmatpush.msra.mxu3 %v612_v49  ;;  %v696_v48 = vld [vmem:[%s3755_s10 + $0x440] sm:$0xff] }
 0x26b   :  { %1119 = vmatpush.msra.mxu2 %v716_v50  ;;  %1104 = vmatpush.msrb.mxu0 %v569_v51  ;;  %v732_v49 = vld [vmem:[%s3755_s10 + $0x560] sm:$0xff]  ;;  %v571_v51 = vld [vmem:[%s3755_s10 + $0x58] sm:$0xff] }
 0x26c   :  { %1245 = vmatpush.msrb.mxu1 %v899_v52  ;;  %1179 = vmatpush.msra.mxu3 %v605_v53  ;;  %v836_v50 = vld [vmem:[%s3755_s10 + $0x8a0] sm:$0xff]  ;;  %v689_v52 = vld [vmem:[%s3755_s10 + $0x408] sm:$0xff] }
 0x26d   :  { %1120 = vmatpush.msra.mxu2 %v709_v55  ;;  %1105 = vmatpush.msrb.mxu0 %v562_v56  ;;  %v725_v53 = vld [vmem:[%s3755_s10 + $0x528] sm:$0xff]  ;;  %v564_v55 = vld [vmem:[%s3755_s10 + $0x20] sm:$0xff]  ;;  %v682_v56 = vld [vmem:[%s3755_s10 + $0x3d0] sm:$0xff] }
 0x26e   :  { %1250 = vmatpush.msra.mxu1 %v669_v54  ;;  %1180 = vmatpush.msra.mxu3 %v598_v57  ;;  %v829_v54 = vld [vmem:[%s3755_s10 + $0x868] sm:$0xff]  ;;  %v718_v57 = vld [vmem:[%s3755_s10 + $0x4f0] sm:$0xff] }
 0x26f   :  { %1106 = vmatmul.f32.vlgmr.msrb.gmra.mxu0 %v2634_v44  ;;  %1121 = vmatpush.msra.mxu2 %v702_v60  ;;  %v822_v60 = vld [vmem:[%s3755_s10 + $0x830] sm:$0xff] }
 0x270   :  { %1251 = vmatpush.msra.mxu1 %v662_v59  ;;  %1190 = vmatpush.msra.mxu0 %v780_v62  ;;  %v782_v59 = vld [vmem:[%s3755_s10 + $0x6f0] sm:$0xff]  ;;  %v675_v62 = vld [vmem:[%s3755_s10 + $0x398] sm:$0xff] }
 0x271   :  { %1181 = vmatpush.msra.mxu3 %v591_v63  ;;  %1122 = vmatpush.msra.mxu2 %v695_v1  ;;  %v711_v63 = vld [vmem:[%s3755_s10 + $0x4b8] sm:$0xff] }
 0x272   :  { %1252 = vmatpush.msra.mxu1 %v655_v0  ;;  %1191 = vmatpush.msra.mxu0 %v773_v2  ;;  %v775_v0 = vld [vmem:[%s3755_s10 + $0x6b8] sm:$0xff]  ;;  %v893_v2 = vld [vmem:[%s3755_s10 + $0xa68] sm:$0xff] }
 0x273   :  { %1763 = vmatmul.msk.f32.vlgmr.msrb.gmra.mxu1 %vm926_vm9, %v2689_v12  ;;  %1182 = vmatpush.msra.mxu3 %v584_v3  ;;  %v815_v1 = vld [vmem:[%s3755_s10 + $0x7f8] sm:$0xff]  ;;  %v704_v3 = vld [vmem:[%s3755_s10 + $0x480] sm:$0xff] }
 0x274   :  { %1253 = vmatpush.msra.mxu1 %v648_v4  ;;  %1123 = vmatpush.msra.mxu2 %v688_v5  ;;  %v768_v4 = vld [vmem:[%s3755_s10 + $0x680] sm:$0xff] }
 0x275   :  { %1192 = vmatpush.msra.mxu0 %v766_v6  ;;  %1183 = vmatpush.msra.mxu3 %v577_v7  ;;  %v808_v5 = vld [vmem:[%s3755_s10 + $0x7c0] sm:$0xff]  ;;  %v886_v6 = vld [vmem:[%s3755_s10 + $0xa30] sm:$0xff]  ;;  %v697_v7 = vld [vmem:[%s3755_s10 + $0x448] sm:$0xff] }
 0x276   :  { %1254 = vmatpush.msra.mxu1 %v641_v8  ;;  %1124 = vmatpush.msra.mxu2 %v681_v9  ;;  %v761_v8 = vld [vmem:[%s3755_s10 + $0x648] sm:$0xff] }
 0x277   :  { %1193 = vmatpush.msra.mxu0 %v759_v10  ;;  %1184 = vmatpush.msra.mxu3 %v570_v11  ;;  %v801_v9 = vld [vmem:[%s3755_s10 + $0x788] sm:$0xff]  ;;  %v879_v10 = vld [vmem:[%s3755_s10 + $0x9f8] sm:$0xff]  ;;  %v690_v11 = vld [vmem:[%s3755_s10 + $0x410] sm:$0xff] }
 0x278   :  { %1255 = vmatpush.msra.mxu1 %v634_v13  ;;  %1125 = vmatpush.msra.mxu2 %v674_v14  ;;  %v754_v13 = vld [vmem:[%s3755_s10 + $0x610] sm:$0xff] }
 0x279   :  { %1194 = vmatpush.msra.mxu0 %v752_v15  ;;  %1126 = vmatmul.f32.vlgmr.msra.gmra.mxu2 %v2654_v61  ;;  %v794_v14 = vld [vmem:[%s3755_s10 + $0x750] sm:$0xff]  ;;  %v872_v15 = vld [vmem:[%s3755_s10 + $0x9c0] sm:$0xff] }
 0x27a   :  { %1185 = vmatpush.msra.mxu3 %v563_v16  ;;  %1210 = vmatpush.msrb.mxu2 %v892_v17  ;;  %v683_v16 = vld [vmem:[%s3755_s10 + $0x3d8] sm:$0xff] }
 0x27b   :  { %1256 = vmatpush.msra.mxu1 %v627_v18  ;;  %1186 = vmatmul.f32.vlgmr.msra.gmra.mxu3 %v2634_v44  ;;  %v747_v17 = vld [vmem:[%s3755_s10 + $0x5d8] sm:$0xff] }
 0x27c   :  { %1195 = vmatpush.msra.mxu0 %v745_v19  ;;  %1270 = vmatpush.msrb.mxu3 %v781_v20  ;;  %v787_v18 = vld [vmem:[%s3755_s10 + $0x718] sm:$0xff]  ;;  %v865_v19 = vld [vmem:[%s3755_s10 + $0x988] sm:$0xff]  ;;  %v676_v20 = vld [vmem:[%s3755_s10 + $0x3a0] sm:$0xff] }
 0x27d   :  { %1211 = vmatpush.msrb.mxu2 %v885_v21  ;;  %1257 = vmatpush.msra.mxu1 %v620_v22  ;;  %v907_v21 = vld [vmem:[%s3755_s10 + $0xad8] sm:$0xff]  ;;  %v740_v22 = vld [vmem:[%s3755_s10 + $0x5a0] sm:$0xff] }
 0x27e   :  { %1196 = vmatpush.msra.mxu0 %v738_v23  ;;  %1271 = vmatpush.msrb.mxu3 %v774_v24  ;;  %v858_v23 = vld [vmem:[%s3755_s10 + $0x950] sm:$0xff] }
 0x27f   :  { %1212 = vmatpush.msrb.mxu2 %v878_v25  ;;  %1258 = vmatpush.msra.mxu1 %v613_v26  ;;  %v894_v24 = vld [vmem:[%s3755_s10 + $0xa70] sm:$0xff]  ;;  %v900_v25 = vld [vmem:[%s3755_s10 + $0xaa0] sm:$0xff]  ;;  %v733_v26 = vld [vmem:[%s3755_s10 + $0x568] sm:$0xff] }
 0x280   :  { %1197 = vmatpush.msra.mxu0 %v731_v27  ;;  %1272 = vmatpush.msrb.mxu3 %v767_v28  ;;  %v851_v27 = vld [vmem:[%s3755_s10 + $0x918] sm:$0xff]  ;;  %v670_v28 = vld [vmem:[%s3755_s10 + $0x370] sm:$0xff] }
 0x281   :  { %1213 = vmatpush.msrb.mxu2 %v871_v29  ;;  %1259 = vmatpush.msra.mxu1 %v606_v30  ;;  %v887_v29 = vld [vmem:[%s3755_s10 + $0xa38] sm:$0xff]  ;;  %v726_v30 = vld [vmem:[%s3755_s10 + $0x530] sm:$0xff] }
 0x282   :  { %1198 = vmatpush.msra.mxu0 %v724_v31  ;;  %1273 = vmatpush.msrb.mxu3 %v760_v32  ;;  %v844_v31 = vld [vmem:[%s3755_s10 + $0x8e0] sm:$0xff]  ;;  %v663_v32 = vld [vmem:[%s3755_s10 + $0x338] sm:$0xff] }
 0x283   :  { %1214 = vmatpush.msrb.mxu2 %v864_v33  ;;  %1260 = vmatpush.msra.mxu1 %v599_v34  ;;  %v880_v33 = vld [vmem:[%s3755_s10 + $0xa00] sm:$0xff]  ;;  %v719_v34 = vld [vmem:[%s3755_s10 + $0x4f8] sm:$0xff] }
 0x284   :  { %1199 = vmatpush.msra.mxu0 %v717_v35  ;;  %1274 = vmatpush.msrb.mxu3 %v753_v36  ;;  %v837_v35 = vld [vmem:[%s3755_s10 + $0x8a8] sm:$0xff]  ;;  %v656_v36 = vld [vmem:[%s3755_s10 + $0x300] sm:$0xff] }
 0x285   :  { %1215 = vmatpush.msrb.mxu2 %v857_v37  ;;  %1261 = vmatpush.msra.mxu1 %v592_v38  ;;  %v873_v37 = vld [vmem:[%s3755_s10 + $0x9c8] sm:$0xff]  ;;  %v712_v38 = vld [vmem:[%s3755_s10 + $0x4c0] sm:$0xff] }
 0x286   :  { %1200 = vmatpush.msra.mxu0 %v710_v39  ;;  %1275 = vmatpush.msrb.mxu3 %v746_v40  ;;  %v830_v39 = vld [vmem:[%s3755_s10 + $0x870] sm:$0xff]  ;;  %v649_v40 = vld [vmem:[%s3755_s10 + $0x2c8] sm:$0xff] }
 0x287   :  { %1216 = vmatpush.msrb.mxu2 %v850_v41  ;;  %1262 = vmatpush.msra.mxu1 %v585_v42  ;;  %v866_v41 = vld [vmem:[%s3755_s10 + $0x990] sm:$0xff]  ;;  %v705_v42 = vld [vmem:[%s3755_s10 + $0x488] sm:$0xff] }
 0x288   :  { %1201 = vmatpush.msra.mxu0 %v703_v43  ;;  %1276 = vmatpush.msrb.mxu3 %v739_v45  ;;  %v823_v43 = vld [vmem:[%s3755_s10 + $0x838] sm:$0xff]  ;;  %v642_v45 = vld [vmem:[%s3755_s10 + $0x290] sm:$0xff] }
 0x289   :  { %1217 = vmatpush.msrb.mxu2 %v843_v46  ;;  %1263 = vmatpush.msra.mxu1 %v578_v47  ;;  %v859_v46 = vld [vmem:[%s3755_s10 + $0x958] sm:$0xff]  ;;  %v698_v47 = vld [vmem:[%s3755_s10 + $0x450] sm:$0xff] }
 0x28a   :  { %1202 = vmatpush.msra.mxu0 %v696_v48  ;;  %1277 = vmatpush.msrb.mxu3 %v732_v49  ;;  %v816_v48 = vld [vmem:[%s3755_s10 + $0x800] sm:$0xff]  ;;  %v635_v49 = vld [vmem:[%s3755_s10 + $0x258] sm:$0xff] }
 0x28b   :  { %1218 = vmatpush.msrb.mxu2 %v836_v50  ;;  %1264 = vmatpush.msra.mxu1 %v571_v51  ;;  %v852_v50 = vld [vmem:[%s3755_s10 + $0x920] sm:$0xff]  ;;  %v691_v51 = vld [vmem:[%s3755_s10 + $0x418] sm:$0xff] }
 0x28c   :  { %1203 = vmatpush.msra.mxu0 %v689_v52  ;;  %1278 = vmatpush.msrb.mxu3 %v725_v53  ;;  %v809_v52 = vld [vmem:[%s3755_s10 + $0x7c8] sm:$0xff]  ;;  %v628_v53 = vld [vmem:[%s3755_s10 + $0x220] sm:$0xff] }
 0x28d   :  { %1219 = vmatpush.msrb.mxu2 %v829_v54  ;;  %1265 = vmatpush.msra.mxu1 %v564_v55  ;;  %v845_v54 = vld [vmem:[%s3755_s10 + $0x8e8] sm:$0xff]  ;;  %v684_v55 = vld [vmem:[%s3755_s10 + $0x3e0] sm:$0xff] }
 0x28e   :  { %1204 = vmatpush.msra.mxu0 %v682_v56  ;;  %1266 = vmatmul.f32.vlgmr.msra.gmra.mxu1 %v2634_v44  ;;  %v802_v56 = vld [vmem:[%s3755_s10 + $0x790] sm:$0xff] }
 0x28f   :  { %1279 = vmatpush.msrb.mxu3 %v718_v57  ;;  %1350 = vmatpush.msrb.mxu1 %v782_v59  ;;  %v621_v57 = vld [vmem:[%s3755_s10 + $0x1e8] sm:$0xff]  ;;  %v838_v59 = vld [vmem:[%s3755_s10 + $0x8b0] sm:$0xff] }
 0x290   :  { %1220 = vmatpush.msrb.mxu2 %v822_v60  ;;  %1205 = vmatpush.msra.mxu0 %v675_v62  ;;  %v677_v60 = vld [vmem:[%s3755_s10 + $0x3a8] sm:$0xff]  ;;  %v795_v62 = vld [vmem:[%s3755_s10 + $0x758] sm:$0xff] }
 0x291   :  { %1280 = vmatpush.msrb.mxu3 %v711_v63  ;;  %1351 = vmatpush.msrb.mxu1 %v775_v0  ;;  %v614_v63 = vld [vmem:[%s3755_s10 + $0x1b0] sm:$0xff]  ;;  %v831_v0 = vld [vmem:[%s3755_s10 + $0x878] sm:$0xff] }
 0x292   :  { %1206 = vmatmul.f32.vlgmr.msra.gmra.mxu0 %v2654_v61  ;;  %1221 = vmatpush.msrb.mxu2 %v815_v1  ;;  %v895_v1 = vld [vmem:[%s3755_s10 + $0xa78] sm:$0xff] }
 0x293   :  { %1290 = vmatpush.msrb.mxu0 %v893_v2  ;;  %1281 = vmatpush.msrb.mxu3 %v704_v3  ;;  %v788_v2 = vld [vmem:[%s3755_s10 + $0x720] sm:$0xff]  ;;  %v607_v3 = vld [vmem:[%s3755_s10 + $0x178] sm:$0xff] }
 0x294   :  { %1352 = vmatpush.msrb.mxu1 %v768_v4  ;;  %1222 = vmatpush.msrb.mxu2 %v808_v5  ;;  %v824_v4 = vld [vmem:[%s3755_s10 + $0x840] sm:$0xff] }
 0x295   :  { %1291 = vmatpush.msrb.mxu0 %v886_v6  ;;  %1282 = vmatpush.msrb.mxu3 %v697_v7  ;;  %v888_v5 = vld [vmem:[%s3755_s10 + $0xa40] sm:$0xff] }
 0x296   :  { %1353 = vmatpush.msrb.mxu1 %v761_v8  ;;  %1223 = vmatpush.msrb.mxu2 %v801_v9  ;;  %v600_v6 = vld [vmem:[%s3755_s10 + $0x140] sm:$0xff]  ;;  %v817_v8 = vld [vmem:[%s3755_s10 + $0x808] sm:$0xff] }
 0x297   :  { %1292 = vmatpush.msrb.mxu0 %v879_v10  ;;  %1283 = vmatpush.msrb.mxu3 %v690_v11  ;;  %v908_v7 = vld [vmem:[%s3755_s10 + $0xae0] sm:$0xff]  ;;  %v881_v9 = vld [vmem:[%s3755_s10 + $0xa08] sm:$0xff] }
 0x298   :  { %1354 = vmatpush.msrb.mxu1 %v754_v13  ;;  %1224 = vmatpush.msrb.mxu2 %v794_v14  ;;  %v593_v10 = vld [vmem:[%s3755_s10 + $0x108] sm:$0xff]  ;;  %v810_v13 = vld [vmem:[%s3755_s10 + $0x7d0] sm:$0xff]  ;;  %v671_v14 = vld [vmem:[%s3755_s10 + $0x378] sm:$0xff] }
 0x299   :  { %1293 = vmatpush.msrb.mxu0 %v872_v15  ;;  %1284 = vmatpush.msrb.mxu3 %v683_v16  ;;  %v901_v11 = vld [vmem:[%s3755_s10 + $0xaa8] sm:$0xff]  ;;  %v874_v15 = vld [vmem:[%s3755_s10 + $0x9d0] sm:$0xff] }
 0x29a   :  { %1355 = vmatpush.msrb.mxu1 %v747_v17  ;;  %1225 = vmatpush.msrb.mxu2 %v787_v18  ;;  %v586_v16 = vld [vmem:[%s3755_s10 + $0xd0] sm:$0xff]  ;;  %v803_v17 = vld [vmem:[%s3755_s10 + $0x798] sm:$0xff]  ;;  %v664_v18 = vld [vmem:[%s3755_s10 + $0x340] sm:$0xff] }
 0x29b   :  { %1294 = vmatpush.msrb.mxu0 %v865_v19  ;;  %1226 = vmatmul.f32.vlgmr.msrb.gmra.mxu2 %v2649_v58  ;;  %v867_v19 = vld [vmem:[%s3755_s10 + $0x998] sm:$0xff] }
 0x29c   :  { %1285 = vmatpush.msrb.mxu3 %v676_v20  ;;  %1324 = vmatpush.msra.mxu2 %v907_v21  ;;  %v579_v20 = vld [vmem:[%s3755_s10 + $0x98] sm:$0xff]  ;;  %v796_v21 = vld [vmem:[%s3755_s10 + $0x760] sm:$0xff] }
 0x29d   :  { %1356 = vmatpush.msrb.mxu1 %v740_v22  ;;  %1286 = vmatmul.f32.vlgmr.msrb.gmra.mxu3 %v2654_v61  ;;  %v657_v22 = vld [vmem:[%s3755_s10 + $0x308] sm:$0xff] }
 0x29e   :  { %1295 = vmatpush.msrb.mxu0 %v858_v23  ;;  %1370 = vmatpush.msra.mxu3 %v894_v24  ;;  %v860_v23 = vld [vmem:[%s3755_s10 + $0x960] sm:$0xff] }
 0x29f   :  { %1325 = vmatpush.msra.mxu2 %v900_v25  ;;  %1357 = vmatpush.msrb.mxu1 %v733_v26  ;;  %v572_v24 = vld [vmem:[%s3755_s10 + $0x60] sm:$0xff]  ;;  %v789_v25 = vld [vmem:[%s3755_s10 + $0x728] sm:$0xff]  ;;  %v650_v26 = vld [vmem:[%s3755_s10 + $0x2d0] sm:$0xff] }
 0x2a0   :  { %1296 = vmatpush.msrb.mxu0 %v851_v27  ;;  %1371 = vmatpush.msra.mxu3 %v887_v29  ;;  %v853_v27 = vld [vmem:[%s3755_s10 + $0x928] sm:$0xff]  ;;  %v643_v29 = vld [vmem:[%s3755_s10 + $0x298] sm:$0xff] }
 0x2a1   :  { %1330 = vmatpush.msrb.mxu2 %v670_v28  ;;  %1358 = vmatpush.msrb.mxu1 %v726_v30  ;;  %v565_v28 = vld [vmem:[%s3755_s10 + $0x28] sm:$0xff]  ;;  %v846_v30 = vld [vmem:[%s3755_s10 + $0x8f0] sm:$0xff] }
 0x2a2   :  { %1297 = vmatpush.msrb.mxu0 %v844_v31  ;;  %1372 = vmatpush.msra.mxu3 %v880_v33  ;;  %v783_v31 = vld [vmem:[%s3755_s10 + $0x6f8] sm:$0xff] }
 0x2a3   :  { %1331 = vmatpush.msrb.mxu2 %v663_v32  ;;  %1359 = vmatpush.msrb.mxu1 %v719_v34  ;;  %v636_v32 = vld [vmem:[%s3755_s10 + $0x260] sm:$0xff]  ;;  %v839_v33 = vld [vmem:[%s3755_s10 + $0x8b8] sm:$0xff]  ;;  %v909_v34 = vld [vmem:[%s3755_s10 + $0xae8] sm:$0xff] }
 0x2a4   :  { %1298 = vmatpush.msrb.mxu0 %v837_v35  ;;  %1373 = vmatpush.msra.mxu3 %v873_v37  ;;  %v776_v35 = vld [vmem:[%s3755_s10 + $0x6c0] sm:$0xff] }
 0x2a5   :  { %1332 = vmatpush.msrb.mxu2 %v656_v36  ;;  %1360 = vmatpush.msrb.mxu1 %v712_v38  ;;  %v629_v36 = vld [vmem:[%s3755_s10 + $0x228] sm:$0xff]  ;;  %v832_v37 = vld [vmem:[%s3755_s10 + $0x880] sm:$0xff]  ;;  %v902_v38 = vld [vmem:[%s3755_s10 + $0xab0] sm:$0xff] }
 0x2a6   :  { %1764 = vmatmul.msk.f32.vlgmr.msra.gmra.mxu2 %vm926_vm9, %v2689_v12  ;;  %1299 = vmatpush.msrb.mxu0 %v830_v39  ;;  %v769_v39 = vld [vmem:[%s3755_s10 + $0x688] sm:$0xff] }
 0x2a7   :  { %1333 = vmatpush.msrb.mxu2 %v649_v40  ;;  %1374 = vmatpush.msra.mxu3 %v866_v41  ;;  %v622_v40 = vld [vmem:[%s3755_s10 + $0x1f0] sm:$0xff]  ;;  %v825_v41 = vld [vmem:[%s3755_s10 + $0x848] sm:$0xff] }
 0x2a8   :  { %1361 = vmatpush.msrb.mxu1 %v705_v42  ;;  %1300 = vmatpush.msrb.mxu0 %v823_v43  ;;  %v762_v42 = vld [vmem:[%s3755_s10 + $0x650] sm:$0xff]  ;;  %v615_v43 = vld [vmem:[%s3755_s10 + $0x1b8] sm:$0xff] }
 0x2a9   :  { %1334 = vmatpush.msrb.mxu2 %v642_v45  ;;  %1375 = vmatpush.msra.mxu3 %v859_v46  ;;  %v818_v45 = vld [vmem:[%s3755_s10 + $0x810] sm:$0xff]  ;;  %v1512_v46 = vld [vmem:[%s3757_s12 + $0x78] sm:$0xff] }
 0x2aa   :  { %1362 = vmatpush.msrb.mxu1 %v698_v47  ;;  %1301 = vmatpush.msrb.mxu0 %v816_v48  ;;  %v755_v47 = vld [vmem:[%s3755_s10 + $0x618] sm:$0xff]  ;;  %v608_v48 = vld [vmem:[%s3755_s10 + $0x180] sm:$0xff] }
 0x2ab   :  { %1335 = vmatpush.msrb.mxu2 %v635_v49  ;;  %1376 = vmatpush.msra.mxu3 %v852_v50  ;;  %v811_v49 = vld [vmem:[%s3755_s10 + $0x7d8] sm:$0xff]  ;;  %v1511_v50 = vld [vmem:[%s3757_s12 + $0x70] sm:$0xff] }
 0x2ac   :  { %1363 = vmatpush.msrb.mxu1 %v691_v51  ;;  %1302 = vmatpush.msrb.mxu0 %v809_v52  ;;  %v601_v51 = vld [vmem:[%s3755_s10 + $0x148] sm:$0xff]  ;;  %v804_v52 = vld [vmem:[%s3755_s10 + $0x7a0] sm:$0xff] }
 0x2ad   :  { %1336 = vmatpush.msrb.mxu2 %v628_v53  ;;  %1377 = vmatpush.msra.mxu3 %v845_v54  ;;  %v1510_v53 = vld [vmem:[%s3757_s12 + $0x68] sm:$0xff] }
 0x2ae   :  { %1364 = vmatpush.msrb.mxu1 %v684_v55  ;;  %1303 = vmatpush.msrb.mxu0 %v802_v56  ;;  %v741_v54 = vld [vmem:[%s3755_s10 + $0x5a8] sm:$0xff]  ;;  %v594_v55 = vld [vmem:[%s3755_s10 + $0x110] sm:$0xff] }
 0x2af   :  { %1337 = vmatpush.msrb.mxu2 %v621_v57  ;;  %1378 = vmatpush.msra.mxu3 %v838_v59  ;;  %v797_v56 = vld [vmem:[%s3755_s10 + $0x768] sm:$0xff]  ;;  %v1509_v57 = vld [vmem:[%s3757_s12 + $0x60] sm:$0xff]  ;;  %v734_v59 = vld [vmem:[%s3755_s10 + $0x570] sm:$0xff] }
 0x2b0   :  { %1365 = vmatpush.msrb.mxu1 %v677_v60  ;;  %1304 = vmatpush.msrb.mxu0 %v795_v62  ;;  %v587_v60 = vld [vmem:[%s3755_s10 + $0xd8] sm:$0xff]  ;;  %v790_v62 = vld [vmem:[%s3755_s10 + $0x730] sm:$0xff] }
 0x2b1   :  { %1338 = vmatpush.msrb.mxu2 %v614_v63  ;;  %1366 = vmatmul.f32.vlgmr.msrb.gmra.mxu1 %v2654_v61  ;;  %v1508_v63 = vld [vmem:[%s3757_s12 + $0x58] sm:$0xff] }
 0x2b2   :  { %1379 = vmatpush.msra.mxu3 %v831_v0  ;;  %1450 = vmatpush.msra.mxu1 %v895_v1  ;;  %v727_v0 = vld [vmem:[%s3755_s10 + $0x538] sm:$0xff]  ;;  %v580_v1 = vld [vmem:[%s3755_s10 + $0xa0] sm:$0xff] }
 0x2b3   :  { %1305 = vmatpush.msrb.mxu0 %v788_v2  ;;  %1339 = vmatpush.msrb.mxu2 %v607_v3  ;;  %v1507_v2 = vld [vmem:[%s3757_s12 + $0x50] sm:$0xff]  ;;  %v720_v3 = vld [vmem:[%s3755_s10 + $0x500] sm:$0xff] }
 0x2b4   :  { %1380 = vmatpush.msra.mxu3 %v824_v4  ;;  %1451 = vmatpush.msra.mxu1 %v888_v5  ;;  %v3421_v4 = vld [vmem:[%s3758_s11] sm:$0x7f]  ;;  %v573_v5 = vld [vmem:[%s3755_s10 + $0x68] sm:$0xff] }
 0x2b5   :  { %1306 = vmatmul.f32.vlgmr.msrb.gmra.mxu0 %v2649_v58  ;;  %1340 = vmatpush.msrb.mxu2 %v600_v6  ;;  %v1506_v6 = vld [vmem:[%s3757_s12 + $0x48] sm:$0xff] }
 0x2b6   :  { %1404 = vmatpush.msra.mxu0 %v908_v7  ;;  %1381 = vmatpush.msra.mxu3 %v817_v8  ;;  %v713_v7 = vld [vmem:[%s3755_s10 + $0x4c8] sm:$0xff]  ;;  %v566_v8 = vld [vmem:[%s3755_s10 + $0x30] sm:$0xff] }
 0x2b7   :  { %1452 = vmatpush.msra.mxu1 %v881_v9  ;;  %1341 = vmatpush.msrb.mxu2 %v593_v10  ;;  %v912_v9 = vperm.slane %v3421_v4, 0  ;;  %v706_v10 = vld [vmem:[%s3755_s10 + $0x490] sm:$0xff] }
 0x2b8   :  { %1405 = vmatpush.msra.mxu0 %v901_v11  ;;  %1382 = vmatpush.msra.mxu3 %v810_v13  ;;  %v1528_v13 = vld [vmem:[%s3757_s12 + $0xf8] sm:$0xff] }
 0x2b9   :  { %1453 = vmatpush.msra.mxu1 %v874_v15  ;;  %1342 = vmatpush.msrb.mxu2 %v586_v16  ;;  %v699_v15 = vld [vmem:[%s3755_s10 + $0x458] sm:$0xff]  ;;  %v1527_v16 = vld [vmem:[%s3757_s12 + $0xf0] sm:$0xff] }
 0x2ba   :  { %1410 = vmatpush.msrb.mxu0 %v671_v14  ;;  %1383 = vmatpush.msra.mxu3 %v803_v17  ;;  %v1504_v14 = vld [vmem:[%s3757_s12 + $0x38] sm:$0xff]  ;;  %v1503_v17 = vld [vmem:[%s3757_s12 + $0x30] sm:$0xff] }
 0x2bb   :  { %1454 = vmatpush.msra.mxu1 %v867_v19  ;;  %1343 = vmatpush.msrb.mxu2 %v579_v20 }
 0x2bc   :  { %1411 = vmatpush.msrb.mxu0 %v664_v18  ;;  %1384 = vmatpush.msra.mxu3 %v796_v21  ;;  %v692_v21 = vld [vmem:[%s3755_s10 + $0x420] sm:$0xff] }
 0x2bd   :  { %1455 = vmatpush.msra.mxu1 %v860_v23  ;;  %1765 = vmatmul.msk.f32.vlgmr.msra.gmra.mxu0 %vm926_vm9, %v2689_v12 }
 0x2be   :  { %1412 = vmatpush.msrb.mxu0 %v657_v22  ;;  %1344 = vmatpush.msrb.mxu2 %v572_v24  ;;  %v1502_v22 = vld [vmem:[%s3757_s12 + $0x28] sm:$0xff] }
 0x2bf   :  { %1385 = vmatpush.msra.mxu3 %v789_v25  ;;  %1456 = vmatpush.msra.mxu1 %v853_v27  ;;  %v685_v24 = vld [vmem:[%s3755_s10 + $0x3e8] sm:$0xff]  ;;  %v1525_v25 = vld [vmem:[%s3757_s12 + $0xe0] sm:$0xff]  ;;  %v678_v27 = vld [vmem:[%s3755_s10 + $0x3b0] sm:$0xff] }
 0x2c0   :  { %1413 = vmatpush.msrb.mxu0 %v650_v26  ;;  %1386 = vmatmul.f32.vlgmr.msra.gmra.mxu3 %v2649_v58  ;;  %v1501_v26 = vld [vmem:[%s3757_s12 + $0x20] sm:$0xff] }
 0x2c1   :  { %1345 = vmatpush.msrb.mxu2 %v565_v28  ;;  %1457 = vmatpush.msra.mxu1 %v846_v30  ;;  %v1500_v30 = vld [vmem:[%s3757_s12 + $0x18] sm:$0xff] }
 0x2c2   :  { %1414 = vmatpush.msrb.mxu0 %v643_v29  ;;  %1346 = vmatmul.f32.vlgmr.msrb.gmra.mxu2 %v2634_v44  ;;  %v947_v11 = vpop.f32.mrf.mxu1  ;;  %v1524_v29 = vld [vmem:[%s3757_s12 + $0xd8] sm:$0xff] }
 0x2c3   :  { %1430 = vmatpush.msra.mxu2 %v783_v31  ;;  %1458 = vmatpush.msra.mxu1 %v839_v33  ;;  %v948_v20 = vadd.f32 %v947_v11, %v912_v9  ;;  %v1523_v33 = vld [vmem:[%s3757_s12 + $0xd0] sm:$0xff] }
 0x2c4   :  { %1415 = vmatpush.msrb.mxu0 %v636_v32  ;;  %1484 = vmatpush.msrb.mxu3 %v909_v34  ;;  %v1544_v32 = vld [vmem:[%s3757_s12 + $0x178] sm:$0xff]  ;;  %v913_v34 = vperm.slane %v3421_v4, 1  ;;  %v1535_v9 = vld [vmem:[%s3757_s12 + $0x130] sm:$0xff] }
 0x2c5   :  { %1431 = vmatpush.msra.mxu2 %v776_v35  ;;  %1459 = vmatpush.msra.mxu1 %v832_v37  ;;  %v1575_v11 = vld [vmem:[%s3757_s12 + $0x270] sm:$0xff] }
 0x2c6   :  { %1416 = vmatpush.msrb.mxu0 %v629_v36  ;;  %1485 = vmatpush.msrb.mxu3 %v902_v38  ;;  %v1499_v36 = vld [vmem:[%s3757_s12 + $0x10] sm:$0xff] }
 0x2c7   :  { %1432 = vmatpush.msra.mxu2 %v769_v39  ;;  %1460 = vmatpush.msra.mxu1 %v825_v41  ;;  %v1543_v38 = vld [vmem:[%s3757_s12 + $0x170] sm:$0xff]  ;;  %v1522_v39 = vld [vmem:[%s3757_s12 + $0xc8] sm:$0xff]  ;;  %v1560_v41 = vld [vmem:[%s3757_s12 + $0x1f8] sm:$0xff] }
 0x2c8   :  { %1417 = vmatpush.msrb.mxu0 %v622_v40  ;;  %1766 = vmatmul.msk.f32.vlgmr.msrb.gmra.mxu3 %vm926_vm9, %v2689_v12  ;;  %v748_v12 = vld [vmem:[%s3755_s10 + $0x5e0] sm:$0xff]  ;;  %v1542_v40 = vld [vmem:[%s3757_s12 + $0x168] sm:$0xff] }
 0x2c9   :  { %1433 = vmatpush.msra.mxu2 %v762_v42  ;;  %1461 = vmatpush.msra.mxu1 %v818_v45  ;;  %v987_v28 = vpop.f32.mrf.mxu0  ;;  %v1521_v42 = vld [vmem:[%s3757_s12 + $0xc0] sm:$0xff]  ;;  %v1559_v45 = vld [vmem:[%s3757_s12 + $0x1f0] sm:$0xff] }
 0x2ca   :  { %1418 = vmatpush.msrb.mxu0 %v615_v43  ;;  %1604 = vmatpush.msra.mxu3 %v1512_v46 }
 0x2cb   :  { %1434 = vmatpush.msra.mxu2 %v755_v47  ;;  %1462 = vmatpush.msra.mxu1 %v811_v49  ;;  %v1497_v47 = vld [vmem:[%s3757_s12] sm:$0xff]  ;;  %v1520_v49 = vld [vmem:[%s3757_s12 + $0xb8] sm:$0xff] }
 0x2cc   :  { %1419 = vmatpush.msrb.mxu0 %v608_v48  ;;  %1605 = vmatpush.msra.mxu3 %v1511_v50  ;;  %v1541_v48 = vld [vmem:[%s3757_s12 + $0x160] sm:$0xff]  ;;  %v1047_v50 = vpop.f32.mrf.mxu1 }
 0x2cd   :  { %1435 = vmatpush.msra.mxu2 %v748_v12  ;;  %1463 = vmatpush.msra.mxu1 %v804_v52  ;;  %v1540_v12 = vld [vmem:[%s3757_s12 + $0x158] sm:$0xff]  ;;  %v1519_v52 = vld [vmem:[%s3757_s12 + $0xb0] sm:$0xff] }
 0x2ce   :  { %1420 = vmatpush.msrb.mxu0 %v601_v51  ;;  %1606 = vmatpush.msra.mxu3 %v1510_v53  ;;  %v1558_v51 = vld [vmem:[%s3757_s12 + $0x1e8] sm:$0xff] }
 0x2cf   :  { %1436 = vmatpush.msra.mxu2 %v741_v54  ;;  %1464 = vmatpush.msra.mxu1 %v797_v56  ;;  %v1539_v54 = vld [vmem:[%s3757_s12 + $0x150] sm:$0xff] }
 0x2d0   :  { %1421 = vmatpush.msrb.mxu0 %v594_v55  ;;  %1607 = vmatpush.msra.mxu3 %v1509_v57  ;;  %v967_v18 = vpop.f32.mrf.mxu3  ;;  %v1518_v55 = vld [vmem:[%s3757_s12 + $0xa8] sm:$0xff] }
 0x2d1   :  { %1437 = vmatpush.msra.mxu2 %v734_v59  ;;  %1465 = vmatpush.msra.mxu1 %v790_v62  ;;  %v968_v23 = vadd.f32 %v967_v18, %v948_v20  ;;  %v1538_v57 = vld [vmem:[%s3757_s12 + $0x148] sm:$0xff]  ;;  %v1557_v59 = vld [vmem:[%s3757_s12 + $0x1e0] sm:$0xff] }
 0x2d2   :  { %1422 = vmatpush.msrb.mxu0 %v587_v60  ;;  %1608 = vmatpush.msra.mxu3 %v1508_v63  ;;  %v1556_v60 = vld [vmem:[%s3757_s12 + $0x1d8] sm:$0xff]  ;;  %v1517_v63 = vld [vmem:[%s3757_s12 + $0xa0] sm:$0xff] }
 0x2d3   :  { %1438 = vmatpush.msra.mxu2 %v727_v0  ;;  %1466 = vmatmul.f32.vlgmr.msra.gmra.mxu1 %v2649_v58  ;;  %v1505_v58 = vld [vmem:[%s3757_s12 + $0x40] sm:$0xff]  ;;  %v988_v31 = vadd.f32 %v987_v28, %v968_v23  ;;  %v1532_v23 = vld [vmem:[%s3757_s12 + $0x118] sm:$0xff] }
 0x2d4   :  { %1423 = vmatpush.msrb.mxu0 %v580_v1  ;;  %1609 = vmatpush.msra.mxu3 %v1507_v2  ;;  %v1537_v0 = vld [vmem:[%s3757_s12 + $0x140] sm:$0xff]  ;;  %v1516_v1 = vld [vmem:[%s3757_s12 + $0x98] sm:$0xff]  ;;  %v1087_v2 = vpop.f32.mrf.mxu0 }
 0x2d5   :  { %1439 = vmatpush.msra.mxu2 %v720_v3  ;;  %1664 = vmatpush.msrb.mxu1 %v1560_v41  ;;  %v1536_v3 = vld [vmem:[%s3757_s12 + $0x138] sm:$0xff]  ;;  %v1513_v18 = vld [vmem:[%s3757_s12 + $0x80] sm:$0xff]  ;;  %v1570_v41 = vld [vmem:[%s3757_s12 + $0x248] sm:$0xff] }
 0x2d6   :  { %1424 = vmatpush.msrb.mxu0 %v573_v5  ;;  %1610 = vmatpush.msra.mxu3 %v1506_v6  ;;  %v1555_v5 = vld [vmem:[%s3757_s12 + $0x1d0] sm:$0xff]  ;;  %v1554_v6 = vld [vmem:[%s3757_s12 + $0x1c8] sm:$0xff]  ;;  %v1533_v20 = vld [vmem:[%s3757_s12 + $0x120] sm:$0xff] }
 0x2d7   :  { %1440 = vmatpush.msra.mxu2 %v713_v7  ;;  %1665 = vmatpush.msrb.mxu1 %v1559_v45  ;;  %v1568_v45 = vld [vmem:[%s3757_s12 + $0x238] sm:$0xff] }
 0x2d8   :  { %1425 = vmatpush.msrb.mxu0 %v566_v8  ;;  %1611 = vmatpush.msra.mxu3 %v1505_v58  ;;  %v1515_v8 = vld [vmem:[%s3757_s12 + $0x90] sm:$0xff]  ;;  %v1576_v58 = vld [vmem:[%s3757_s12 + $0x278] sm:$0xff] }
 0x2d9   :  { %1426 = vmatmul.f32.vlgmr.msrb.gmra.mxu0 %v2634_v44  ;;  %1441 = vmatpush.msra.mxu2 %v706_v10  ;;  %v1007_v19 = vpop.f32.mrf.mxu2  ;;  %v1526_v44 = vld [vmem:[%s3757_s12 + $0xe8] sm:$0xff]  ;;  %v1553_v10 = vld [vmem:[%s3757_s12 + $0x1c0] sm:$0xff] }
 0x2da   :  { %1624 = vmatpush.msra.mxu0 %v1528_v13  ;;  %1612 = vmatpush.msra.mxu3 %v1504_v14  ;;  %v1008_v35 = vadd.f32 %v1007_v19, %v988_v31  ;;  %v1067_v56 = vpop.f32.mrf.mxu3  ;;  %v1514_v13 = vld [vmem:[%s3757_s12 + $0x88] sm:$0xff]  ;;  %v1573_v19 = vld [vmem:[%s3757_s12 + $0x260] sm:$0xff] }
 0x2db   :  { %1442 = vmatpush.msra.mxu2 %v699_v15  ;;  %1666 = vmatpush.msrb.mxu1 %v1558_v51  ;;  %v1574_v14 = vld [vmem:[%s3757_s12 + $0x268] sm:$0xff]  ;;  %v1563_v51 = vld [vmem:[%s3757_s12 + $0x210] sm:$0xff] }
 0x2dc   :  { %1625 = vmatpush.msra.mxu0 %v1527_v16  ;;  %1613 = vmatpush.msra.mxu3 %v1503_v17  ;;  %v1490_v46 = vmax.f32 %v1008_v35, 0.0  ;;  %v1534_v15 = vld [vmem:[%s3757_s12 + $0x128] sm:$0xff]  ;;  %v1552_v16 = vld [vmem:[%s3757_s12 + $0x1b8] sm:$0xff] }
 0x2dd   :  { %1443 = vmatpush.msra.mxu2 %v692_v21  ;;  %1667 = vmatpush.msrb.mxu1 %v1557_v59  ;;  %v914_v21 = vperm.slane %v3421_v4, 2  ;;  %v1588_v59 = vld [vmem:[%s3757_s12 + $0x2d8] sm:$0xff] }
 0x2de   :  { %1626 = vmatpush.msra.mxu0 %v1526_v44  ;;  %1614 = vmatpush.msra.mxu3 %v1502_v22  ;;  %v1551_v44 = vld [vmem:[%s3757_s12 + $0x1b0] sm:$0xff] }
 0x2df   :  { %1444 = vmatpush.msra.mxu2 %v685_v24  ;;  %1668 = vmatpush.msrb.mxu1 %v1556_v60  ;;  %v1550_v24 = vld [vmem:[%s3757_s12 + $0x1a8] sm:$0xff] }
 0x2e0   :  { %1627 = vmatpush.msra.mxu0 %v1525_v25  ;;  %1615 = vmatpush.msra.mxu3 %v1501_v26  ;;  %v1531_v25 = vld [vmem:[%s3757_s12 + $0x110] sm:$0xff] }
 0x2e1   :  { %1445 = vmatpush.msra.mxu2 %v678_v27  ;;  %1669 = vmatpush.msrb.mxu1 %v1555_v5  ;;  %v1549_v27 = vld [vmem:[%s3757_s12 + $0x1a0] sm:$0xff] }
 0x2e2   :  { %1446 = vmatmul.f32.vlgmr.msra.gmra.mxu2 %v2654_v61  ;;  %1628 = vmatpush.msra.mxu0 %v1524_v29  ;;  %v1027_v37 = vpop.f32.mrf.mxu2  ;;  %v1498_v61 = vld [vmem:[%s3757_s12 + $0x8] sm:$0xff] }
 0x2e3   :  { %1616 = vmatpush.msra.mxu3 %v1500_v30  ;;  %1644 = vmatpush.msrb.mxu2 %v1544_v32  ;;  %v1028_v43 = vadd.f32 %v1027_v37, %v913_v34  ;;  %v1530_v29 = vld [vmem:[%s3757_s12 + $0x108] sm:$0xff]  ;;  %v1529_v32 = vld [vmem:[%s3757_s12 + $0x100] sm:$0xff]  ;;  %v1548_v37 = vld [vmem:[%s3757_s12 + $0x198] sm:$0xff] }
 0x2e4   :  { %1629 = vmatpush.msra.mxu0 %v1523_v33  ;;  %1670 = vmatpush.msrb.mxu1 %v1554_v6  ;;  %v1167_v34 = vpop.f32.mrf.mxu3  ;;  %v1584_v6 = vld [vmem:[%s3757_s12 + $0x2b8] sm:$0xff] }
 0x2e5   :  { %1617 = vmatpush.msra.mxu3 %v1499_v36  ;;  %1645 = vmatpush.msrb.mxu2 %v1543_v38  ;;  %v1048_v53 = vadd.f32 %v1047_v50, %v1028_v43  ;;  %v1572_v38 = vld [vmem:[%s3757_s12 + $0x258] sm:$0xff]  ;;  %v1569_v43 = vld [vmem:[%s3757_s12 + $0x240] sm:$0xff] }
 0x2e6   :  { %1630 = vmatpush.msra.mxu0 %v1522_v39  ;;  %1671 = vmatpush.msrb.mxu1 %v1553_v10  ;;  %v1147_v31 = vpop.f32.mrf.mxu1  ;;  %v1547_v39 = vld [vmem:[%s3757_s12 + $0x190] sm:$0xff]  ;;  %v1564_v50 = vld [vmem:[%s3757_s12 + $0x218] sm:$0xff]  ;;  %v1582_v10 = vld [vmem:[%s3757_s12 + $0x2a8] sm:$0xff] }
 0x2e7   :  { %1618 = vmatpush.msra.mxu3 %v1498_v61  ;;  %1646 = vmatpush.msrb.mxu2 %v1542_v40  ;;  %v1068_v62 = vadd.f32 %v1067_v56, %v1048_v53  ;;  %v1571_v61 = vld [vmem:[%s3757_s12 + $0x250] sm:$0xff]  ;;  %v1546_v40 = vld [vmem:[%s3757_s12 + $0x188] sm:$0xff]  ;;  %v915_v53 = vperm.slane %v3421_v4, 3  ;;  %v1561_v56 = vld [vmem:[%s3757_s12 + $0x200] sm:$0xff] }
 0x2e8   :  { %1631 = vmatpush.msra.mxu0 %v1521_v42  ;;  %1672 = vmatpush.msrb.mxu1 %v1552_v16  ;;  %v1545_v42 = vld [vmem:[%s3757_s12 + $0x180] sm:$0xff] }
 0x2e9   :  { %1619 = vmatpush.msra.mxu3 %v1497_v47  ;;  %1647 = vmatpush.msrb.mxu2 %v1541_v48  ;;  %v1088_v7 = vadd.f32 %v1087_v2, %v1068_v62  ;;  %v1566_v47 = vld [vmem:[%s3757_s12 + $0x228] sm:$0xff]  ;;  %v1592_v48 = vld [vmem:[%s3757_s12 + $0x2f8] sm:$0xff]  ;;  %v1585_v2 = vld [vmem:[%s3757_s12 + $0x2c0] sm:$0xff] }
 0x2ea   :  { %1632 = vmatpush.msra.mxu0 %v1520_v49  ;;  %1620 = vmatmul.f32.vlgmr.msra.gmra.mxu3 %v1490_v46  ;;  %v1567_v46 = vld [vmem:[%s3757_s12 + $0x230] sm:$0xff]  ;;  %v1565_v49 = vld [vmem:[%s3757_s12 + $0x220] sm:$0xff] }
 0x2eb   :  { %1648 = vmatpush.msrb.mxu2 %v1540_v12  ;;  %1684 = vmatpush.msrb.mxu3 %v1576_v58  ;;  %v1491_v17 = vmax.f32 %v1088_v7, 0.0  ;;  %v1591_v12 = vld [vmem:[%s3757_s12 + $0x2f0] sm:$0xff] }
 0x2ec   :  { %1633 = vmatpush.msra.mxu0 %v1519_v52  ;;  %v1107_v22 = vpop.f32.mrf.mxu0  ;;  %1673 = vmatpush.msrb.mxu1 %v1551_v44  ;;  %v1590_v52 = vld [vmem:[%s3757_s12 + $0x2e8] sm:$0xff] }
 0x2ed   :  { %1649 = vmatpush.msrb.mxu2 %v1539_v54  ;;  %1685 = vmatpush.msrb.mxu3 %v1575_v11  ;;  %v1108_v26 = vadd.f32 %v1107_v22, %v914_v21  ;;  %v1562_v54 = vld [vmem:[%s3757_s12 + $0x208] sm:$0xff]  ;;  %v1581_v11 = vld [vmem:[%s3757_s12 + $0x2a0] sm:$0xff] }
 0x2ee   :  { %1634 = vmatpush.msra.mxu0 %v1518_v55  ;;  %1674 = vmatpush.msrb.mxu1 %v1550_v24  ;;  %v1589_v55 = vld [vmem:[%s3757_s12 + $0x2e0] sm:$0xff] }
 0x2ef   :  { %1650 = vmatpush.msrb.mxu2 %v1538_v57  ;;  %1686 = vmatpush.msrb.mxu3 %v1574_v14  ;;  %v916_v14 = vperm.slane %v3421_v4, 4 }
 0x2f0   :  { %1635 = vmatpush.msra.mxu0 %v1517_v63  ;;  %1675 = vmatpush.msrb.mxu1 %v1549_v27  ;;  %v1587_v63 = vld [vmem:[%s3757_s12 + $0x2d0] sm:$0xff]  ;;  %v1247_v7 = vpop.f32.mrf.mxu1 }
 0x2f1   :  { %1651 = vmatpush.msrb.mxu2 %v1537_v0  ;;  %1687 = vmatpush.msrb.mxu3 %v1573_v19  ;;  %v1586_v0 = vld [vmem:[%s3757_s12 + $0x2c8] sm:$0xff] }
 0x2f2   :  { %1636 = vmatpush.msra.mxu0 %v1516_v1  ;;  %1676 = vmatpush.msrb.mxu1 %v1548_v37 }
 0x2f3   :  { %1652 = vmatpush.msrb.mxu2 %v1536_v3  ;;  %1688 = vmatpush.msrb.mxu3 %v1572_v38 }
 0x2f4   :  { %1637 = vmatpush.msra.mxu0 %v1515_v8  ;;  %1677 = vmatpush.msrb.mxu1 %v1547_v39  ;;  %v1593_v39 = vld [vmem:[%s3757_s12 + $0x300] sm:$0xff] }
 0x2f5   :  { %1653 = vmatpush.msrb.mxu2 %v1535_v9  ;;  %1689 = vmatpush.msrb.mxu3 %v1571_v61  ;;  %v1583_v9 = vld [vmem:[%s3757_s12 + $0x2b0] sm:$0xff] }
 0x2f6   :  { %1638 = vmatpush.msra.mxu0 %v1514_v13  ;;  %1678 = vmatpush.msrb.mxu1 %v1546_v40  ;;  %v1580_v13 = vld [vmem:[%s3757_s12 + $0x298] sm:$0xff]  ;;  %v918_v40 = vperm.slane %v3421_v4, 6 }
 0x2f7   :  { %1654 = vmatpush.msrb.mxu2 %v1534_v15  ;;  %1690 = vmatpush.msrb.mxu3 %v1570_v41  ;;  %v1579_v15 = vld [vmem:[%s3757_s12 + $0x290] sm:$0xff] }
 0x2f8   :  { %1639 = vmatpush.msra.mxu0 %v1513_v18  ;;  %1679 = vmatpush.msrb.mxu1 %v1545_v42 }
 0x2f9   :  { %1640 = vmatmul.f32.vlgmr.msra.gmra.mxu0 %v1491_v17  ;;  %1655 = vmatpush.msrb.mxu2 %v1533_v20  ;;  %v1578_v17 = vld [vmem:[%s3757_s12 + $0x288] sm:$0xff]  ;;  %v1577_v20 = vld [vmem:[%s3757_s12 + $0x280] sm:$0xff] }
 0x2fa   :  { %1691 = vmatpush.msrb.mxu3 %v1569_v43  ;;  %1704 = vmatpush.msrb.mxu0 %v1592_v48 }
 0x2fb   :  { %1656 = vmatpush.msrb.mxu2 %v1532_v23 }
 0x2fc   :  { %v1127_v28 = vpop.f32.mrf.mxu2  ;;  %1692 = vmatpush.msrb.mxu3 %v1568_v45  ;;  %1705 = vmatpush.msrb.mxu0 %v1591_v12 }
 0x2fd   :  { %v1128_v30 = vadd.f32 %v1127_v28, %v1108_v26  ;;  %1657 = vmatpush.msrb.mxu2 %v1531_v25  ;;  %v917_v26 = vperm.slane %v3421_v4, 5  ;;  %v19_v28 = vstv %s3759_s13 }
 0x2fe   :  { %1693 = vmatpush.msrb.mxu3 %v1567_v46  ;;  %1706 = vmatpush.msrb.mxu0 %v1590_v52  ;;  %v1187_v57 = vpop.f32.mrf.mxu3  ;;  %20 = vst [vmem:[#allocation2] sm:$0x1] %v19_v28 }
 0x2ff   :  { %v1148_v33 = vadd.f32 %v1147_v31, %v1128_v30  ;;  %1658 = vmatpush.msrb.mxu2 %v1530_v29  ;;  %v1188_v62 = vadd.f32 %v1187_v57, %v915_v53  ;;  %v1596_v30 = vld [vmem:[%s3757_s12 + $0x318] sm:$0xff] }
 0x300   :  { %1694 = vmatpush.msrb.mxu3 %v1566_v47  ;;  %1707 = vmatpush.msrb.mxu0 %v1589_v55 }
 0x301   :  { %v1168_v35 = vadd.f32 %v1167_v34, %v1148_v33  ;;  %1659 = vmatpush.msrb.mxu2 %v1529_v32  ;;  %v1595_v33 = vld [vmem:[%s3757_s12 + $0x310] sm:$0xff] }
 0x302   :  { %1695 = vmatpush.msrb.mxu3 %v1565_v49  ;;  %1708 = vmatpush.msrb.mxu0 %v1588_v59 }
 0x303   :  { %v1492_v36 = vmax.f32 %v1168_v35, 0.0  ;;  %1736 = vmatpush.msra.mxu2 %v1596_v30 }
 0x304   :  { %1696 = vmatpush.msrb.mxu3 %v1564_v50  ;;  %1709 = vmatpush.msrb.mxu0 %v1587_v63 }
 0x305   :  { %1660 = vmatmul.f32.vlgmr.msrb.gmra.mxu2 %v1492_v36  ;;  %v1594_v36 = vld [vmem:[%s3757_s12 + $0x308] sm:$0xff]  ;;  %v1769_v12 = vld [vmem:[#allocation2] ss:$0 sm:$0xff] }
 0x306   :  { %1697 = vmatpush.msrb.mxu3 %v1563_v51  ;;  %1710 = vmatpush.msrb.mxu0 %v1586_v0 }
 0x307   :  { %1737 = vmatpush.msra.mxu2 %v1595_v33 }
 0x308   :  { %1698 = vmatpush.msrb.mxu3 %v1562_v54  ;;  %1711 = vmatpush.msrb.mxu0 %v1585_v2 }
 0x309   :  { %1738 = vmatpush.msra.mxu2 %v1594_v36 }
 0x30a   :  { %1699 = vmatpush.msrb.mxu3 %v1561_v56  ;;  %1712 = vmatpush.msrb.mxu0 %v1584_v6 }
 0x30b   :  { %v1267_v16 = vpop.f32.mrf.mxu1  ;;  %1739 = vmatpush.msra.mxu2 %v1593_v39 }
 0x30c   :  { %1713 = vmatpush.msrb.mxu0 %v1583_v9  ;;  %v1268_v19 = vadd.f32 %v1267_v16, %v916_v14 }
 0x30e   :  { %1714 = vmatpush.msrb.mxu0 %v1582_v10 }
 0x30f   :  { %v1207_v60 = vpop.f32.mrf.mxu0 }
 0x310   :  { %v1208_v1 = vadd.f32 %v1207_v60, %v1188_v62  ;;  %1715 = vmatpush.msrb.mxu0 %v1581_v11 }
 0x312   :  { %1716 = vmatpush.msrb.mxu0 %v1580_v13 }
 0x314   :  { %1717 = vmatpush.msrb.mxu0 %v1579_v15 }
 0x316   :  { %1718 = vmatpush.msrb.mxu0 %v1578_v17 }
 0x318   :  { %1719 = vmatpush.msrb.mxu0 %v1577_v20 }
 0x31e   :  { %v1227_v3 = vpop.f32.mrf.mxu2 }
 0x31f   :  { %v1228_v5 = vadd.f32 %v1227_v3, %v1208_v1 }
 0x320   :  { %v1287_v18 = vpop.f32.mrf.mxu3 }
 0x321   :  { %v1248_v8 = vadd.f32 %v1247_v7, %v1228_v5  ;;  %v1288_v21 = vadd.f32 %v1287_v18, %v1268_v19 }
 0x323   :  { %v1493_v58 = vmax.f32 %v1248_v8, 0.0 }
 0x325   :  { %1680 = vmatmul.f32.vlgmr.msrb.gmra.mxu1 %v1493_v58 }
 0x329   :  { %v1327_v23 = vpop.f32.mrf.mxu2 }
 0x32e   :  { %v1367_v31 = vpop.f32.mrf.mxu1 }
 0x332   :  { %v1307_v44 = vpop.f32.mrf.mxu0 }
 0x333   :  { %v1308_v22 = vadd.f32 %v1307_v44, %v1288_v21 }
 0x335   :  { %v1328_v24 = vadd.f32 %v1327_v23, %v1308_v22 }
 0x337   :  { %v1494_v25 = vmax.f32 %v1328_v24, 0.0 }
 0x339   :  { %1700 = vmatmul.f32.vlgmr.msrb.gmra.mxu3 %v1494_v25 }
 0x33a   :  { %v1407_v37 = vpop.f32.mrf.mxu0 }
 0x343   :  { %v1387_v34 = vpop.f32.mrf.mxu3 }
 0x345   :  { %v1347_v27 = vpop.f32.mrf.mxu2 }
 0x346   :  { %v1348_v29 = vadd.f32 %v1347_v27, %v917_v26 }
 0x348   :  { %v1368_v32 = vadd.f32 %v1367_v31, %v1348_v29 }
 0x34a   :  { %v1388_v35 = vadd.f32 %v1387_v34, %v1368_v32 }
 0x34b   :  { %v1487_v48 = vpop.f32.mrf.mxu3 }
 0x34c   :  { %v1408_v38 = vadd.f32 %v1407_v37, %v1388_v35 }
 0x34e   :  { %v1495_v61 = vmax.f32 %v1408_v38, 0.0 }
 0x350   :  { %1720 = vmatmul.f32.vlgmr.msrb.gmra.mxu0 %v1495_v61  ;;  %v1467_v46 = vpop.f32.mrf.mxu1 }
 0x356   :  { %v1427_v41 = vpop.f32.mrf.mxu0 }
 0x357   :  { %v1428_v42 = vadd.f32 %v1427_v41, %v918_v40 }
 0x365   :  { %v1447_v43 = vpop.f32.mrf.mxu2 }
 0x366   :  { %v1448_v45 = vadd.f32 %v1447_v43, %v1428_v42 }
 0x368   :  { %v1468_v47 = vadd.f32 %v1467_v46, %v1448_v45 }
 0x36a   :  { %v1488_v49 = vadd.f32 %v1487_v48, %v1468_v47 }
 0x36c   :  { %v1496_v50 = vmax.f32 %v1488_v49, 0.0 }
 0x36d   :  { %v1621_v51 = vpop.f32.mrf.mxu3 }
 0x36e   :  { %1767 = vmatmul.msk.f32.vlgmr.msra.gmra.mxu2 %vm54_vm0, %v1496_v50  ;;  %v1622_v53 = vadd.f32 %v1769_v12, %v1621_v51 }
 0x376   :  { %v1641_v52 = vpop.f32.mrf.mxu0 }
 0x377   :  { %v1642_v55 = vadd.f32 %v1641_v52, %v1622_v53 }
 0x388   :  { %v1661_v54 = vpop.f32.mrf.mxu2 }
 0x389   :  { %v1662_v57 = vadd.f32 %v1661_v54, %v1642_v55 }
 0x3a2   :  { %v1681_v56 = vpop.f32.mrf.mxu1 }
 0x3a3   :  { %v1682_v59 = vadd.f32 %v1681_v56, %v1662_v57 }
 0x3bc   :  { %v1701_v4 = vpop.f32.mrf.mxu3 }
 0x3bd   :  { %v1702_v62 = vadd.f32 %v1701_v4, %v1682_v59 }
 0x3cd   :  { %v1721_v60 = vpop.f32.mrf.mxu0 }
 0x3ce   :  { %v1722_v63 = vadd.f32 %v1721_v60, %v1702_v62 }
 0x3f1   :  { %v1741_v0 = vpop.f32.mrf.mxu2 }
 0x3f2   :  { %v1742_v1 = vadd.f32 %v1741_v0, %v1722_v63 }
 0x3f4   :  { %1745 = vst.msk [vmem:[%s3760_s14] sm:$0x3] %vm1744_vm10, %v1742_v1 }

</bundles_post_ra>
